<compile_context>
chip_gen: v6e
topology: v6e:2x2x1
jax: 0.10.0
libtpu: 0.0.40
codegen_flags: <defaults>
</compile_context>

<pallas_src>
import math

import jax
import jax.numpy as jnp
from jax import lax
from jax.experimental import pallas as pl
from jax.experimental.pallas import tpu as pltpu


# ----------------------------- small helpers -------------------------------

def _round_up(x, m):
    return ((x + m - 1) // m) * m


def _gelu_tanh(x):
    # tanh approximation (routes through the EUP); ~1e-3 off exact erf GELU.
    c = math.sqrt(2.0 / math.pi)
    return 0.5 * x * (1.0 + jnp.tanh(c * (x + 0.044715 * x * x * x)))


def _silu(x):
    return x * jax.nn.sigmoid(x)


def _layernorm(x, g, b, eps=1e-5):
    # two-pass (centered) statistics: robust when |mean| >> std.
    mu = jnp.mean(x, axis=-1, keepdims=True)
    xc = x - mu
    var = jnp.mean(xc * xc, axis=-1, keepdims=True)
    return xc * lax.rsqrt(var + eps) * g + b


# -------------------------------- kernel -----------------------------------

def scorenet_kernel(cin_ref, z_ref,
                    w0_ref, w1_ref, w2_ref, wz_ref, wcf_ref,
                    fc1w_ref, fc2w_ref, vec_ref,
                    out_ref):
    E = z_ref.shape[1]
    L = fc1w_ref.shape[0]
    f32 = jnp.float32
    bf16 = jnp.bfloat16

    def mm(x, w):
        # bf16 MXU matmul with f32 accumulation
        return jnp.dot(x.astype(bf16), w, preferred_element_type=f32)

    # packed bias / LayerNorm table: rows 0..7 global, then 8 rows per layer
    b0 = vec_ref[0:1, :]                       # (1, 4E)
    b1 = vec_ref[1:2, :]                       # (1, 4E)
    b2 = vec_ref[2:3, 0:E]                     # (1, E)
    bz = vec_ref[3:4, 0:E]                     # (1, E)

    # --- conditioning MLP on host-precomputed [temb, conditioning] ---
    c = _silu(mm(cin_ref[...], w0_ref[...]) + b0)               # (TM, 4E)
    c = _silu(mm(c, w1_ref[...]) + b1)                          # (TM, 4E)
    c = mm(c, w2_ref[...]) + b2                                 # (TM, E)

    # cond_fc is shared by every ResNet block -> project once, keep bf16
    cond_proj = mm(c, wcf_ref[...]).astype(bf16)                # (TM, 4E)

    # --- h = fc_z(z), then the ResNet blocks (unrolled) ---
    zz = mm(z_ref[...], wz_ref[...]) + bz                       # (TM, E) f32
    for l in range(L):
        base = 8 + 8 * l                                        # 8-sublane aligned
        ln1_g = vec_ref[base + 0:base + 1, 0:E]
        ln1_b = vec_ref[base + 1:base + 2, 0:E]
        fc1_b = vec_ref[base + 2:base + 3, :]
        ln2_g = vec_ref[base + 3:base + 4, :]
        ln2_b = vec_ref[base + 4:base + 5, :]
        fc2_b = vec_ref[base + 5:base + 6, 0:E]

        h = _gelu_tanh(_layernorm(zz, ln1_g, ln1_b))
        h = mm(h, fc1w_ref[l]) + fc1_b                          # (TM, 4E)
        h = h + cond_proj                                       # bf16 -> f32 promote
        h = _gelu_tanh(_layernorm(h, ln2_g, ln2_b))
        h = mm(h, fc2w_ref[l]) + fc2_b                          # (TM, E)
        zz = zz + h

    out_ref[...] = z_ref[...] + zz                              # final residual


# ------------------------------ host wrapper --------------------------------

def _choose_tile(B, max_tm=512):
    """Pick batch tile (multiple of 8 sublanes) and padded batch size.

    Small batches: a single full tile (no over-padding beyond 8 rows).
    Larger batches: 128..512-row tiles so the MXU M dimension is full and the
    1-D grid has >= 2 steps (v7x megacore sharding, pipelined tile DMAs).
    """
    Bp = _round_up(max(B, 1), 8)
    if Bp < 256:
        tm = Bp
    elif Bp <= 2 * max_tm:
        tm = _round_up((Bp + 1) // 2, 8)
    else:
        tm = max_tm
    Bp = _round_up(Bp, tm)
    return tm, Bp


def _timestep_embedding(g_t, B, E):
    # get_timestep_embedding(): sin/cos of g_t * 1000 over log-spaced freqs.
    half = E // 2
    gt = jnp.broadcast_to(jnp.asarray(g_t, jnp.float32).reshape(-1), (B,)) * 1000.0
    emb_factor = math.log(10000.0) / (half - 1)
    freqs = jnp.exp(-emb_factor * jnp.arange(half, dtype=jnp.float32))
    ang = gt[:, None] * freqs[None, :]
    return jnp.concatenate([jnp.sin(ang), jnp.cos(ang)], axis=1)    # (B, E)


def scorenet_forward(z, g_t, conditioning, kparams, *, max_tm=512):
    B, E = z.shape
    L = kparams["fc1_w"].shape[0]
    M4 = kparams["w0"].shape[1]
    tm, Bp = _choose_tile(B, max_tm)

    # host-side: timestep embedding + concat -> one lane-dense bf16 input
    temb = _timestep_embedding(g_t, B, E)
    cond_in = jnp.concatenate([temb, conditioning], axis=1).astype(jnp.bfloat16)

    if Bp != B:
        pad = ((0, Bp - B), (0, 0))
        z_p = jnp.pad(z, pad)
        cond_in_p = jnp.pad(cond_in, pad)
    else:
        z_p, cond_in_p = z, cond_in

    def batch_spec(cols):
        return pl.BlockSpec((tm, cols), lambda i: (i, 0))

    def resident(arr):
        nd = arr.ndim
        return pl.BlockSpec(arr.shape, lambda i, _nd=nd: (0,) * _nd)

    weights = (kparams["w0"], kparams["w1"], kparams["w2"], kparams["wz"],
               kparams["wcf"], kparams["fc1_w"], kparams["fc2_w"], kparams["vecs"])
    weight_bytes = sum(int(a.size) * a.dtype.itemsize for a in weights)

    # advisory cost so XLA can schedule surrounding ops against the kernel
    mm_params = sum(int(kparams[k].size)
                    for k in ("w0", "w1", "w2", "wz", "wcf", "fc1_w", "fc2_w"))
    cost = pl.CostEstimate(
        flops=2 * Bp * mm_params,
        transcendentals=Bp * (2 * M4 + L * (E + M4)),
        bytes_accessed=weight_bytes + Bp * (2 * E * 2 + E * 4 + E * 4))

    # VMEM budget: double-buffered weights + double-buffered io tiles + live
    # f32 intermediates; floored at the 32 MiB default, capped below v7x VMEM.
    io_tiles = 2 * tm * (2 * E * 2 + E * 4 + E * 4)
    live = 8 * tm * M4 * 4
    vmem_bytes = int(min(max(2 * weight_bytes + io_tiles + live + (4 << 20),
                             32 << 20), 56 << 20))

    out = pl.pallas_call(
        scorenet_kernel,
        out_shape=jax.ShapeDtypeStruct((Bp, E), jnp.float32),
        grid=(Bp // tm,),
        in_specs=[batch_spec(2 * E), batch_spec(E)] + [resident(w) for w in weights],
        out_specs=batch_spec(E),
        compiler_params=pltpu.CompilerParams(
            dimension_semantics=("parallel",),
            vmem_limit_bytes=vmem_bytes),
        cost_estimate=cost,
    )(cond_in_p, z_p, *weights)
    return out[:B]


# -------------------------- parameter construction --------------------------

def init_params(key, E, n_layers, *, zero_init_fc2=False, scale=0.05):
    """f32 parameters with every Linear weight stored as (in, out)."""
    assert E % 2 == 0 and E // 2 > 1, "embedding_dim must be even and >= 4"
    M4 = 4 * E
    ks = jax.random.split(key, 13)
    rn = lambda k, shape: jax.random.normal(k, shape, jnp.float32) * scale

    # NOTE: PyTorch zero-inits fc2 weight & bias; random values are used here
    # by default so the test exercises the full residual compute path.
    if zero_init_fc2:
        fc2_w = jnp.zeros((n_layers, M4, E), jnp.float32)
        fc2_b = jnp.zeros((n_layers, E), jnp.float32)
    else:
        fc2_w = rn(ks[11], (n_layers, M4, E))
        fc2_b = rn(ks[12], (n_layers, E))

    return dict(
        w0=rn(ks[0], (2 * E, M4)), b0=rn(ks[1], (M4,)),
        w1=rn(ks[2], (M4, M4)),    b1=rn(ks[3], (M4,)),
        w2=rn(ks[4], (M4, E)),     b2=rn(ks[5], (E,)),
        wz=rn(ks[6], (E, E)),      bz=rn(ks[7], (E,)),
        wcf=rn(ks[8], (E, M4)),                      # cond_fc (bias=False)
        ln1_g=jnp.ones((n_layers, E), jnp.float32),
        ln1_b=jnp.zeros((n_layers, E), jnp.float32),
        fc1_w=rn(ks[9], (n_layers, E, M4)),
        fc1_b=rn(ks[10], (n_layers, M4)),
        ln2_g=jnp.ones((n_layers, M4), jnp.float32),
        ln2_b=jnp.zeros((n_layers, M4), jnp.float32),
        fc2_w=fc2_w,
        fc2_b=fc2_b,
    )


def pack_params(p):
    """Kernel-ready params: bf16 matmul weights + one 8-sublane-aligned f32 table."""
    L, E, M4 = p["fc1_w"].shape

    def row(v):
        return jnp.pad(v, (0, M4 - v.shape[0]))

    zero = jnp.zeros((M4,), jnp.float32)
    rows = [row(p["b0"]), row(p["b1"]), row(p["b2"]), row(p["bz"]),
            zero, zero, zero, zero]                            # global group: rows 0..7
    for l in range(L):
        rows += [row(p["ln1_g"][l]), row(p["ln1_b"][l]), row(p["fc1_b"][l]),
                 row(p["ln2_g"][l]), row(p["ln2_b"][l]), row(p["fc2_b"][l]),
                 zero, zero]                                   # per-layer group: 8 rows
    vecs = jnp.stack(rows, axis=0).astype(jnp.float32)         # (8 + 8L, 4E)

    bf = lambda x: x.astype(jnp.bfloat16)
    return dict(w0=bf(p["w0"]), w1=bf(p["w1"]), w2=bf(p["w2"]),
                wz=bf(p["wz"]), wcf=bf(p["wcf"]),
                fc1_w=bf(p["fc1_w"]), fc2_w=bf(p["fc2_w"]), vecs=vecs)


# ----------------------- pure-JAX reference (for check) ---------------------

def scorenet_reference(z, g_t, conditioning, params):
    B, E = z.shape
    half = E // 2
    gt = jnp.broadcast_to(jnp.asarray(g_t, jnp.float32).reshape(-1), (B,)) * 1000.0
    emb_factor = math.log(10000.0) / (half - 1)
    freqs = jnp.exp(-emb_factor * jnp.arange(half, dtype=jnp.float32))
    ang = gt[:, None] * freqs[None, :]
    temb = jnp.concatenate([jnp.sin(ang), jnp.cos(ang)], axis=1)
    cond_in = jnp.concatenate([temb, conditioning], axis=1)

    dot = lambda a, b: jnp.dot(a, b, precision="highest")

    def ln(x, g, b, eps=1e-5):
        mu = jnp.mean(x, -1, keepdims=True)
        v = jnp.mean((x - mu) ** 2, -1, keepdims=True)
        return (x - mu) / jnp.sqrt(v + eps) * g + b

    gelu = lambda x: jax.nn.gelu(x, approximate=False)   # torch default (erf)

    c = jax.nn.silu(dot(cond_in, params["w0"]) + params["b0"])
    c = jax.nn.silu(dot(c, params["w1"]) + params["b1"])
    c = dot(c, params["w2"]) + params["b2"]
    cond_proj = dot(c, params["wcf"])

    zz = dot(z, params["wz"]) + params["bz"]
    for l in range(params["fc1_w"].shape[0]):
        h = gelu(ln(zz, params["ln1_g"][l], params["ln1_b"][l]))
        h = dot(h, params["fc1_w"][l]) + params["fc1_b"][l]
        h = h + cond_proj
        h = gelu(ln(h, params["ln2_g"][l], params["ln2_b"][l]))
        h = dot(h, params["fc2_w"][l]) + params["fc2_b"][l]
        zz = zz + h
    return z + zz


# ----------------------------------- main ------------------------------------

if __name__ == "__main__":
    # embedding_dim=128 (module default, lane-dense), 3 ResNet layers, batch 16
    E, L, B = 128, 3, 16
    key = jax.random.PRNGKey(0)
    kp, kz, kc = jax.random.split(key, 3)

    params = init_params(kp, E, L)
    kparams = pack_params(params)
    z = jax.random.normal(kz, (B, E), jnp.float32)
    conditioning = jax.random.normal(kc, (B, E), jnp.float32)
    g_t = 0.5                      # scalar diffusion time, broadcast over batch

    fwd = jax.jit(scorenet_forward)
    out = jax.block_until_ready(fwd(z, g_t, conditioning, kparams))

    ref = scorenet_reference(z, g_t, conditioning, params)
    assert out.shape == (B, E)

    # relative-error check (kernel uses bf16 matmuls + tanh-approx GELU)
    abs_err = float(jnp.max(jnp.abs(out - ref)))
    rel_err = abs_err / (float(jnp.max(jnp.abs(ref))) + 1e-6)
    assert rel_err < 3e-2, f"mismatch vs reference: abs={abs_err}, rel={rel_err}"

    print("KERNEL_OK")
</pallas_src>

<mosaic_0001>
module attributes {stable_mosaic.version = 11 : i64} {
  func.func @scorenet_kernel(%arg0: i32, %arg1: memref<16x256xbf16, #tpu.memory_space<vmem>>, %arg2: memref<16x128xf32, #tpu.memory_space<vmem>>, %arg3: memref<256x512xbf16, #tpu.memory_space<vmem>>, %arg4: memref<512x512xbf16, #tpu.memory_space<vmem>>, %arg5: memref<512x128xbf16, #tpu.memory_space<vmem>>, %arg6: memref<128x128xbf16, #tpu.memory_space<vmem>>, %arg7: memref<128x512xbf16, #tpu.memory_space<vmem>>, %arg8: memref<3x128x512xbf16, #tpu.memory_space<vmem>>, %arg9: memref<3x512x128xbf16, #tpu.memory_space<vmem>>, %arg10: memref<32x512xf32, #tpu.memory_space<vmem>>, %arg11: memref<16x128xf32, #tpu.memory_space<vmem>>) attributes {dimension_semantics = [#tpu.dimension_semantics<parallel>], iteration_bounds = array<i64: 1>, scalar_prefetch = 0 : i64, scratch_operands = 0 : i64, tpu.core_type = #tpu.core_type<tc>, window_params = [{transform_indices = @transform_0, window_bounds = array<i64: 16, 256>}, {transform_indices = @transform_1, window_bounds = array<i64: 16, 128>}, {pipeline_mode = #tpu.pipeline_mode<synchronous>, transform_indices = @transform_2, window_bounds = array<i64: 256, 512>}, {pipeline_mode = #tpu.pipeline_mode<synchronous>, transform_indices = @transform_3, window_bounds = array<i64: 512, 512>}, {pipeline_mode = #tpu.pipeline_mode<synchronous>, transform_indices = @transform_4, window_bounds = array<i64: 512, 128>}, {pipeline_mode = #tpu.pipeline_mode<synchronous>, transform_indices = @transform_5, window_bounds = array<i64: 128, 128>}, {pipeline_mode = #tpu.pipeline_mode<synchronous>, transform_indices = @transform_6, window_bounds = array<i64: 128, 512>}, {pipeline_mode = #tpu.pipeline_mode<synchronous>, transform_indices = @transform_7, window_bounds = array<i64: 3, 128, 512>}, {pipeline_mode = #tpu.pipeline_mode<synchronous>, transform_indices = @transform_8, window_bounds = array<i64: 3, 512, 128>}, {pipeline_mode = #tpu.pipeline_mode<synchronous>, transform_indices = @transform_9, window_bounds = array<i64: 32, 512>}, {transform_indices = @transform_10, window_bounds = array<i64: 16, 128>}]} {
    %c0 = arith.constant 0 : index
    %c0_0 = arith.constant 0 : index
    %0 = vector.load %arg10[%c0, %c0_0] : memref<32x512xf32, #tpu.memory_space<vmem>>, vector<1x512xf32>
    %c1 = arith.constant 1 : index
    %c0_1 = arith.constant 0 : index
    %1 = vector.load %arg10[%c1, %c0_1] : memref<32x512xf32, #tpu.memory_space<vmem>>, vector<1x512xf32>
    %c2 = arith.constant 2 : index
    %c0_2 = arith.constant 0 : index
    %2 = vector.load %arg10[%c2, %c0_2] : memref<32x512xf32, #tpu.memory_space<vmem>>, vector<1x128xf32>
    %c3 = arith.constant 3 : index
    %c0_3 = arith.constant 0 : index
    %3 = vector.load %arg10[%c3, %c0_3] : memref<32x512xf32, #tpu.memory_space<vmem>>, vector<1x128xf32>
    %c0_4 = arith.constant 0 : index
    %c0_5 = arith.constant 0 : index
    %4 = vector.load %arg1[%c0_4, %c0_5] : memref<16x256xbf16, #tpu.memory_space<vmem>>, vector<16x256xbf16>
    %c0_6 = arith.constant 0 : index
    %c0_7 = arith.constant 0 : index
    %5 = vector.load %arg3[%c0_6, %c0_7] : memref<256x512xbf16, #tpu.memory_space<vmem>>, vector<256x512xbf16>
    %cst = arith.constant dense<0.000000e+00> : vector<16x512xf32>
    %6 = tpu.matmul %4, %5, %cst {dimension_numbers = #tpu.dot_dimension_numbers<[1], [0], [0], [1], [0, 0, 1, 1], [], []>} : vector<16x256xbf16>, vector<256x512xbf16>, vector<16x512xf32> -> vector<16x512xf32>
    %7 = vector.broadcast %0 : vector<1x512xf32> to vector<16x512xf32>
    %8 = arith.addf %6, %7 : vector<16x512xf32>
    %9 = arith.negf %8 : vector<16x512xf32>
    %10 = math.exp %9 : vector<16x512xf32>
    %cst_8 = arith.constant 1.000000e+00 : f32
    %11 = vector.broadcast %cst_8 : f32 to vector<16x512xf32>
    %12 = arith.addf %11, %10 : vector<16x512xf32>
    %13 = arith.divf %11, %12 : vector<16x512xf32>
    %14 = arith.mulf %8, %13 : vector<16x512xf32>
    %c0_9 = arith.constant 0 : index
    %c0_10 = arith.constant 0 : index
    %15 = vector.load %arg4[%c0_9, %c0_10] : memref<512x512xbf16, #tpu.memory_space<vmem>>, vector<512x512xbf16>
    %16 = arith.truncf %14 : vector<16x512xf32> to vector<16x512xbf16>
    %cst_11 = arith.constant dense<0.000000e+00> : vector<16x512xf32>
    %17 = tpu.matmul %16, %15, %cst_11 {dimension_numbers = #tpu.dot_dimension_numbers<[1], [0], [0], [1], [0, 0, 1, 1], [], []>} : vector<16x512xbf16>, vector<512x512xbf16>, vector<16x512xf32> -> vector<16x512xf32>
    %18 = vector.broadcast %1 : vector<1x512xf32> to vector<16x512xf32>
    %19 = arith.addf %17, %18 : vector<16x512xf32>
    %20 = arith.negf %19 : vector<16x512xf32>
    %21 = math.exp %20 : vector<16x512xf32>
    %cst_12 = arith.constant 1.000000e+00 : f32
    %22 = vector.broadcast %cst_12 : f32 to vector<16x512xf32>
    %23 = arith.addf %22, %21 : vector<16x512xf32>
    %24 = arith.divf %22, %23 : vector<16x512xf32>
    %25 = arith.mulf %19, %24 : vector<16x512xf32>
    %c0_13 = arith.constant 0 : index
    %c0_14 = arith.constant 0 : index
    %26 = vector.load %arg5[%c0_13, %c0_14] : memref<512x128xbf16, #tpu.memory_space<vmem>>, vector<512x128xbf16>
    %27 = arith.truncf %25 : vector<16x512xf32> to vector<16x512xbf16>
    %cst_15 = arith.constant dense<0.000000e+00> : vector<16x128xf32>
    %28 = tpu.matmul %27, %26, %cst_15 {dimension_numbers = #tpu.dot_dimension_numbers<[1], [0], [0], [1], [0, 0, 1, 1], [], []>} : vector<16x512xbf16>, vector<512x128xbf16>, vector<16x128xf32> -> vector<16x128xf32>
    %29 = vector.broadcast %2 : vector<1x128xf32> to vector<16x128xf32>
    %30 = arith.addf %28, %29 : vector<16x128xf32>
    %c0_16 = arith.constant 0 : index
    %c0_17 = arith.constant 0 : index
    %31 = vector.load %arg7[%c0_16, %c0_17] : memref<128x512xbf16, #tpu.memory_space<vmem>>, vector<128x512xbf16>
    %32 = arith.truncf %30 : vector<16x128xf32> to vector<16x128xbf16>
    %cst_18 = arith.constant dense<0.000000e+00> : vector<16x512xf32>
    %33 = tpu.matmul %32, %31, %cst_18 {dimension_numbers = #tpu.dot_dimension_numbers<[1], [0], [0], [1], [0, 0, 1, 1], [], []>} : vector<16x128xbf16>, vector<128x512xbf16>, vector<16x512xf32> -> vector<16x512xf32>
    %34 = arith.truncf %33 : vector<16x512xf32> to vector<16x512xbf16>
    %c0_19 = arith.constant 0 : index
    %c0_20 = arith.constant 0 : index
    %35 = vector.load %arg2[%c0_19, %c0_20] : memref<16x128xf32, #tpu.memory_space<vmem>>, vector<16x128xf32>
    %c0_21 = arith.constant 0 : index
    %c0_22 = arith.constant 0 : index
    %36 = vector.load %arg6[%c0_21, %c0_22] : memref<128x128xbf16, #tpu.memory_space<vmem>>, vector<128x128xbf16>
    %37 = arith.truncf %35 : vector<16x128xf32> to vector<16x128xbf16>
    %cst_23 = arith.constant dense<0.000000e+00> : vector<16x128xf32>
    %38 = tpu.matmul %37, %36, %cst_23 {dimension_numbers = #tpu.dot_dimension_numbers<[1], [0], [0], [1], [0, 0, 1, 1], [], []>} : vector<16x128xbf16>, vector<128x128xbf16>, vector<16x128xf32> -> vector<16x128xf32>
    %39 = vector.broadcast %3 : vector<1x128xf32> to vector<16x128xf32>
    %40 = arith.addf %38, %39 : vector<16x128xf32>
    %c8 = arith.constant 8 : index
    %c0_24 = arith.constant 0 : index
    %41 = vector.load %arg10[%c8, %c0_24] : memref<32x512xf32, #tpu.memory_space<vmem>>, vector<1x128xf32>
    %c9 = arith.constant 9 : index
    %c0_25 = arith.constant 0 : index
    %42 = vector.load %arg10[%c9, %c0_25] : memref<32x512xf32, #tpu.memory_space<vmem>>, vector<1x128xf32>
    %c10 = arith.constant 10 : index
    %c0_26 = arith.constant 0 : index
    %43 = vector.load %arg10[%c10, %c0_26] : memref<32x512xf32, #tpu.memory_space<vmem>>, vector<1x512xf32>
    %c11 = arith.constant 11 : index
    %c0_27 = arith.constant 0 : index
    %44 = vector.load %arg10[%c11, %c0_27] : memref<32x512xf32, #tpu.memory_space<vmem>>, vector<1x512xf32>
    %c12 = arith.constant 12 : index
    %c0_28 = arith.constant 0 : index
    %45 = vector.load %arg10[%c12, %c0_28] : memref<32x512xf32, #tpu.memory_space<vmem>>, vector<1x512xf32>
    %c13 = arith.constant 13 : index
    %c0_29 = arith.constant 0 : index
    %46 = vector.load %arg10[%c13, %c0_29] : memref<32x512xf32, #tpu.memory_space<vmem>>, vector<1x128xf32>
    %cst_30 = arith.constant dense<0.000000e+00> : vector<16xf32>
    %47 = vector.multi_reduction <add>, %40, %cst_30 [1] : vector<16x128xf32> to vector<16xf32>
    %48 = vector.shape_cast %47 : vector<16xf32> to vector<16x1xf32>
    %cst_31 = arith.constant 1.280000e+02 : f32
    %49 = vector.broadcast %cst_31 : f32 to vector<16x1xf32>
    %50 = arith.divf %48, %49 : vector<16x1xf32>
    %51 = vector.broadcast %50 : vector<16x1xf32> to vector<16x128xf32>
    %52 = arith.subf %40, %51 : vector<16x128xf32>
    %53 = arith.mulf %52, %52 : vector<16x128xf32>
    %cst_32 = arith.constant dense<0.000000e+00> : vector<16xf32>
    %54 = vector.multi_reduction <add>, %53, %cst_32 [1] : vector<16x128xf32> to vector<16xf32>
    %55 = vector.shape_cast %54 : vector<16xf32> to vector<16x1xf32>
    %cst_33 = arith.constant 1.280000e+02 : f32
    %56 = vector.broadcast %cst_33 : f32 to vector<16x1xf32>
    %57 = arith.divf %55, %56 : vector<16x1xf32>
    %cst_34 = arith.constant 9.99999974E-6 : f32
    %58 = vector.broadcast %cst_34 : f32 to vector<16x1xf32>
    %59 = arith.addf %57, %58 : vector<16x1xf32>
    %60 = math.rsqrt %59 : vector<16x1xf32>
    %61 = vector.broadcast %60 : vector<16x1xf32> to vector<16x128xf32>
    %62 = arith.mulf %52, %61 : vector<16x128xf32>
    %63 = vector.broadcast %41 : vector<1x128xf32> to vector<16x128xf32>
    %64 = arith.mulf %62, %63 : vector<16x128xf32>
    %65 = vector.broadcast %42 : vector<1x128xf32> to vector<16x128xf32>
    %66 = arith.addf %64, %65 : vector<16x128xf32>
    %cst_35 = arith.constant 5.000000e-01 : f32
    %67 = vector.broadcast %cst_35 : f32 to vector<16x128xf32>
    %68 = arith.mulf %67, %66 : vector<16x128xf32>
    %cst_36 = arith.constant 4.471500e-02 : f32
    %69 = vector.broadcast %cst_36 : f32 to vector<16x128xf32>
    %70 = arith.mulf %69, %66 : vector<16x128xf32>
    %71 = arith.mulf %70, %66 : vector<16x128xf32>
    %72 = arith.mulf %71, %66 : vector<16x128xf32>
    %73 = arith.addf %66, %72 : vector<16x128xf32>
    %cst_37 = arith.constant 0.797884583 : f32
    %74 = vector.broadcast %cst_37 : f32 to vector<16x128xf32>
    %75 = arith.mulf %74, %73 : vector<16x128xf32>
    %76 = math.tanh %75 : vector<16x128xf32>
    %cst_38 = arith.constant 1.000000e+00 : f32
    %77 = vector.broadcast %cst_38 : f32 to vector<16x128xf32>
    %78 = arith.addf %77, %76 : vector<16x128xf32>
    %79 = arith.mulf %68, %78 : vector<16x128xf32>
    %c0_39 = arith.constant 0 : index
    %c0_40 = arith.constant 0 : index
    %c0_41 = arith.constant 0 : index
    %80 = vector.load %arg8[%c0_39, %c0_40, %c0_41] : memref<3x128x512xbf16, #tpu.memory_space<vmem>>, vector<1x128x512xbf16>
    %81 = vector.shape_cast %80 : vector<1x128x512xbf16> to vector<128x512xbf16>
    %82 = arith.truncf %79 : vector<16x128xf32> to vector<16x128xbf16>
    %cst_42 = arith.constant dense<0.000000e+00> : vector<16x512xf32>
    %83 = tpu.matmul %82, %81, %cst_42 {dimension_numbers = #tpu.dot_dimension_numbers<[1], [0], [0], [1], [0, 0, 1, 1], [], []>} : vector<16x128xbf16>, vector<128x512xbf16>, vector<16x512xf32> -> vector<16x512xf32>
    %84 = vector.broadcast %43 : vector<1x512xf32> to vector<16x512xf32>
    %85 = arith.addf %83, %84 : vector<16x512xf32>
    %86 = arith.extf %34 : vector<16x512xbf16> to vector<16x512xf32>
    %87 = arith.addf %85, %86 : vector<16x512xf32>
    %cst_43 = arith.constant dense<0.000000e+00> : vector<16xf32>
    %88 = vector.multi_reduction <add>, %87, %cst_43 [1] : vector<16x512xf32> to vector<16xf32>
    %89 = vector.shape_cast %88 : vector<16xf32> to vector<16x1xf32>
    %cst_44 = arith.constant 5.120000e+02 : f32
    %90 = vector.broadcast %cst_44 : f32 to vector<16x1xf32>
    %91 = arith.divf %89, %90 : vector<16x1xf32>
    %92 = vector.broadcast %91 : vector<16x1xf32> to vector<16x512xf32>
    %93 = arith.subf %87, %92 : vector<16x512xf32>
    %94 = arith.mulf %93, %93 : vector<16x512xf32>
    %cst_45 = arith.constant dense<0.000000e+00> : vector<16xf32>
    %95 = vector.multi_reduction <add>, %94, %cst_45 [1] : vector<16x512xf32> to vector<16xf32>
    %96 = vector.shape_cast %95 : vector<16xf32> to vector<16x1xf32>
    %cst_46 = arith.constant 5.120000e+02 : f32
    %97 = vector.broadcast %cst_46 : f32 to vector<16x1xf32>
    %98 = arith.divf %96, %97 : vector<16x1xf32>
    %cst_47 = arith.constant 9.99999974E-6 : f32
    %99 = vector.broadcast %cst_47 : f32 to vector<16x1xf32>
    %100 = arith.addf %98, %99 : vector<16x1xf32>
    %101 = math.rsqrt %100 : vector<16x1xf32>
    %102 = vector.broadcast %101 : vector<16x1xf32> to vector<16x512xf32>
    %103 = arith.mulf %93, %102 : vector<16x512xf32>
    %104 = vector.broadcast %44 : vector<1x512xf32> to vector<16x512xf32>
    %105 = arith.mulf %103, %104 : vector<16x512xf32>
    %106 = vector.broadcast %45 : vector<1x512xf32> to vector<16x512xf32>
    %107 = arith.addf %105, %106 : vector<16x512xf32>
    %cst_48 = arith.constant 5.000000e-01 : f32
    %108 = vector.broadcast %cst_48 : f32 to vector<16x512xf32>
    %109 = arith.mulf %108, %107 : vector<16x512xf32>
    %cst_49 = arith.constant 4.471500e-02 : f32
    %110 = vector.broadcast %cst_49 : f32 to vector<16x512xf32>
    %111 = arith.mulf %110, %107 : vector<16x512xf32>
    %112 = arith.mulf %111, %107 : vector<16x512xf32>
    %113 = arith.mulf %112, %107 : vector<16x512xf32>
    %114 = arith.addf %107, %113 : vector<16x512xf32>
    %cst_50 = arith.constant 0.797884583 : f32
    %115 = vector.broadcast %cst_50 : f32 to vector<16x512xf32>
    %116 = arith.mulf %115, %114 : vector<16x512xf32>
    %117 = math.tanh %116 : vector<16x512xf32>
    %cst_51 = arith.constant 1.000000e+00 : f32
    %118 = vector.broadcast %cst_51 : f32 to vector<16x512xf32>
    %119 = arith.addf %118, %117 : vector<16x512xf32>
    %120 = arith.mulf %109, %119 : vector<16x512xf32>
    %c0_52 = arith.constant 0 : index
    %c0_53 = arith.constant 0 : index
    %c0_54 = arith.constant 0 : index
    %121 = vector.load %arg9[%c0_52, %c0_53, %c0_54] : memref<3x512x128xbf16, #tpu.memory_space<vmem>>, vector<1x512x128xbf16>
    %122 = vector.shape_cast %121 : vector<1x512x128xbf16> to vector<512x128xbf16>
    %123 = arith.truncf %120 : vector<16x512xf32> to vector<16x512xbf16>
    %cst_55 = arith.constant dense<0.000000e+00> : vector<16x128xf32>
    %124 = tpu.matmul %123, %122, %cst_55 {dimension_numbers = #tpu.dot_dimension_numbers<[1], [0], [0], [1], [0, 0, 1, 1], [], []>} : vector<16x512xbf16>, vector<512x128xbf16>, vector<16x128xf32> -> vector<16x128xf32>
    %125 = vector.broadcast %46 : vector<1x128xf32> to vector<16x128xf32>
    %126 = arith.addf %124, %125 : vector<16x128xf32>
    %127 = arith.addf %40, %126 : vector<16x128xf32>
    %c16 = arith.constant 16 : index
    %c0_56 = arith.constant 0 : index
    %128 = vector.load %arg10[%c16, %c0_56] : memref<32x512xf32, #tpu.memory_space<vmem>>, vector<1x128xf32>
    %c17 = arith.constant 17 : index
    %c0_57 = arith.constant 0 : index
    %129 = vector.load %arg10[%c17, %c0_57] : memref<32x512xf32, #tpu.memory_space<vmem>>, vector<1x128xf32>
    %c18 = arith.constant 18 : index
    %c0_58 = arith.constant 0 : index
    %130 = vector.load %arg10[%c18, %c0_58] : memref<32x512xf32, #tpu.memory_space<vmem>>, vector<1x512xf32>
    %c19 = arith.constant 19 : index
    %c0_59 = arith.constant 0 : index
    %131 = vector.load %arg10[%c19, %c0_59] : memref<32x512xf32, #tpu.memory_space<vmem>>, vector<1x512xf32>
    %c20 = arith.constant 20 : index
    %c0_60 = arith.constant 0 : index
    %132 = vector.load %arg10[%c20, %c0_60] : memref<32x512xf32, #tpu.memory_space<vmem>>, vector<1x512xf32>
    %c21 = arith.constant 21 : index
    %c0_61 = arith.constant 0 : index
    %133 = vector.load %arg10[%c21, %c0_61] : memref<32x512xf32, #tpu.memory_space<vmem>>, vector<1x128xf32>
    %cst_62 = arith.constant dense<0.000000e+00> : vector<16xf32>
    %134 = vector.multi_reduction <add>, %127, %cst_62 [1] : vector<16x128xf32> to vector<16xf32>
    %135 = vector.shape_cast %134 : vector<16xf32> to vector<16x1xf32>
    %cst_63 = arith.constant 1.280000e+02 : f32
    %136 = vector.broadcast %cst_63 : f32 to vector<16x1xf32>
    %137 = arith.divf %135, %136 : vector<16x1xf32>
    %138 = vector.broadcast %137 : vector<16x1xf32> to vector<16x128xf32>
    %139 = arith.subf %127, %138 : vector<16x128xf32>
    %140 = arith.mulf %139, %139 : vector<16x128xf32>
    %cst_64 = arith.constant dense<0.000000e+00> : vector<16xf32>
    %141 = vector.multi_reduction <add>, %140, %cst_64 [1] : vector<16x128xf32> to vector<16xf32>
    %142 = vector.shape_cast %141 : vector<16xf32> to vector<16x1xf32>
    %cst_65 = arith.constant 1.280000e+02 : f32
    %143 = vector.broadcast %cst_65 : f32 to vector<16x1xf32>
    %144 = arith.divf %142, %143 : vector<16x1xf32>
    %cst_66 = arith.constant 9.99999974E-6 : f32
    %145 = vector.broadcast %cst_66 : f32 to vector<16x1xf32>
    %146 = arith.addf %144, %145 : vector<16x1xf32>
    %147 = math.rsqrt %146 : vector<16x1xf32>
    %148 = vector.broadcast %147 : vector<16x1xf32> to vector<16x128xf32>
    %149 = arith.mulf %139, %148 : vector<16x128xf32>
    %150 = vector.broadcast %128 : vector<1x128xf32> to vector<16x128xf32>
    %151 = arith.mulf %149, %150 : vector<16x128xf32>
    %152 = vector.broadcast %129 : vector<1x128xf32> to vector<16x128xf32>
    %153 = arith.addf %151, %152 : vector<16x128xf32>
    %cst_67 = arith.constant 5.000000e-01 : f32
    %154 = vector.broadcast %cst_67 : f32 to vector<16x128xf32>
    %155 = arith.mulf %154, %153 : vector<16x128xf32>
    %cst_68 = arith.constant 4.471500e-02 : f32
    %156 = vector.broadcast %cst_68 : f32 to vector<16x128xf32>
    %157 = arith.mulf %156, %153 : vector<16x128xf32>
    %158 = arith.mulf %157, %153 : vector<16x128xf32>
    %159 = arith.mulf %158, %153 : vector<16x128xf32>
    %160 = arith.addf %153, %159 : vector<16x128xf32>
    %cst_69 = arith.constant 0.797884583 : f32
    %161 = vector.broadcast %cst_69 : f32 to vector<16x128xf32>
    %162 = arith.mulf %161, %160 : vector<16x128xf32>
    %163 = math.tanh %162 : vector<16x128xf32>
    %cst_70 = arith.constant 1.000000e+00 : f32
    %164 = vector.broadcast %cst_70 : f32 to vector<16x128xf32>
    %165 = arith.addf %164, %163 : vector<16x128xf32>
    %166 = arith.mulf %155, %165 : vector<16x128xf32>
    %c1_71 = arith.constant 1 : index
    %c0_72 = arith.constant 0 : index
    %c0_73 = arith.constant 0 : index
    %167 = vector.load %arg8[%c1_71, %c0_72, %c0_73] : memref<3x128x512xbf16, #tpu.memory_space<vmem>>, vector<1x128x512xbf16>
    %168 = vector.shape_cast %167 : vector<1x128x512xbf16> to vector<128x512xbf16>
    %169 = arith.truncf %166 : vector<16x128xf32> to vector<16x128xbf16>
    %cst_74 = arith.constant dense<0.000000e+00> : vector<16x512xf32>
    %170 = tpu.matmul %169, %168, %cst_74 {dimension_numbers = #tpu.dot_dimension_numbers<[1], [0], [0], [1], [0, 0, 1, 1], [], []>} : vector<16x128xbf16>, vector<128x512xbf16>, vector<16x512xf32> -> vector<16x512xf32>
    %171 = vector.broadcast %130 : vector<1x512xf32> to vector<16x512xf32>
    %172 = arith.addf %170, %171 : vector<16x512xf32>
    %173 = arith.extf %34 : vector<16x512xbf16> to vector<16x512xf32>
    %174 = arith.addf %172, %173 : vector<16x512xf32>
    %cst_75 = arith.constant dense<0.000000e+00> : vector<16xf32>
    %175 = vector.multi_reduction <add>, %174, %cst_75 [1] : vector<16x512xf32> to vector<16xf32>
    %176 = vector.shape_cast %175 : vector<16xf32> to vector<16x1xf32>
    %cst_76 = arith.constant 5.120000e+02 : f32
    %177 = vector.broadcast %cst_76 : f32 to vector<16x1xf32>
    %178 = arith.divf %176, %177 : vector<16x1xf32>
    %179 = vector.broadcast %178 : vector<16x1xf32> to vector<16x512xf32>
    %180 = arith.subf %174, %179 : vector<16x512xf32>
    %181 = arith.mulf %180, %180 : vector<16x512xf32>
    %cst_77 = arith.constant dense<0.000000e+00> : vector<16xf32>
    %182 = vector.multi_reduction <add>, %181, %cst_77 [1] : vector<16x512xf32> to vector<16xf32>
    %183 = vector.shape_cast %182 : vector<16xf32> to vector<16x1xf32>
    %cst_78 = arith.constant 5.120000e+02 : f32
    %184 = vector.broadcast %cst_78 : f32 to vector<16x1xf32>
    %185 = arith.divf %183, %184 : vector<16x1xf32>
    %cst_79 = arith.constant 9.99999974E-6 : f32
    %186 = vector.broadcast %cst_79 : f32 to vector<16x1xf32>
    %187 = arith.addf %185, %186 : vector<16x1xf32>
    %188 = math.rsqrt %187 : vector<16x1xf32>
    %189 = vector.broadcast %188 : vector<16x1xf32> to vector<16x512xf32>
    %190 = arith.mulf %180, %189 : vector<16x512xf32>
    %191 = vector.broadcast %131 : vector<1x512xf32> to vector<16x512xf32>
    %192 = arith.mulf %190, %191 : vector<16x512xf32>
    %193 = vector.broadcast %132 : vector<1x512xf32> to vector<16x512xf32>
    %194 = arith.addf %192, %193 : vector<16x512xf32>
    %cst_80 = arith.constant 5.000000e-01 : f32
    %195 = vector.broadcast %cst_80 : f32 to vector<16x512xf32>
    %196 = arith.mulf %195, %194 : vector<16x512xf32>
    %cst_81 = arith.constant 4.471500e-02 : f32
    %197 = vector.broadcast %cst_81 : f32 to vector<16x512xf32>
    %198 = arith.mulf %197, %194 : vector<16x512xf32>
    %199 = arith.mulf %198, %194 : vector<16x512xf32>
    %200 = arith.mulf %199, %194 : vector<16x512xf32>
    %201 = arith.addf %194, %200 : vector<16x512xf32>
    %cst_82 = arith.constant 0.797884583 : f32
    %202 = vector.broadcast %cst_82 : f32 to vector<16x512xf32>
    %203 = arith.mulf %202, %201 : vector<16x512xf32>
    %204 = math.tanh %203 : vector<16x512xf32>
    %cst_83 = arith.constant 1.000000e+00 : f32
    %205 = vector.broadcast %cst_83 : f32 to vector<16x512xf32>
    %206 = arith.addf %205, %204 : vector<16x512xf32>
    %207 = arith.mulf %196, %206 : vector<16x512xf32>
    %c1_84 = arith.constant 1 : index
    %c0_85 = arith.constant 0 : index
    %c0_86 = arith.constant 0 : index
    %208 = vector.load %arg9[%c1_84, %c0_85, %c0_86] : memref<3x512x128xbf16, #tpu.memory_space<vmem>>, vector<1x512x128xbf16>
    %209 = vector.shape_cast %208 : vector<1x512x128xbf16> to vector<512x128xbf16>
    %210 = arith.truncf %207 : vector<16x512xf32> to vector<16x512xbf16>
    %cst_87 = arith.constant dense<0.000000e+00> : vector<16x128xf32>
    %211 = tpu.matmul %210, %209, %cst_87 {dimension_numbers = #tpu.dot_dimension_numbers<[1], [0], [0], [1], [0, 0, 1, 1], [], []>} : vector<16x512xbf16>, vector<512x128xbf16>, vector<16x128xf32> -> vector<16x128xf32>
    %212 = vector.broadcast %133 : vector<1x128xf32> to vector<16x128xf32>
    %213 = arith.addf %211, %212 : vector<16x128xf32>
    %214 = arith.addf %127, %213 : vector<16x128xf32>
    %c24 = arith.constant 24 : index
    %c0_88 = arith.constant 0 : index
    %215 = vector.load %arg10[%c24, %c0_88] : memref<32x512xf32, #tpu.memory_space<vmem>>, vector<1x128xf32>
    %c25 = arith.constant 25 : index
    %c0_89 = arith.constant 0 : index
    %216 = vector.load %arg10[%c25, %c0_89] : memref<32x512xf32, #tpu.memory_space<vmem>>, vector<1x128xf32>
    %c26 = arith.constant 26 : index
    %c0_90 = arith.constant 0 : index
    %217 = vector.load %arg10[%c26, %c0_90] : memref<32x512xf32, #tpu.memory_space<vmem>>, vector<1x512xf32>
    %c27 = arith.constant 27 : index
    %c0_91 = arith.constant 0 : index
    %218 = vector.load %arg10[%c27, %c0_91] : memref<32x512xf32, #tpu.memory_space<vmem>>, vector<1x512xf32>
    %c28 = arith.constant 28 : index
    %c0_92 = arith.constant 0 : index
    %219 = vector.load %arg10[%c28, %c0_92] : memref<32x512xf32, #tpu.memory_space<vmem>>, vector<1x512xf32>
    %c29 = arith.constant 29 : index
    %c0_93 = arith.constant 0 : index
    %220 = vector.load %arg10[%c29, %c0_93] : memref<32x512xf32, #tpu.memory_space<vmem>>, vector<1x128xf32>
    %cst_94 = arith.constant dense<0.000000e+00> : vector<16xf32>
    %221 = vector.multi_reduction <add>, %214, %cst_94 [1] : vector<16x128xf32> to vector<16xf32>
    %222 = vector.shape_cast %221 : vector<16xf32> to vector<16x1xf32>
    %cst_95 = arith.constant 1.280000e+02 : f32
    %223 = vector.broadcast %cst_95 : f32 to vector<16x1xf32>
    %224 = arith.divf %222, %223 : vector<16x1xf32>
    %225 = vector.broadcast %224 : vector<16x1xf32> to vector<16x128xf32>
    %226 = arith.subf %214, %225 : vector<16x128xf32>
    %227 = arith.mulf %226, %226 : vector<16x128xf32>
    %cst_96 = arith.constant dense<0.000000e+00> : vector<16xf32>
    %228 = vector.multi_reduction <add>, %227, %cst_96 [1] : vector<16x128xf32> to vector<16xf32>
    %229 = vector.shape_cast %228 : vector<16xf32> to vector<16x1xf32>
    %cst_97 = arith.constant 1.280000e+02 : f32
    %230 = vector.broadcast %cst_97 : f32 to vector<16x1xf32>
    %231 = arith.divf %229, %230 : vector<16x1xf32>
    %cst_98 = arith.constant 9.99999974E-6 : f32
    %232 = vector.broadcast %cst_98 : f32 to vector<16x1xf32>
    %233 = arith.addf %231, %232 : vector<16x1xf32>
    %234 = math.rsqrt %233 : vector<16x1xf32>
    %235 = vector.broadcast %234 : vector<16x1xf32> to vector<16x128xf32>
    %236 = arith.mulf %226, %235 : vector<16x128xf32>
    %237 = vector.broadcast %215 : vector<1x128xf32> to vector<16x128xf32>
    %238 = arith.mulf %236, %237 : vector<16x128xf32>
    %239 = vector.broadcast %216 : vector<1x128xf32> to vector<16x128xf32>
    %240 = arith.addf %238, %239 : vector<16x128xf32>
    %cst_99 = arith.constant 5.000000e-01 : f32
    %241 = vector.broadcast %cst_99 : f32 to vector<16x128xf32>
    %242 = arith.mulf %241, %240 : vector<16x128xf32>
    %cst_100 = arith.constant 4.471500e-02 : f32
    %243 = vector.broadcast %cst_100 : f32 to vector<16x128xf32>
    %244 = arith.mulf %243, %240 : vector<16x128xf32>
    %245 = arith.mulf %244, %240 : vector<16x128xf32>
    %246 = arith.mulf %245, %240 : vector<16x128xf32>
    %247 = arith.addf %240, %246 : vector<16x128xf32>
    %cst_101 = arith.constant 0.797884583 : f32
    %248 = vector.broadcast %cst_101 : f32 to vector<16x128xf32>
    %249 = arith.mulf %248, %247 : vector<16x128xf32>
    %250 = math.tanh %249 : vector<16x128xf32>
    %cst_102 = arith.constant 1.000000e+00 : f32
    %251 = vector.broadcast %cst_102 : f32 to vector<16x128xf32>
    %252 = arith.addf %251, %250 : vector<16x128xf32>
    %253 = arith.mulf %242, %252 : vector<16x128xf32>
    %c2_103 = arith.constant 2 : index
    %c0_104 = arith.constant 0 : index
    %c0_105 = arith.constant 0 : index
    %254 = vector.load %arg8[%c2_103, %c0_104, %c0_105] : memref<3x128x512xbf16, #tpu.memory_space<vmem>>, vector<1x128x512xbf16>
    %255 = vector.shape_cast %254 : vector<1x128x512xbf16> to vector<128x512xbf16>
    %256 = arith.truncf %253 : vector<16x128xf32> to vector<16x128xbf16>
    %cst_106 = arith.constant dense<0.000000e+00> : vector<16x512xf32>
    %257 = tpu.matmul %256, %255, %cst_106 {dimension_numbers = #tpu.dot_dimension_numbers<[1], [0], [0], [1], [0, 0, 1, 1], [], []>} : vector<16x128xbf16>, vector<128x512xbf16>, vector<16x512xf32> -> vector<16x512xf32>
    %258 = vector.broadcast %217 : vector<1x512xf32> to vector<16x512xf32>
    %259 = arith.addf %257, %258 : vector<16x512xf32>
    %260 = arith.extf %34 : vector<16x512xbf16> to vector<16x512xf32>
    %261 = arith.addf %259, %260 : vector<16x512xf32>
    %cst_107 = arith.constant dense<0.000000e+00> : vector<16xf32>
    %262 = vector.multi_reduction <add>, %261, %cst_107 [1] : vector<16x512xf32> to vector<16xf32>
    %263 = vector.shape_cast %262 : vector<16xf32> to vector<16x1xf32>
    %cst_108 = arith.constant 5.120000e+02 : f32
    %264 = vector.broadcast %cst_108 : f32 to vector<16x1xf32>
    %265 = arith.divf %263, %264 : vector<16x1xf32>
    %266 = vector.broadcast %265 : vector<16x1xf32> to vector<16x512xf32>
    %267 = arith.subf %261, %266 : vector<16x512xf32>
    %268 = arith.mulf %267, %267 : vector<16x512xf32>
    %cst_109 = arith.constant dense<0.000000e+00> : vector<16xf32>
    %269 = vector.multi_reduction <add>, %268, %cst_109 [1] : vector<16x512xf32> to vector<16xf32>
    %270 = vector.shape_cast %269 : vector<16xf32> to vector<16x1xf32>
    %cst_110 = arith.constant 5.120000e+02 : f32
    %271 = vector.broadcast %cst_110 : f32 to vector<16x1xf32>
    %272 = arith.divf %270, %271 : vector<16x1xf32>
    %cst_111 = arith.constant 9.99999974E-6 : f32
    %273 = vector.broadcast %cst_111 : f32 to vector<16x1xf32>
    %274 = arith.addf %272, %273 : vector<16x1xf32>
    %275 = math.rsqrt %274 : vector<16x1xf32>
    %276 = vector.broadcast %275 : vector<16x1xf32> to vector<16x512xf32>
    %277 = arith.mulf %267, %276 : vector<16x512xf32>
    %278 = vector.broadcast %218 : vector<1x512xf32> to vector<16x512xf32>
    %279 = arith.mulf %277, %278 : vector<16x512xf32>
    %280 = vector.broadcast %219 : vector<1x512xf32> to vector<16x512xf32>
    %281 = arith.addf %279, %280 : vector<16x512xf32>
    %cst_112 = arith.constant 5.000000e-01 : f32
    %282 = vector.broadcast %cst_112 : f32 to vector<16x512xf32>
    %283 = arith.mulf %282, %281 : vector<16x512xf32>
    %cst_113 = arith.constant 4.471500e-02 : f32
    %284 = vector.broadcast %cst_113 : f32 to vector<16x512xf32>
    %285 = arith.mulf %284, %281 : vector<16x512xf32>
    %286 = arith.mulf %285, %281 : vector<16x512xf32>
    %287 = arith.mulf %286, %281 : vector<16x512xf32>
    %288 = arith.addf %281, %287 : vector<16x512xf32>
    %cst_114 = arith.constant 0.797884583 : f32
    %289 = vector.broadcast %cst_114 : f32 to vector<16x512xf32>
    %290 = arith.mulf %289, %288 : vector<16x512xf32>
    %291 = math.tanh %290 : vector<16x512xf32>
    %cst_115 = arith.constant 1.000000e+00 : f32
    %292 = vector.broadcast %cst_115 : f32 to vector<16x512xf32>
    %293 = arith.addf %292, %291 : vector<16x512xf32>
    %294 = arith.mulf %283, %293 : vector<16x512xf32>
    %c2_116 = arith.constant 2 : index
    %c0_117 = arith.constant 0 : index
    %c0_118 = arith.constant 0 : index
    %295 = vector.load %arg9[%c2_116, %c0_117, %c0_118] : memref<3x512x128xbf16, #tpu.memory_space<vmem>>, vector<1x512x128xbf16>
    %296 = vector.shape_cast %295 : vector<1x512x128xbf16> to vector<512x128xbf16>
    %297 = arith.truncf %294 : vector<16x512xf32> to vector<16x512xbf16>
    %cst_119 = arith.constant dense<0.000000e+00> : vector<16x128xf32>
    %298 = tpu.matmul %297, %296, %cst_119 {dimension_numbers = #tpu.dot_dimension_numbers<[1], [0], [0], [1], [0, 0, 1, 1], [], []>} : vector<16x512xbf16>, vector<512x128xbf16>, vector<16x128xf32> -> vector<16x128xf32>
    %299 = vector.broadcast %220 : vector<1x128xf32> to vector<16x128xf32>
    %300 = arith.addf %298, %299 : vector<16x128xf32>
    %301 = arith.addf %214, %300 : vector<16x128xf32>
    %c0_120 = arith.constant 0 : index
    %c0_121 = arith.constant 0 : index
    %302 = vector.load %arg2[%c0_120, %c0_121] : memref<16x128xf32, #tpu.memory_space<vmem>>, vector<16x128xf32>
    %303 = arith.addf %302, %301 : vector<16x128xf32>
    %c0_122 = arith.constant 0 : index
    %c0_123 = arith.constant 0 : index
    %304 = vector.load %arg11[%c0_122, %c0_123] : memref<16x128xf32, #tpu.memory_space<vmem>>, vector<16x128xf32>
    tpu.vector_store %arg11[%c0_122, %c0_123], %303 {strides = array<i32>} : memref<16x128xf32, #tpu.memory_space<vmem>>, vector<16x128xf32>,
    return
  }
  func.func @transform_0(%arg0: i32) -> (i32, i32) {
    %c0_i32 = arith.constant 0 : i32
    %c0_i32_0 = arith.constant 0 : i32
    return %arg0, %c0_i32 : i32, i32
  }
  func.func @transform_1(%arg0: i32) -> (i32, i32) {
    %c0_i32 = arith.constant 0 : i32
    %c0_i32_0 = arith.constant 0 : i32
    return %arg0, %c0_i32 : i32, i32
  }
  func.func @transform_2(%arg0: i32) -> (i32, i32) {
    %c0_i32 = arith.constant 0 : i32
    %c0_i32_0 = arith.constant 0 : i32
    %c0_i32_1 = arith.constant 0 : i32
    return %c0_i32, %c0_i32_0 : i32, i32
  }
  func.func @transform_3(%arg0: i32) -> (i32, i32) {
    %c0_i32 = arith.constant 0 : i32
    %c0_i32_0 = arith.constant 0 : i32
    %c0_i32_1 = arith.constant 0 : i32
    return %c0_i32, %c0_i32_0 : i32, i32
  }
  func.func @transform_4(%arg0: i32) -> (i32, i32) {
    %c0_i32 = arith.constant 0 : i32
    %c0_i32_0 = arith.constant 0 : i32
    %c0_i32_1 = arith.constant 0 : i32
    return %c0_i32, %c0_i32_0 : i32, i32
  }
  func.func @transform_5(%arg0: i32) -> (i32, i32) {
    %c0_i32 = arith.constant 0 : i32
    %c0_i32_0 = arith.constant 0 : i32
    %c0_i32_1 = arith.constant 0 : i32
    return %c0_i32, %c0_i32_0 : i32, i32
  }
  func.func @transform_6(%arg0: i32) -> (i32, i32) {
    %c0_i32 = arith.constant 0 : i32
    %c0_i32_0 = arith.constant 0 : i32
    %c0_i32_1 = arith.constant 0 : i32
    return %c0_i32, %c0_i32_0 : i32, i32
  }
  func.func @transform_7(%arg0: i32) -> (i32, i32, i32) {
    %c0_i32 = arith.constant 0 : i32
    %c0_i32_0 = arith.constant 0 : i32
    %c0_i32_1 = arith.constant 0 : i32
    %c0_i32_2 = arith.constant 0 : i32
    return %c0_i32, %c0_i32_0, %c0_i32_1 : i32, i32, i32
  }
  func.func @transform_8(%arg0: i32) -> (i32, i32, i32) {
    %c0_i32 = arith.constant 0 : i32
    %c0_i32_0 = arith.constant 0 : i32
    %c0_i32_1 = arith.constant 0 : i32
    %c0_i32_2 = arith.constant 0 : i32
    return %c0_i32, %c0_i32_0, %c0_i32_1 : i32, i32, i32
  }
  func.func @transform_9(%arg0: i32) -> (i32, i32) {
    %c0_i32 = arith.constant 0 : i32
    %c0_i32_0 = arith.constant 0 : i32
    %c0_i32_1 = arith.constant 0 : i32
    return %c0_i32, %c0_i32_0 : i32, i32
  }
  func.func @transform_10(%arg0: i32) -> (i32, i32) {
    %c0_i32 = arith.constant 0 : i32
    %c0_i32_0 = arith.constant 0 : i32
    return %arg0, %c0_i32 : i32, i32
  }
}

</mosaic_0001>

<bundles_post_ra>
// kernel: scorenet_forward.1
= control target key start
LH: loop header
LB: loop body
LE: loop exit
PB: predicated region body
PF: predicated region fallthrough
CT: control target
= control target key end

     0   :  { %15 = vsyncpa [#allocation3], 0  ;;  %s7347_s0 = inlined_call_operand.vmem [shape: bf16[16,256], index: 0, kind: input, shape index: {}]   ;;  %s7348_s1 = inlined_call_operand.vmem [shape: f32[16,128], index: 1, kind: input, shape index: {}]   ;;  %s7349_s2 = inlined_call_operand.hbm [shape: bf16[256,512], index: 2, kind: input, shape index: {}]   ;;  %s7350_s3 = inlined_call_operand.hbm [shape: bf16[512,512], index: 3, kind: input, shape index: {}]   ;;  %s7351_s4 = inlined_call_operand.hbm [shape: bf16[512,128], index: 4, kind: input, shape index: {}]   ;;  %s7352_s5 = inlined_call_operand.vmem [shape: bf16[128,128], index: 5, kind: input, shape index: {}]   ;;  %s7353_s6 = inlined_call_operand.hbm [shape: bf16[128,512], index: 6, kind: input, shape index: {}]   ;;  %s7354_s7 = inlined_call_operand.hbm [shape: bf16[3,128,512], index: 7, kind: input, shape index: {}]   ;;  %s7355_s8 = inlined_call_operand.hbm [shape: bf16[3,512,128], index: 8, kind: input, shape index: {}]   ;;  %s7356_s9 = inlined_call_operand.hbm [shape: f32[32,512], index: 9, kind: input, shape index: {}]   ;;  %s7357_s10 = inlined_call_operand.hbm [shape: f32[16,128], index: 10, kind: output, shape index: {}]  }
   0x1   :  { %16 = vsyncpa [#allocation6], 0 }
   0x2   :  { %17 = vsyncpa [#allocation9], 0 }
   0x3   :  { %18 = vsyncpa [#allocation12], 0 }
   0x4   :  { %19 = vsyncpa [#allocation4], 0  ;;  %s6786_s13 = smov [#allocation5]   ;;  %s6787_s15 = smov [#allocation8]  }
   0x5   :  { %s41_s14 = sshll.u32 %s6786_s13, 4  ;;  %s67_s16 = sshll.u32 %s6787_s15, 4  ;;  %s42_s14 = int_to_ptr.vmem [resolvable:$true] %s41_s14  ;;  %s68_s16 = int_to_ptr.vmem [resolvable:$true] %s67_s16 }
   0x6   :  { %s6624_s17 = scalar_lea.vmem %s42_s14, 16384  ;;  %p6629_p1 = scmp.lt.s32.totalorder %s42_s14, %s42_s14 }
   0x7   :  { %p6625_p0 = scmp.ne.s32.totalorder %s42_s14, %s6624_s17  ;;  %p6630_p2 = scmp.lt.s32.totalorder %s6624_s17, %s6624_s17 }
   0x9   :  { %p6631_p3 = por %p6630_p2, %p6629_p1 }
   0xb   :  { %p6632_p4 = pnand %p6631_p3, %p6625_p0 }
   0xd   :  { %6635 = shalt.err (!%p6632_p4)
}
   0xe   :  { %s6788_s18 = smov 256   ;;  %s6789_s19 = smov 16  }
   0xf   :  { %47 = dma.hbm_to_vmem [thread:$0]  %s7350_s3, 16384, %s42_s14, [#allocation6], %s6788_s18, %s6788_s18, %s6789_s19  }
  0x10   :  { %s6644_s22 = scalar_lea.vmem %s68_s16, 4096  ;;  %p6649_p6 = scmp.lt.s32.totalorder %s68_s16, %s68_s16 }
  0x11   :  { %p6645_p5 = scmp.ne.s32.totalorder %s68_s16, %s6644_s22  ;;  %p6650_p7 = scmp.lt.s32.totalorder %s6644_s22, %s6644_s22 }
  0x13   :  { %p6651_p8 = por %p6650_p7, %p6649_p6 }
  0x15   :  { %p6652_p9 = pnand %p6651_p8, %p6645_p5 }
  0x17   :  { %6655 = shalt.err (!%p6652_p9)
}
  0x18   :  { %73 = dma.hbm_to_vmem [thread:$0]  %s7353_s6, 4096, %s68_s16, [#allocation9], %s6788_s18, %s6788_s18, %s6789_s19  }
  0x19   :  { %s6790_s25 = smov [#allocation11]   ;;  %s6791_s27 = smov [#allocation2]  }
  0x1a   :  { %s91_s26 = sshll.u32 %s6790_s25, 4  ;;  %s29_s28 = sshll.u32 %s6791_s27, 4  ;;  %s92_s26 = int_to_ptr.vmem [resolvable:$true] %s91_s26  ;;  %s30_s28 = int_to_ptr.vmem [resolvable:$true] %s29_s28 }
  0x1b   :  { %s6664_s3 = scalar_lea.vmem %s92_s26, 12288  ;;  %p6669_p11 = scmp.lt.s32.totalorder %s92_s26, %s92_s26 }
  0x1c   :  { %p6665_p10 = scmp.ne.s32.totalorder %s92_s26, %s6664_s3  ;;  %p6670_p12 = scmp.lt.s32.totalorder %s6664_s3, %s6664_s3 }
  0x1e   :  { %p6671_p13 = por %p6670_p12, %p6669_p11 }
  0x20   :  { %p6672_p0 = pnand %p6671_p13, %p6665_p10 }
  0x22   :  { %6675 = shalt.err (!%p6672_p0)
}
  0x23   :  { %s6792_s29 = smov 64   ;;  %s6793_s30 = smov 4  }
  0x24   :  { %97 = dma.hbm_to_vmem [thread:$0]  %s7355_s8, 12288, %s92_s26, [#allocation12], %s6792_s29, %s6792_s29, %s6793_s30  }
  0x25   :  { %s6684_s6 = scalar_lea.vmem %s30_s28, 8192  ;;  %p6689_p2 = scmp.lt.s32.totalorder %s30_s28, %s30_s28 }
  0x26   :  { %p6685_p1 = scmp.ne.s32.totalorder %s30_s28, %s6684_s6  ;;  %p6690_p3 = scmp.lt.s32.totalorder %s6684_s6, %s6684_s6 }
  0x28   :  { %p6691_p4 = por %p6690_p3, %p6689_p2 }
  0x2a   :  { %p6692_p5 = pnand %p6691_p4, %p6685_p1 }
  0x2c   :  { %6695 = shalt.err (!%p6692_p5)
}
  0x2d   :  { %35 = dma.hbm_to_vmem [thread:$0]  %s7349_s2, 8192, %s30_s28, [#allocation3], %s6788_s18, %s6788_s18, %s6789_s19  }
  0x2e   :  { %s6794_s15 = smov [#allocation7]   ;;  %s6795_s17 = smov [#allocation10]  }
  0x2f   :  { %s53_s16 = sshll.u32 %s6794_s15, 4  ;;  %s79_s20 = sshll.u32 %s6795_s17, 4  ;;  %s54_s16 = int_to_ptr.vmem [resolvable:$true] %s53_s16  ;;  %s80_s20 = int_to_ptr.vmem [resolvable:$true] %s79_s20 }
  0x30   :  { %s6704_s8 = scalar_lea.vmem %s54_s16, 4096  ;;  %p6709_p7 = scmp.lt.s32.totalorder %s54_s16, %s54_s16 }
  0x31   :  { %p6705_p6 = scmp.ne.s32.totalorder %s54_s16, %s6704_s8  ;;  %p6710_p8 = scmp.lt.s32.totalorder %s6704_s8, %s6704_s8 }
  0x33   :  { %p6711_p9 = por %p6710_p8, %p6709_p7 }
  0x35   :  { %p6712_p10 = pnand %p6711_p9, %p6705_p6 }
  0x37   :  { %6715 = shalt.err (!%p6712_p10)
}
  0x38   :  { %59 = dma.hbm_to_vmem [thread:$0]  %s7351_s4, 4096, %s54_s16, [#allocation6], %s6792_s29, %s6792_s29, %s6793_s30  }
  0x39   :  { %s6724_s23 = scalar_lea.vmem %s80_s20, 12288  ;;  %p6729_p12 = scmp.lt.s32.totalorder %s80_s20, %s80_s20 }
  0x3a   :  { %p6725_p11 = scmp.ne.s32.totalorder %s80_s20, %s6724_s23  ;;  %p6730_p13 = scmp.lt.s32.totalorder %s6724_s23, %s6724_s23 }
  0x3c   :  { %p6731_p0 = por %p6730_p13, %p6729_p12 }
  0x3e   :  { %p6732_p1 = pnand %p6731_p0, %p6725_p11 }
  0x40   :  { %6735 = shalt.err (!%p6732_p1)
}
  0x41   :  { %85 = dma.hbm_to_vmem [thread:$0]  %s7354_s7, 12288, %s80_s20, [#allocation9], %s6788_s18, %s6788_s18, %s6789_s19  }
  0x42   :  { %s6796_s25 = smov [#allocation13]  }
  0x43   :  { %s103_s26 = sshll.u32 %s6796_s25, 4  ;;  %s104_s26 = int_to_ptr.vmem [resolvable:$true] %s103_s26 }
  0x44   :  { %s6744_s27 = scalar_lea.vmem %s104_s26, 2048  ;;  %p6749_p3 = scmp.lt.s32.totalorder %s104_s26, %s104_s26 }
  0x45   :  { %p6745_p2 = scmp.ne.s32.totalorder %s104_s26, %s6744_s27  ;;  %p6750_p4 = scmp.lt.s32.totalorder %s6744_s27, %s6744_s27 }
  0x47   :  { %p6751_p5 = por %p6750_p4, %p6749_p3 }
  0x49   :  { %p6752_p6 = pnand %p6751_p5, %p6745_p2 }
  0x4b   :  { %6755 = shalt.err (!%p6752_p6)
}
  0x4c   :  { %s6797_s4 = smov 512   ;;  %s6798_s28 = smov 32  }
  0x4d   :  { %109 = dma.hbm_to_vmem [thread:$0]  %s7356_s9, 2048, %s104_s26, [#allocation12], %s6797_s4, %s6797_s4, %s6798_s28  }
  0x4e   :  { %6776 = dma.done.wait [#allocation3], 8192  }
  0x4f   :  { %6777 = vsyncadd [#allocation3], 4294959104 }
  0x50   :  { %6778 = dma.done.wait [#allocation6], 20480  }
  0x51   :  { %6779 = vsyncadd [#allocation6], 4294946816 }
  0x52   :  { %6780 = dma.done.wait [#allocation9], 16384  }
  0x53   :  { %6781 = vsyncadd [#allocation9], 4294950912 }
  0x54   :  { %6782 = dma.done.wait [#allocation12], 14336  }
  0x55   :  { %6783 = vsyncadd [#allocation12], 4294952960  ;;  %v5847_v0 = vld [vmem:[#allocation2 + $0xe4] ss:$16 sps:$4 sm:$0xff]   ;;  %v5849_v1 = vld [vmem:[#allocation2 + $0xec] ss:$16 sps:$4 sm:$0xff]  }
  0x56   :  { %554 = vmatprep.subr.bf16.mxu0 %v5847_v0  ;;  %v5851_v2 = vld [vmem:[#allocation2 + $0xe0] ss:$16 sps:$4 sm:$0xff]   ;;  %v5852_v3 = vld [vmem:[#allocation2 + $0xe8] ss:$16 sps:$4 sm:$0xff]   ;;  %597 = vmatprep.subr.bf16.mxu1 %v5849_v1  ;;  %v5853_v4 = vld [vmem:[#allocation2 + $0xc4] ss:$16 sps:$4 sm:$0xff]  }
  0x57   :  { %555 = vmatpush1.bf16.msra.mxu0 %v5851_v2  ;;  %598 = vmatpush1.bf16.msra.mxu1 %v5852_v3  ;;  %v5855_v5 = vld [vmem:[#allocation2 + $0xcc] ss:$16 sps:$4 sm:$0xff]   ;;  %v5857_v6 = vld [vmem:[#allocation2 + $0xc0] ss:$16 sps:$4 sm:$0xff]   ;;  %v5858_v7 = vld [vmem:[#allocation2 + $0xc8] ss:$16 sps:$4 sm:$0xff]  }
  0x58   :  { %556 = vmatprep.subr.bf16.mxu0 %v5853_v4  ;;  %599 = vmatprep.subr.bf16.mxu1 %v5855_v5  ;;  %v5859_v8 = vld [vmem:[#allocation2 + $0xa4] ss:$16 sps:$4 sm:$0xff]   ;;  %v5861_v9 = vld [vmem:[#allocation2 + $0xac] ss:$16 sps:$4 sm:$0xff]   ;;  %v5863_v10 = vld [vmem:[#allocation2 + $0xa0] ss:$16 sps:$4 sm:$0xff]  }
  0x59   :  { %v5864_v11 = vld [vmem:[#allocation2 + $0xa8] ss:$16 sps:$4 sm:$0xff]   ;;  %v5865_v12 = vld [vmem:[#allocation2 + $0x84] ss:$16 sps:$4 sm:$0xff]   ;;  %v5867_v13 = vld [vmem:[#allocation2 + $0x8c] ss:$16 sps:$4 sm:$0xff]  }
  0x5a   :  { %v5869_v14 = vld [vmem:[#allocation2 + $0x80] ss:$16 sps:$4 sm:$0xff]   ;;  %v5870_v15 = vld [vmem:[#allocation2 + $0x88] ss:$16 sps:$4 sm:$0xff]   ;;  %v5871_v16 = vld [vmem:[#allocation2 + $0x64] ss:$16 sps:$4 sm:$0xff]  }
  0x5b   :  { %557 = vmatpush1.bf16.msra.mxu0 %v5857_v6  ;;  %600 = vmatpush1.bf16.msra.mxu1 %v5858_v7  ;;  %v5873_v17 = vld [vmem:[#allocation2 + $0x6c] ss:$16 sps:$4 sm:$0xff]   ;;  %v5875_v18 = vld [vmem:[#allocation2 + $0x60] ss:$16 sps:$4 sm:$0xff]   ;;  %v5876_v19 = vld [vmem:[#allocation2 + $0x68] ss:$16 sps:$4 sm:$0xff]  }
  0x5c   :  { %558 = vmatprep.subr.bf16.mxu0 %v5859_v8  ;;  %601 = vmatprep.subr.bf16.mxu1 %v5861_v9  ;;  %v5877_v20 = vld [vmem:[#allocation2 + $0x44] ss:$16 sps:$4 sm:$0xff]   ;;  %v5879_v21 = vld [vmem:[#allocation2 + $0x4c] ss:$16 sps:$4 sm:$0xff]   ;;  %v5881_v22 = vld [vmem:[#allocation2 + $0x40] ss:$16 sps:$4 sm:$0xff]  }
  0x5d   :  { %v5882_v23 = vld [vmem:[#allocation2 + $0x48] ss:$16 sps:$4 sm:$0xff]   ;;  %v5883_v24 = vld [vmem:[#allocation2 + $0x24] ss:$16 sps:$4 sm:$0xff]   ;;  %v5885_v25 = vld [vmem:[#allocation2 + $0x2c] ss:$16 sps:$4 sm:$0xff]  }
  0x5e   :  { %v5887_v26 = vld [vmem:[#allocation2 + $0x20] ss:$16 sps:$4 sm:$0xff]   ;;  %v5888_v27 = vld [vmem:[#allocation2 + $0x28] ss:$16 sps:$4 sm:$0xff]   ;;  %v5889_v28 = vld [vmem:[#allocation2 + $0x4] ss:$16 sps:$4 sm:$0xff]  }
  0x5f   :  { %559 = vmatpush1.bf16.msra.mxu0 %v5863_v10  ;;  %602 = vmatpush1.bf16.msra.mxu1 %v5864_v11  ;;  %v5891_v29 = vld [vmem:[#allocation2 + $0xc] ss:$16 sps:$4 sm:$0xff]   ;;  %v5893_v30 = vld [vmem:[#allocation2] ss:$16 sps:$4 sm:$0xff]   ;;  %v5894_v31 = vld [vmem:[#allocation2 + $0x8] ss:$16 sps:$4 sm:$0xff]  }
  0x60   :  { %560 = vmatprep.subr.bf16.mxu0 %v5865_v12  ;;  %603 = vmatprep.subr.bf16.mxu1 %v5867_v13  ;;  %v5895_v32 = vld [vmem:[#allocation2 + $0x1e4] ss:$16 sps:$4 sm:$0xff]   ;;  %v5897_v33 = vld [vmem:[#allocation2 + $0x1ec] ss:$16 sps:$4 sm:$0xff]   ;;  %v5899_v34 = vld [vmem:[#allocation2 + $0x1e0] ss:$16 sps:$4 sm:$0xff]  }
  0x61   :  { %v5900_v35 = vld [vmem:[#allocation2 + $0x1e8] ss:$16 sps:$4 sm:$0xff]   ;;  %v5901_v36 = vld [vmem:[#allocation2 + $0x1c4] ss:$16 sps:$4 sm:$0xff]   ;;  %v5903_v37 = vld [vmem:[#allocation2 + $0x1cc] ss:$16 sps:$4 sm:$0xff]  }
  0x62   :  { %v5905_v38 = vld [vmem:[#allocation2 + $0x1c0] ss:$16 sps:$4 sm:$0xff]   ;;  %v5906_v39 = vld [vmem:[#allocation2 + $0x1c8] ss:$16 sps:$4 sm:$0xff]   ;;  %v5907_v40 = vld [vmem:[#allocation2 + $0x1a4] ss:$16 sps:$4 sm:$0xff]  }
  0x63   :  { %561 = vmatpush1.bf16.msra.mxu0 %v5869_v14  ;;  %604 = vmatpush1.bf16.msra.mxu1 %v5870_v15  ;;  %v5909_v41 = vld [vmem:[#allocation2 + $0x1ac] ss:$16 sps:$4 sm:$0xff]   ;;  %v5911_v42 = vld [vmem:[#allocation2 + $0x1a0] ss:$16 sps:$4 sm:$0xff]   ;;  %v5912_v43 = vld [vmem:[#allocation2 + $0x1a8] ss:$16 sps:$4 sm:$0xff]  }
  0x64   :  { %562 = vmatprep.subr.bf16.mxu0 %v5871_v16  ;;  %605 = vmatprep.subr.bf16.mxu1 %v5873_v17  ;;  %v5913_v44 = vld [vmem:[#allocation2 + $0x184] ss:$16 sps:$4 sm:$0xff]   ;;  %v5915_v45 = vld [vmem:[#allocation2 + $0x18c] ss:$16 sps:$4 sm:$0xff]   ;;  %v5917_v46 = vld [vmem:[#allocation2 + $0x180] ss:$16 sps:$4 sm:$0xff]  }
  0x65   :  { %v5918_v47 = vld [vmem:[#allocation2 + $0x188] ss:$16 sps:$4 sm:$0xff]   ;;  %v5945_v48 = vld [vmem:[%s7347_s0 + $0x4] ss:$8 sps:$4 sm:$0xff]   ;;  %v5923_v51 = vld [vmem:[#allocation2 + $0x160] ss:$16 sps:$4 sm:$0xff]  }
  0x66   :  { %v5919_v49 = vld [vmem:[#allocation2 + $0x164] ss:$16 sps:$4 sm:$0xff]   ;;  %v5921_v50 = vld [vmem:[#allocation2 + $0x16c] ss:$16 sps:$4 sm:$0xff]   ;;  %586 = vmatprep.mubr.bf16.mxu0 %v5945_v48  ;;  %629 = vmatprep.mubr.bf16.mxu1 %v5945_v48  ;;  %v5924_v52 = vld [vmem:[#allocation2 + $0x168] ss:$16 sps:$4 sm:$0xff]  }
  0x67   :  { %563 = vmatpush1.bf16.msra.mxu0 %v5875_v18  ;;  %606 = vmatpush1.bf16.msra.mxu1 %v5876_v19  ;;  %v5925_v53 = vld [vmem:[#allocation2 + $0x144] ss:$16 sps:$4 sm:$0xff]   ;;  %v5927_v54 = vld [vmem:[#allocation2 + $0x14c] ss:$16 sps:$4 sm:$0xff]   ;;  %v5929_v55 = vld [vmem:[#allocation2 + $0x140] ss:$16 sps:$4 sm:$0xff]  }
  0x68   :  { %564 = vmatprep.subr.bf16.mxu0 %v5877_v20  ;;  %607 = vmatprep.subr.bf16.mxu1 %v5879_v21  ;;  %v5930_v56 = vld [vmem:[#allocation2 + $0x148] ss:$16 sps:$4 sm:$0xff]   ;;  %v5931_v57 = vld [vmem:[#allocation2 + $0x124] ss:$16 sps:$4 sm:$0xff]   ;;  %v5933_v58 = vld [vmem:[#allocation2 + $0x12c] ss:$16 sps:$4 sm:$0xff]  }
  0x69   :  { %v5935_v59 = vld [vmem:[#allocation2 + $0x120] ss:$16 sps:$4 sm:$0xff]   ;;  %v5936_v60 = vld [vmem:[#allocation2 + $0x128] ss:$16 sps:$4 sm:$0xff]   ;;  %v5937_v61 = vld [vmem:[#allocation2 + $0x104] ss:$16 sps:$4 sm:$0xff]  }
  0x6a   :  { %v5939_v62 = vld [vmem:[#allocation2 + $0x10c] ss:$16 sps:$4 sm:$0xff]   ;;  %v5941_v63 = vld [vmem:[#allocation2 + $0x100] ss:$16 sps:$4 sm:$0xff]   ;;  %v5942_v0 = vld [vmem:[#allocation2 + $0x108] ss:$16 sps:$4 sm:$0xff]  }
  0x6b   :  { %565 = vmatpush1.bf16.msra.mxu0 %v5881_v22  ;;  %608 = vmatpush1.bf16.msra.mxu1 %v5882_v23  ;;  %v5948_v1 = vld [vmem:[#allocation5 + $0xe4] ss:$16 sps:$4 sm:$0xff]   ;;  %v5943_v3 = vld [vmem:[%s7347_s0] ss:$8 sps:$4 sm:$0xff]   ;;  %vm6801_vm0 = vmmov 0   ;;  %s6802_s28 = smov [#allocation14]  }
  0x6c   :  { %566 = vmatprep.subr.bf16.mxu0 %v5883_v24  ;;  %609 = vmatprep.subr.bf16.mxu1 %v5885_v25  ;;  %v5951_v2 = vld [vmem:[#allocation5 + $0x2e4] ss:$16 sps:$4 sm:$0xff]   ;;  %v5946_v4 = vld [vmem:[#allocation5 + $0xe0] ss:$16 sps:$4 sm:$0xff]   ;;  %s5134_s3 = sshll.u32 %s6802_s28, 4  ;;  %s5135_s3 = int_to_ptr.vmem [resolvable:$true] %s5134_s3 }
  0x6d   :  { %v5949_v5 = vld [vmem:[#allocation5 + $0x2e0] ss:$16 sps:$4 sm:$0xff]   ;;  %v5954_v6 = vld [vmem:[#allocation5 + $0xc4] ss:$16 sps:$4 sm:$0xff]   ;;  %s6756_s9 = scalar_lea.vmem %s5135_s3, 256  ;;  %p6761_p8 = scmp.lt.s32.totalorder %s5135_s3, %s5135_s3 }
  0x6e   :  { %v5957_v7 = vld [vmem:[#allocation5 + $0x2c4] ss:$16 sps:$4 sm:$0xff]   ;;  %v5952_v8 = vld [vmem:[#allocation5 + $0xc0] ss:$16 sps:$4 sm:$0xff]   ;;  %p6757_p7 = scmp.ne.s32.totalorder %s5135_s3, %s6756_s9  ;;  %p6762_p9 = scmp.lt.s32.totalorder %s6756_s9, %s6756_s9 }
  0x6f   :  { %567 = vmatpush1.bf16.msra.mxu0 %v5887_v26  ;;  %610 = vmatpush1.bf16.msra.mxu1 %v5888_v27  ;;  %v5955_v9 = vld [vmem:[#allocation5 + $0x2c0] ss:$16 sps:$4 sm:$0xff]   ;;  %v5960_v10 = vld [vmem:[#allocation5 + $0xa4] ss:$16 sps:$4 sm:$0xff]  }
  0x70   :  { %568 = vmatprep.subr.bf16.mxu0 %v5889_v28  ;;  %611 = vmatprep.subr.bf16.mxu1 %v5891_v29  ;;  %v5963_v11 = vld [vmem:[#allocation5 + $0x2a4] ss:$16 sps:$4 sm:$0xff]   ;;  %v5958_v12 = vld [vmem:[#allocation5 + $0xa0] ss:$16 sps:$4 sm:$0xff]   ;;  %p6763_p10 = por %p6762_p9, %p6761_p8 }
  0x71   :  { %v5961_v13 = vld [vmem:[#allocation5 + $0x2a0] ss:$16 sps:$4 sm:$0xff]   ;;  %v5966_v14 = vld [vmem:[#allocation5 + $0x84] ss:$16 sps:$4 sm:$0xff]  }
  0x72   :  { %v5969_v15 = vld [vmem:[#allocation5 + $0x284] ss:$16 sps:$4 sm:$0xff]   ;;  %v5964_v16 = vld [vmem:[#allocation5 + $0x80] ss:$16 sps:$4 sm:$0xff]   ;;  %p6764_p11 = pnand %p6763_p10, %p6757_p7 }
  0x73   :  { %569 = vmatpush1.bf16.msra.mxu0 %v5893_v30  ;;  %612 = vmatpush1.bf16.msra.mxu1 %v5894_v31  ;;  %v5967_v17 = vld [vmem:[#allocation5 + $0x280] ss:$16 sps:$4 sm:$0xff]   ;;  %v5972_v18 = vld [vmem:[#allocation5 + $0x64] ss:$16 sps:$4 sm:$0xff]  }
  0x74   :  { %570 = vmatprep.subr.bf16.mxu0 %v5895_v32  ;;  %613 = vmatprep.subr.bf16.mxu1 %v5897_v33  ;;  %v5975_v19 = vld [vmem:[#allocation5 + $0x264] ss:$16 sps:$4 sm:$0xff]   ;;  %v5970_v20 = vld [vmem:[#allocation5 + $0x60] ss:$16 sps:$4 sm:$0xff]  }
  0x75   :  { %v5973_v21 = vld [vmem:[#allocation5 + $0x260] ss:$16 sps:$4 sm:$0xff]   ;;  %v5978_v22 = vld [vmem:[#allocation5 + $0x44] ss:$16 sps:$4 sm:$0xff]  }
  0x76   :  { %v5981_v23 = vld [vmem:[#allocation5 + $0x244] ss:$16 sps:$4 sm:$0xff]   ;;  %v5976_v24 = vld [vmem:[#allocation5 + $0x40] ss:$16 sps:$4 sm:$0xff]  }
  0x77   :  { %571 = vmatpush2.bf16.msra.mxu0 %v5899_v34  ;;  %614 = vmatpush2.bf16.msra.mxu1 %v5900_v35  ;;  %v5979_v25 = vld [vmem:[#allocation5 + $0x240] ss:$16 sps:$4 sm:$0xff]   ;;  %v5984_v26 = vld [vmem:[#allocation5 + $0x24] ss:$16 sps:$4 sm:$0xff]  }
  0x78   :  { %572 = vmatprep.subr.bf16.mxu0 %v5901_v36  ;;  %615 = vmatprep.subr.bf16.mxu1 %v5903_v37  ;;  %v5987_v27 = vld [vmem:[#allocation5 + $0x224] ss:$16 sps:$4 sm:$0xff]   ;;  %v5982_v28 = vld [vmem:[#allocation5 + $0x20] ss:$16 sps:$4 sm:$0xff]  }
  0x79   :  { %v5985_v29 = vld [vmem:[#allocation5 + $0x220] ss:$16 sps:$4 sm:$0xff]   ;;  %v5990_v30 = vld [vmem:[#allocation5 + $0x4] ss:$16 sps:$4 sm:$0xff]  }
  0x7a   :  { %v5993_v31 = vld [vmem:[#allocation5 + $0x204] ss:$16 sps:$4 sm:$0xff]   ;;  %v5988_v32 = vld [vmem:[#allocation5] ss:$16 sps:$4 sm:$0xff]  }
  0x7b   :  { %573 = vmatpush2.bf16.msra.mxu0 %v5905_v38  ;;  %616 = vmatpush2.bf16.msra.mxu1 %v5906_v39  ;;  %v5991_v33 = vld [vmem:[#allocation5 + $0x200] ss:$16 sps:$4 sm:$0xff]   ;;  %v5996_v34 = vld [vmem:[#allocation5 + $0x1e4] ss:$16 sps:$4 sm:$0xff]  }
  0x7c   :  { %574 = vmatprep.subr.bf16.mxu0 %v5907_v40  ;;  %617 = vmatprep.subr.bf16.mxu1 %v5909_v41  ;;  %v5999_v35 = vld [vmem:[#allocation5 + $0x3e4] ss:$16 sps:$4 sm:$0xff]   ;;  %v5994_v36 = vld [vmem:[#allocation5 + $0x1e0] ss:$16 sps:$4 sm:$0xff]  }
  0x7d   :  { %v5997_v37 = vld [vmem:[#allocation5 + $0x3e0] ss:$16 sps:$4 sm:$0xff]   ;;  %v6002_v38 = vld [vmem:[#allocation5 + $0x1c4] ss:$16 sps:$4 sm:$0xff]  }
  0x7e   :  { %v6005_v39 = vld [vmem:[#allocation5 + $0x3c4] ss:$16 sps:$4 sm:$0xff]   ;;  %v6000_v40 = vld [vmem:[#allocation5 + $0x1c0] ss:$16 sps:$4 sm:$0xff]  }
  0x7f   :  { %575 = vmatpush2.bf16.msra.mxu0 %v5911_v42  ;;  %618 = vmatpush2.bf16.msra.mxu1 %v5912_v43  ;;  %v6003_v41 = vld [vmem:[#allocation5 + $0x3c0] ss:$16 sps:$4 sm:$0xff]   ;;  %v6008_v42 = vld [vmem:[#allocation5 + $0x1a4] ss:$16 sps:$4 sm:$0xff]  }
  0x80   :  { %576 = vmatprep.subr.bf16.mxu0 %v5913_v44  ;;  %619 = vmatprep.subr.bf16.mxu1 %v5915_v45  ;;  %v6011_v43 = vld [vmem:[#allocation5 + $0x3a4] ss:$16 sps:$4 sm:$0xff]   ;;  %v6006_v44 = vld [vmem:[#allocation5 + $0x1a0] ss:$16 sps:$4 sm:$0xff]  }
  0x81   :  { %v6009_v45 = vld [vmem:[#allocation5 + $0x3a0] ss:$16 sps:$4 sm:$0xff]  }
  0x82   :  { %v6012_v48 = vld [vmem:[#allocation5 + $0x180] ss:$16 sps:$4 sm:$0xff]  }
  0x83   :  { %577 = vmatpush2.bf16.msra.mxu0 %v5917_v46  ;;  %620 = vmatpush2.bf16.msra.mxu1 %v5918_v47  ;;  %v6014_v46 = vld [vmem:[#allocation5 + $0x184] ss:$16 sps:$4 sm:$0xff]  }
  0x84   :  { %578 = vmatprep.subr.bf16.mxu0 %v5919_v49  ;;  %621 = vmatprep.subr.bf16.mxu1 %v5921_v50  ;;  %v6017_v47 = vld [vmem:[#allocation5 + $0x384] ss:$16 sps:$4 sm:$0xff]   ;;  %v6015_v49 = vld [vmem:[#allocation5 + $0x380] ss:$16 sps:$4 sm:$0xff]  }
  0x85   :  { %v6020_v50 = vld [vmem:[#allocation5 + $0x164] ss:$16 sps:$4 sm:$0xff]  }
  0x87   :  { %579 = vmatpush2.bf16.msra.mxu0 %v5923_v51  ;;  %622 = vmatpush2.bf16.msra.mxu1 %v5924_v52  ;;  %v6023_v51 = vld [vmem:[#allocation5 + $0x364] ss:$16 sps:$4 sm:$0xff]   ;;  %v6018_v52 = vld [vmem:[#allocation5 + $0x160] ss:$16 sps:$4 sm:$0xff]  }
  0x88   :  { %580 = vmatprep.subr.bf16.mxu0 %v5925_v53  ;;  %623 = vmatprep.subr.bf16.mxu1 %v5927_v54  ;;  %v6021_v53 = vld [vmem:[#allocation5 + $0x360] ss:$16 sps:$4 sm:$0xff]   ;;  %v6026_v54 = vld [vmem:[#allocation5 + $0x144] ss:$16 sps:$4 sm:$0xff]  }
  0x8b   :  { %581 = vmatpush2.bf16.msra.mxu0 %v5929_v55  ;;  %624 = vmatpush2.bf16.msra.mxu1 %v5930_v56  ;;  %v6029_v55 = vld [vmem:[#allocation5 + $0x344] ss:$16 sps:$4 sm:$0xff]   ;;  %v6024_v56 = vld [vmem:[#allocation5 + $0x140] ss:$16 sps:$4 sm:$0xff]  }
  0x8c   :  { %582 = vmatprep.subr.bf16.mxu0 %v5931_v57  ;;  %625 = vmatprep.subr.bf16.mxu1 %v5933_v58  ;;  %v6027_v57 = vld [vmem:[#allocation5 + $0x340] ss:$16 sps:$4 sm:$0xff]   ;;  %v6032_v58 = vld [vmem:[#allocation5 + $0x124] ss:$16 sps:$4 sm:$0xff]  }
  0x8f   :  { %583 = vmatpush2.bf16.msra.mxu0 %v5935_v59  ;;  %626 = vmatpush2.bf16.msra.mxu1 %v5936_v60  ;;  %v6035_v59 = vld [vmem:[#allocation5 + $0x324] ss:$16 sps:$4 sm:$0xff]   ;;  %v6030_v60 = vld [vmem:[#allocation5 + $0x120] ss:$16 sps:$4 sm:$0xff]  }
  0x90   :  { %584 = vmatprep.subr.bf16.mxu0 %v5937_v61  ;;  %627 = vmatprep.subr.bf16.mxu1 %v5939_v62  ;;  %v6033_v61 = vld [vmem:[#allocation5 + $0x320] ss:$16 sps:$4 sm:$0xff]   ;;  %v6038_v62 = vld [vmem:[#allocation5 + $0x104] ss:$16 sps:$4 sm:$0xff]  }
  0x93   :  { %585 = vmatpush2.bf16.msra.mxu0 %v5941_v63  ;;  %628 = vmatpush2.bf16.msra.mxu1 %v5942_v0  ;;  %v6041_v63 = vld [vmem:[#allocation5 + $0x304] ss:$16 sps:$4 sm:$0xff]   ;;  %v6036_v0 = vld [vmem:[#allocation5 + $0x100] ss:$16 sps:$4 sm:$0xff]  }
  0x94   :  { %1489 = vmatprep.subr.bf16.mxu0 %v5948_v1  ;;  %1532 = vmatprep.subr.bf16.mxu1 %v5951_v2  ;;  %v6039_v1 = vld [vmem:[#allocation5 + $0x300] ss:$16 sps:$4 sm:$0xff]   ;;  %v6044_v2 = vld [vmem:[#allocation5 + $0xec] ss:$16 sps:$4 sm:$0xff]  }
  0x96   :  { %587 = vmatmul.mubr.bf16.vlgmr.msra.gmra.mxu0 %v5943_v3  ;;  %630 = vmatmul.mubr.bf16.vlgmr.msra.gmra.mxu1 %v5943_v3  ;;  %v6047_v3 = vld [vmem:[#allocation5 + $0x2ec] ss:$16 sps:$4 sm:$0xff]  }
  0x97   :  { %1490 = vmatpush1.bf16.msra.mxu0 %v5946_v4  ;;  %1533 = vmatpush1.bf16.msra.mxu1 %v5949_v5  ;;  %v204_v4 = vlaneseq }
  0x98   :  { %1491 = vmatprep.subr.bf16.mxu0 %v5954_v6  ;;  %1534 = vmatprep.subr.bf16.mxu1 %v5957_v7 }
  0x99   :  { %v205_v5 = vshrl.u32 %v204_v4, 7 }
  0x9b   :  { %1492 = vmatpush1.bf16.msra.mxu0 %v5952_v8  ;;  %1535 = vmatpush1.bf16.msra.mxu1 %v5955_v9  ;;  %v6899_v6 = vsub.s32 0, %v205_v5  ;;  %v6901_v7 = vsub.s32 2, %v205_v5  ;;  %v6903_v8 = vsub.s32 1, %v205_v5  ;;  %v6905_v9 = vsub.s32 3, %v205_v5 }
  0x9c   :  { %1493 = vmatprep.subr.bf16.mxu0 %v5960_v10  ;;  %1536 = vmatprep.subr.bf16.mxu1 %v5963_v11  ;;  %v132_v10 = vld [vmem:[#allocation13] ss:$8 sm:$0xf] }
  0x9d   :  { %v207_v11 = vrot.slane %v132_v10, %v6899_v6 }
  0x9f   :  { %1494 = vmatpush1.bf16.msra.mxu0 %v5958_v12  ;;  %1537 = vmatpush1.bf16.msra.mxu1 %v5961_v13  ;;  %v215_v12 = vrot.slane %v132_v10, %v6901_v7  ;;  %v211_v13 = vrot.slane %v132_v10, %v6903_v8 }
  0xa0   :  { %1495 = vmatprep.subr.bf16.mxu0 %v5966_v14  ;;  %1538 = vmatprep.subr.bf16.mxu1 %v5969_v15  ;;  %v219_v14 = vrot.slane %v132_v10, %v6905_v9 }
  0xa3   :  { %1496 = vmatpush1.bf16.msra.mxu0 %v5964_v16  ;;  %1539 = vmatpush1.bf16.msra.mxu1 %v5967_v17 }
  0xa4   :  { %1497 = vmatprep.subr.bf16.mxu0 %v5972_v18  ;;  %1540 = vmatprep.subr.bf16.mxu1 %v5975_v19 }
  0xa7   :  { %1498 = vmatpush1.bf16.msra.mxu0 %v5970_v20  ;;  %1541 = vmatpush1.bf16.msra.mxu1 %v5973_v21 }
  0xa8   :  { %1499 = vmatprep.subr.bf16.mxu0 %v5978_v22  ;;  %1542 = vmatprep.subr.bf16.mxu1 %v5981_v23 }
  0xab   :  { %1500 = vmatpush1.bf16.msra.mxu0 %v5976_v24  ;;  %1543 = vmatpush1.bf16.msra.mxu1 %v5979_v25 }
  0xac   :  { %1501 = vmatprep.subr.bf16.mxu0 %v5984_v26  ;;  %1544 = vmatprep.subr.bf16.mxu1 %v5987_v27 }
  0xaf   :  { %1502 = vmatpush1.bf16.msra.mxu0 %v5982_v28  ;;  %1545 = vmatpush1.bf16.msra.mxu1 %v5985_v29 }
  0xb0   :  { %1503 = vmatprep.subr.bf16.mxu0 %v5990_v30  ;;  %1546 = vmatprep.subr.bf16.mxu1 %v5993_v31 }
  0xb3   :  { %1504 = vmatpush1.bf16.msra.mxu0 %v5988_v32  ;;  %1547 = vmatpush1.bf16.msra.mxu1 %v5991_v33 }
  0xb4   :  { %1505 = vmatprep.subr.bf16.mxu0 %v5996_v34  ;;  %1548 = vmatprep.subr.bf16.mxu1 %v5999_v35 }
  0xb7   :  { %1506 = vmatpush2.bf16.msra.mxu0 %v5994_v36  ;;  %1549 = vmatpush2.bf16.msra.mxu1 %v5997_v37 }
  0xb8   :  { %1507 = vmatprep.subr.bf16.mxu0 %v6002_v38  ;;  %1550 = vmatprep.subr.bf16.mxu1 %v6005_v39 }
  0xbb   :  { %1508 = vmatpush2.bf16.msra.mxu0 %v6000_v40  ;;  %1551 = vmatpush2.bf16.msra.mxu1 %v6003_v41 }
  0xbc   :  { %1509 = vmatprep.subr.bf16.mxu0 %v6008_v42  ;;  %1552 = vmatprep.subr.bf16.mxu1 %v6011_v43 }
  0xbf   :  { %1510 = vmatpush2.bf16.msra.mxu0 %v6006_v44  ;;  %1553 = vmatpush2.bf16.msra.mxu1 %v6009_v45 }
  0xc0   :  { %1511 = vmatprep.subr.bf16.mxu0 %v6014_v46  ;;  %1554 = vmatprep.subr.bf16.mxu1 %v6017_v47 }
  0xc3   :  { %1512 = vmatpush2.bf16.msra.mxu0 %v6012_v48  ;;  %1555 = vmatpush2.bf16.msra.mxu1 %v6015_v49 }
  0xc4   :  { %1513 = vmatprep.subr.bf16.mxu0 %v6020_v50  ;;  %1556 = vmatprep.subr.bf16.mxu1 %v6023_v51 }
  0xc7   :  { %1514 = vmatpush2.bf16.msra.mxu0 %v6018_v52  ;;  %1557 = vmatpush2.bf16.msra.mxu1 %v6021_v53 }
  0xc8   :  { %1515 = vmatprep.subr.bf16.mxu0 %v6026_v54  ;;  %1558 = vmatprep.subr.bf16.mxu1 %v6029_v55 }
  0xcb   :  { %1516 = vmatpush2.bf16.msra.mxu0 %v6024_v56  ;;  %1559 = vmatpush2.bf16.msra.mxu1 %v6027_v57 }
  0xcc   :  { %1517 = vmatprep.subr.bf16.mxu0 %v6032_v58  ;;  %1560 = vmatprep.subr.bf16.mxu1 %v6035_v59 }
  0xcf   :  { %1518 = vmatpush2.bf16.msra.mxu0 %v6030_v60  ;;  %1561 = vmatpush2.bf16.msra.mxu1 %v6033_v61 }
  0xd0   :  { %1519 = vmatprep.subr.bf16.mxu0 %v6038_v62  ;;  %1562 = vmatprep.subr.bf16.mxu1 %v6041_v63 }
  0xd3   :  { %1520 = vmatpush2.bf16.msra.mxu0 %v6036_v0  ;;  %1563 = vmatpush2.bf16.msra.mxu1 %v6039_v1 }
  0xd4   :  { %1575 = vmatprep.subr.bf16.mxu0 %v6044_v2  ;;  %1618 = vmatprep.subr.bf16.mxu1 %v6047_v3 }
 0x156   :  { %v588_v15 = vpop.f32.mrf.mxu0  ;;  %v631_v16 = vpop.f32.mrf.mxu1 }
 0x157   :  { %v6911_v17 = vadd.f32 %v588_v15, %v207_v11  ;;  %v6913_v18 = vadd.f32 %v631_v16, %v215_v12  ;;  %v6045_v15 = vld [vmem:[#allocation5 + $0x2e8] ss:$16 sps:$4 sm:$0xff]  }
 0x158   :  { %v590_v19 = vpop.f32.mrf.mxu0  ;;  %v633_v20 = vpop.f32.mrf.mxu1 }
 0x159   :  { %v5215_v21 = vmul.f32 -1.442695, %v6911_v17  ;;  %v5217_v22 = vmul.f32 -1.442695, %v6913_v18  ;;  %v591_v23 = vadd.f32 %v590_v19, %v211_v13  ;;  %v634_v24 = vadd.f32 %v633_v20, %v219_v14  ;;  %v6050_v19 = vld [vmem:[#allocation5 + $0xcc] ss:$16 sps:$4 sm:$0xff]  }
 0x15a   :  { %v592_v25 = vpop.f32.mrf.mxu0  ;;  %v635_v26 = vpop.f32.mrf.mxu1  ;;  %v6053_v20 = vld [vmem:[#allocation5 + $0x2cc] ss:$16 sps:$4 sm:$0xff]  }
 0x15b   :  { %6466 = vpow2.f32 %v5215_v21  ;;  %v5216_v27 = vmul.f32 -1.442695, %v591_v23  ;;  %v5218_v28 = vmul.f32 -1.442695, %v634_v24  ;;  %v593_v29 = vadd.f32 %v592_v25, %v207_v11  ;;  %v6056_v21 = vld [vmem:[#allocation5 + $0xac] ss:$16 sps:$4 sm:$0xff]  }
 0x15c   :  { %6468 = vpow2.f32 %v5217_v22  ;;  %v636_v30 = vadd.f32 %v635_v26, %v215_v12  ;;  %v594_v31 = vpop.f32.mrf.mxu0  ;;  %v637_v32 = vpop.f32.mrf.mxu1  ;;  %v6042_v12 = vld [vmem:[#allocation5 + $0xe8] ss:$16 sps:$4 sm:$0xff]   ;;  %v6059_v22 = vld [vmem:[#allocation5 + $0x2ac] ss:$16 sps:$4 sm:$0xff]  }
 0x15d   :  { %6470 = vpow2.f32 %v5216_v27  ;;  %v5219_v33 = vmul.f32 -1.442695, %v593_v29  ;;  %v595_v34 = vadd.f32 %v594_v31, %v211_v13  ;;  %v638_v35 = vadd.f32 %v637_v32, %v219_v14  ;;  %v6062_v25 = vld [vmem:[#allocation5 + $0x8c] ss:$16 sps:$4 sm:$0xff]   ;;  %v6060_v27 = vld [vmem:[#allocation5 + $0x88] ss:$16 sps:$4 sm:$0xff]  }
 0x15e   :  { %6472 = vpow2.f32 %v5218_v28  ;;  %v5221_v36 = vmul.f32 -1.442695, %v636_v30  ;;  %v6065_v26 = vld [vmem:[#allocation5 + $0x28c] ss:$16 sps:$4 sm:$0xff]   ;;  %v6063_v28 = vld [vmem:[#allocation5 + $0x288] ss:$16 sps:$4 sm:$0xff]  }
 0x15f   :  { %6474 = vpow2.f32 %v5219_v33  ;;  %v5220_v37 = vmul.f32 -1.442695, %v595_v34  ;;  %v5222_v38 = vmul.f32 -1.442695, %v638_v35  ;;  %v6066_v31 = vld [vmem:[#allocation5 + $0x68] ss:$16 sps:$4 sm:$0xff]  }
 0x160   :  { %6476 = vpow2.f32 %v5221_v36  ;;  %v6069_v32 = vld [vmem:[#allocation5 + $0x268] ss:$16 sps:$4 sm:$0xff]   ;;  %v6074_v33 = vld [vmem:[#allocation5 + $0x4c] ss:$16 sps:$4 sm:$0xff]  }
 0x161   :  { %6478 = vpow2.f32 %v5220_v37  ;;  %v6075_v36 = vld [vmem:[#allocation5 + $0x248] ss:$16 sps:$4 sm:$0xff]   ;;  %v6080_v37 = vld [vmem:[#allocation5 + $0x2c] ss:$16 sps:$4 sm:$0xff]  }
 0x162   :  { %6480 = vpow2.f32 %v5222_v38  ;;  %v6083_v38 = vld [vmem:[#allocation5 + $0x22c] ss:$16 sps:$4 sm:$0xff]  }
 0x168   :  { %v6467_v39 = vpop.eup %6466 }
 0x169   :  { %v6469_v40 = vpop.eup %6468  ;;  %v664_v41 = vadd.f32 1.0, %v6467_v39  ;;  %v6078_v39 = vld [vmem:[#allocation5 + $0x28] ss:$16 sps:$4 sm:$0xff]  }
 0x16a   :  { %v6471_v42 = vpop.eup %6470  ;;  %v666_v43 = vadd.f32 1.0, %v6469_v40  ;;  %v6081_v40 = vld [vmem:[#allocation5 + $0x228] ss:$16 sps:$4 sm:$0xff]  }
 0x16b   :  { %v6473_v44 = vpop.eup %6472  ;;  %6482 = vrcp.f32 %v664_v41  ;;  %v665_v45 = vadd.f32 1.0, %v6471_v42  ;;  %v6086_v41 = vld [vmem:[#allocation5 + $0xc] ss:$16 sps:$4 sm:$0xff]  }
 0x16c   :  { %v6475_v46 = vpop.eup %6474  ;;  %6484 = vrcp.f32 %v666_v43  ;;  %v667_v47 = vadd.f32 1.0, %v6473_v44  ;;  %v6089_v42 = vld [vmem:[#allocation5 + $0x20c] ss:$16 sps:$4 sm:$0xff]   ;;  %v6084_v43 = vld [vmem:[#allocation5 + $0x8] ss:$16 sps:$4 sm:$0xff]  }
 0x16d   :  { %v6477_v48 = vpop.eup %6476  ;;  %6486 = vrcp.f32 %v665_v45  ;;  %v668_v49 = vadd.f32 1.0, %v6475_v46  ;;  %v6087_v44 = vld [vmem:[#allocation5 + $0x208] ss:$16 sps:$4 sm:$0xff]   ;;  %v6092_v45 = vld [vmem:[#allocation5 + $0x1ec] ss:$16 sps:$4 sm:$0xff]  }
 0x16e   :  { %v6479_v50 = vpop.eup %6478  ;;  %6488 = vrcp.f32 %v667_v47  ;;  %v670_v51 = vadd.f32 1.0, %v6477_v48  ;;  %v6095_v46 = vld [vmem:[#allocation5 + $0x3ec] ss:$16 sps:$4 sm:$0xff]   ;;  %v6090_v47 = vld [vmem:[#allocation5 + $0x1e8] ss:$16 sps:$4 sm:$0xff]  }
 0x16f   :  { %v6481_v52 = vpop.eup %6480  ;;  %6490 = vrcp.f32 %v668_v49  ;;  %v669_v53 = vadd.f32 1.0, %v6479_v50  ;;  %v6093_v48 = vld [vmem:[#allocation5 + $0x3e8] ss:$16 sps:$4 sm:$0xff]   ;;  %v6098_v49 = vld [vmem:[#allocation5 + $0x1cc] ss:$16 sps:$4 sm:$0xff]  }
 0x170   :  { %6492 = vrcp.f32 %v670_v51  ;;  %v671_v54 = vadd.f32 1.0, %v6481_v52  ;;  %v6101_v50 = vld [vmem:[#allocation5 + $0x3cc] ss:$16 sps:$4 sm:$0xff]   ;;  %v6096_v51 = vld [vmem:[#allocation5 + $0x1c8] ss:$16 sps:$4 sm:$0xff]  }
 0x171   :  { %6494 = vrcp.f32 %v669_v53  ;;  %v6099_v52 = vld [vmem:[#allocation5 + $0x3c8] ss:$16 sps:$4 sm:$0xff]   ;;  %v6104_v53 = vld [vmem:[#allocation5 + $0x1ac] ss:$16 sps:$4 sm:$0xff]  }
 0x172   :  { %6496 = vrcp.f32 %v671_v54  ;;  %v6107_v54 = vld [vmem:[#allocation5 + $0x3ac] ss:$16 sps:$4 sm:$0xff]  }
 0x178   :  { %v6483_v55 = vpop.eup %6482 }
 0x179   :  { %v6485_v56 = vpop.eup %6484  ;;  %v688_v3 = vmul.f32 %v6483_v55, %v6911_v17  ;;  %v6048_v17 = vld [vmem:[#allocation5 + $0xc8] ss:$16 sps:$4 sm:$0xff]  }
 0x17a   :  { %v6487_v57 = vpop.eup %6486  ;;  %v690_v10 = vmul.f32 %v6485_v56, %v6913_v18  ;;  %v6051_v18 = vld [vmem:[#allocation5 + $0x2c8] ss:$16 sps:$4 sm:$0xff]  }
 0x17b   :  { %v6489_v58 = vpop.eup %6488  ;;  %v689_v0 = vmul.f32 %v6487_v57, %v591_v23  ;;  %v6054_v23 = vld [vmem:[#allocation5 + $0xa8] ss:$16 sps:$4 sm:$0xff]   ;;  %v6110_v57 = vld [vmem:[#allocation5 + $0x18c] ss:$16 sps:$4 sm:$0xff]  }
 0x17c   :  { %v6491_v59 = vpop.eup %6490  ;;  %v691_v4 = vmul.f32 %v6489_v58, %v634_v24  ;;  %v6057_v24 = vld [vmem:[#allocation5 + $0x2a8] ss:$16 sps:$4 sm:$0xff]   ;;  %v6113_v58 = vld [vmem:[#allocation5 + $0x38c] ss:$16 sps:$4 sm:$0xff]  }
 0x17d   :  { %v6493_v60 = vpop.eup %6492  ;;  %v692_v62 = vmul.f32 %v6491_v59, %v593_v29  ;;  %v6068_v29 = vld [vmem:[#allocation5 + $0x6c] ss:$16 sps:$4 sm:$0xff]   ;;  %v6102_v55 = vld [vmem:[#allocation5 + $0x1a8] ss:$16 sps:$4 sm:$0xff]  }
 0x17e   :  { %v6495_v61 = vpop.eup %6494  ;;  %v694_v1 = vmul.f32 %v6493_v60, %v636_v30  ;;  %v6071_v30 = vld [vmem:[#allocation5 + $0x26c] ss:$16 sps:$4 sm:$0xff]   ;;  %v6105_v56 = vld [vmem:[#allocation5 + $0x3a8] ss:$16 sps:$4 sm:$0xff]  }
 0x17f   :  { %v6497_v63 = vpop.eup %6496  ;;  %v693_v2 = vmul.f32 %v6495_v61, %v595_v34  ;;  %v6919_v13 = vpack.c.bf16 %v692_v62, %v688_v3  ;;  %v6077_v34 = vld [vmem:[#allocation5 + $0x24c] ss:$16 sps:$4 sm:$0xff]   ;;  %v6108_v59 = vld [vmem:[#allocation5 + $0x188] ss:$16 sps:$4 sm:$0xff]  }
 0x180   :  { %v695_v5 = vmul.f32 %v6497_v63, %v638_v35  ;;  %v6921_v16 = vpack.c.bf16 %v694_v1, %v690_v10  ;;  %v6072_v35 = vld [vmem:[#allocation5 + $0x48] ss:$16 sps:$4 sm:$0xff]   ;;  %v6116_v61 = vld [vmem:[#allocation5 + $0x16c] ss:$16 sps:$4 sm:$0xff]  }
 0x181   :  { %v825_v11 = vpack.c.bf16 %v693_v2, %v689_v0  ;;  %v6111_v60 = vld [vmem:[#allocation5 + $0x388] ss:$16 sps:$4 sm:$0xff]   ;;  %v6119_v62 = vld [vmem:[#allocation5 + $0x36c] ss:$16 sps:$4 sm:$0xff]  }
 0x182   :  { %v827_v14 = vpack.c.bf16 %v695_v5, %v691_v4  ;;  %v6114_v63 = vld [vmem:[#allocation5 + $0x168] ss:$16 sps:$4 sm:$0xff]   ;;  %v6122_v1 = vld [vmem:[#allocation5 + $0x14c] ss:$16 sps:$4 sm:$0xff]  }
 0x183   :  { %1521 = vmatprep.mubr.bf16.mxu0 %v825_v11  ;;  %v6117_v0 = vld [vmem:[#allocation5 + $0x368] ss:$16 sps:$4 sm:$0xff]   ;;  %v6125_v2 = vld [vmem:[#allocation5 + $0x34c] ss:$16 sps:$4 sm:$0xff]  }
 0x184   :  { %1564 = vmatprep.mubr.bf16.mxu1 %v827_v14  ;;  %1522 = vmatmul.mubr.bf16.vlgmr.msra.gmra.mxu0 %v6919_v13  ;;  %v6120_v3 = vld [vmem:[#allocation5 + $0x148] ss:$16 sps:$4 sm:$0xff]   ;;  %v6128_v5 = vld [vmem:[#allocation5 + $0x12c] ss:$16 sps:$4 sm:$0xff]  }
 0x185   :  { %1565 = vmatmul.mubr.bf16.vlgmr.msra.gmra.mxu1 %v6921_v16  ;;  %1576 = vmatpush1.bf16.msra.mxu0 %v6042_v12  ;;  %v6123_v4 = vld [vmem:[#allocation5 + $0x348] ss:$16 sps:$4 sm:$0xff]   ;;  %v6131_v10 = vld [vmem:[#allocation5 + $0x32c] ss:$16 sps:$4 sm:$0xff]  }
 0x186   :  { %1619 = vmatpush1.bf16.msra.mxu1 %v6045_v15  ;;  %1607 = vmatprep.mubr.bf16.mxu0 %v825_v11  ;;  %v6126_v11 = vld [vmem:[#allocation5 + $0x128] ss:$16 sps:$4 sm:$0xff]   ;;  %v6137_v15 = vld [vmem:[#allocation5 + $0x30c] ss:$16 sps:$4 sm:$0xff]  }
 0x187   :  { %1650 = vmatprep.mubr.bf16.mxu1 %v827_v14  ;;  %1577 = vmatprep.subr.bf16.mxu0 %v6050_v19  ;;  %v6129_v12 = vld [vmem:[#allocation5 + $0x328] ss:$16 sps:$4 sm:$0xff]   ;;  %v6134_v14 = vld [vmem:[#allocation5 + $0x10c] ss:$16 sps:$4 sm:$0xff]  }
 0x188   :  { %1620 = vmatprep.subr.bf16.mxu1 %v6053_v20  ;;  %v6132_v19 = vld [vmem:[#allocation5 + $0x108] ss:$16 sps:$4 sm:$0xff]  }
 0x189   :  { %1578 = vmatpush1.bf16.msra.mxu0 %v6048_v17  ;;  %v6135_v20 = vld [vmem:[#allocation5 + $0x308] ss:$16 sps:$4 sm:$0xff]  }
 0x18a   :  { %1621 = vmatpush1.bf16.msra.mxu1 %v6051_v18  ;;  %1579 = vmatprep.subr.bf16.mxu0 %v6056_v21  ;;  %v6138_v17 = vld [vmem:[#allocation7 + $0x78] sm:$0xff]   ;;  %v6140_v21 = vld [vmem:[#allocation7 + $0x70] sm:$0xff]  }
 0x18b   :  { %1622 = vmatprep.subr.bf16.mxu1 %v6059_v22  ;;  %v6139_v18 = vld [vmem:[#allocation7 + $0x38] sm:$0xff]   ;;  %v6141_v22 = vld [vmem:[#allocation7 + $0x30] sm:$0xff]  }
 0x18d   :  { %1580 = vmatpush1.bf16.msra.mxu0 %v6054_v23  ;;  %v6142_v23 = vld [vmem:[#allocation7 + $0x68] sm:$0xff]  }
 0x18e   :  { %1623 = vmatpush1.bf16.msra.mxu1 %v6057_v24  ;;  %1581 = vmatprep.subr.bf16.mxu0 %v6062_v25  ;;  %v6143_v24 = vld [vmem:[#allocation7 + $0x28] sm:$0xff]   ;;  %v6144_v25 = vld [vmem:[#allocation7 + $0x60] sm:$0xff]  }
 0x18f   :  { %1624 = vmatprep.subr.bf16.mxu1 %v6065_v26  ;;  %v6145_v26 = vld [vmem:[#allocation7 + $0x20] sm:$0xff]  }
 0x191   :  { %1582 = vmatpush1.bf16.msra.mxu0 %v6060_v27  ;;  %v6146_v27 = vld [vmem:[#allocation7 + $0x58] sm:$0xff]  }
 0x192   :  { %1625 = vmatpush1.bf16.msra.mxu1 %v6063_v28  ;;  %1583 = vmatprep.subr.bf16.mxu0 %v6068_v29  ;;  %v6149_v28 = vld [vmem:[#allocation7 + $0x10] sm:$0xff]   ;;  %v6150_v29 = vld [vmem:[#allocation7 + $0x48] sm:$0xff]  }
 0x193   :  { %1626 = vmatprep.subr.bf16.mxu1 %v6071_v30  ;;  %v6151_v30 = vld [vmem:[#allocation7 + $0x8] sm:$0xff]  }
 0x195   :  { %1584 = vmatpush1.bf16.msra.mxu0 %v6066_v31  ;;  %v6152_v31 = vld [vmem:[#allocation7 + $0x40] sm:$0xff]  }
 0x196   :  { %1627 = vmatpush1.bf16.msra.mxu1 %v6069_v32  ;;  %1585 = vmatprep.subr.bf16.mxu0 %v6074_v33  ;;  %v6153_v32 = vld [vmem:[#allocation7] sm:$0xff]   ;;  %v6154_v33 = vld [vmem:[#allocation7 + $0xf8] sm:$0xff]  }
 0x197   :  { %1628 = vmatprep.subr.bf16.mxu1 %v6077_v34  ;;  %v6155_v34 = vld [vmem:[#allocation7 + $0xb8] sm:$0xff]  }
 0x199   :  { %1586 = vmatpush1.bf16.msra.mxu0 %v6072_v35  ;;  %v6156_v35 = vld [vmem:[#allocation7 + $0xf0] sm:$0xff]  }
 0x19a   :  { %1629 = vmatpush1.bf16.msra.mxu1 %v6075_v36  ;;  %1587 = vmatprep.subr.bf16.mxu0 %v6080_v37  ;;  %v6157_v36 = vld [vmem:[#allocation7 + $0xb0] sm:$0xff]   ;;  %v6158_v37 = vld [vmem:[#allocation7 + $0xe8] sm:$0xff]  }
 0x19b   :  { %1630 = vmatprep.subr.bf16.mxu1 %v6083_v38  ;;  %v6159_v38 = vld [vmem:[#allocation7 + $0xa8] sm:$0xff]  }
 0x19d   :  { %1588 = vmatpush1.bf16.msra.mxu0 %v6078_v39  ;;  %v6160_v39 = vld [vmem:[#allocation7 + $0xe0] sm:$0xff]  }
 0x19e   :  { %1631 = vmatpush1.bf16.msra.mxu1 %v6081_v40  ;;  %1589 = vmatprep.subr.bf16.mxu0 %v6086_v41  ;;  %v6161_v40 = vld [vmem:[#allocation7 + $0xa0] sm:$0xff]   ;;  %v6162_v41 = vld [vmem:[#allocation7 + $0xd8] sm:$0xff]  }
 0x19f   :  { %1632 = vmatprep.subr.bf16.mxu1 %v6089_v42  ;;  %v6163_v42 = vld [vmem:[#allocation7 + $0x98] sm:$0xff]  }
 0x1a1   :  { %1590 = vmatpush1.bf16.msra.mxu0 %v6084_v43  ;;  %v6164_v43 = vld [vmem:[#allocation7 + $0xd0] sm:$0xff]  }
 0x1a2   :  { %1633 = vmatpush1.bf16.msra.mxu1 %v6087_v44  ;;  %1591 = vmatprep.subr.bf16.mxu0 %v6092_v45  ;;  %v6165_v44 = vld [vmem:[#allocation7 + $0x90] sm:$0xff]   ;;  %v6166_v45 = vld [vmem:[#allocation7 + $0xc8] sm:$0xff]  }
 0x1a3   :  { %1634 = vmatprep.subr.bf16.mxu1 %v6095_v46  ;;  %v6167_v46 = vld [vmem:[#allocation7 + $0x88] sm:$0xff]  }
 0x1a5   :  { %1592 = vmatpush2.bf16.msra.mxu0 %v6090_v47  ;;  %v6168_v47 = vld [vmem:[#allocation7 + $0xc0] sm:$0xff]  }
 0x1a6   :  { %1635 = vmatpush2.bf16.msra.mxu1 %v6093_v48  ;;  %1593 = vmatprep.subr.bf16.mxu0 %v6098_v49  ;;  %v6169_v48 = vld [vmem:[#allocation7 + $0x80] sm:$0xff]  }
 0x1a7   :  { %1636 = vmatprep.subr.bf16.mxu1 %v6101_v50  ;;  %v134_v49 = vld [vmem:[#allocation13 + $0x1] ss:$8 sm:$0xf] }
 0x1a8   :  { %v832_v50 = vrot.slane %v134_v49, %v6899_v6 }
 0x1a9   :  { %1594 = vmatpush2.bf16.msra.mxu0 %v6096_v51  ;;  %v836_v51 = vrot.slane %v134_v49, %v6903_v8 }
 0x1aa   :  { %1637 = vmatpush2.bf16.msra.mxu1 %v6099_v52  ;;  %1595 = vmatprep.subr.bf16.mxu0 %v6104_v53 }
 0x1ab   :  { %1638 = vmatprep.subr.bf16.mxu1 %v6107_v54 }
 0x1ad   :  { %1596 = vmatpush2.bf16.msra.mxu0 %v6102_v55 }
 0x1ae   :  { %1639 = vmatpush2.bf16.msra.mxu1 %v6105_v56  ;;  %1597 = vmatprep.subr.bf16.mxu0 %v6110_v57 }
 0x1af   :  { %1640 = vmatprep.subr.bf16.mxu1 %v6113_v58 }
 0x1b1   :  { %1598 = vmatpush2.bf16.msra.mxu0 %v6108_v59 }
 0x1b2   :  { %1641 = vmatpush2.bf16.msra.mxu1 %v6111_v60  ;;  %1599 = vmatprep.subr.bf16.mxu0 %v6116_v61 }
 0x1b3   :  { %1642 = vmatprep.subr.bf16.mxu1 %v6119_v62 }
 0x1b5   :  { %1600 = vmatpush2.bf16.msra.mxu0 %v6114_v63 }
 0x1b6   :  { %1643 = vmatpush2.bf16.msra.mxu1 %v6117_v0  ;;  %1601 = vmatprep.subr.bf16.mxu0 %v6122_v1 }
 0x1b7   :  { %1644 = vmatprep.subr.bf16.mxu1 %v6125_v2 }
 0x1b9   :  { %1602 = vmatpush2.bf16.msra.mxu0 %v6120_v3 }
 0x1ba   :  { %1645 = vmatpush2.bf16.msra.mxu1 %v6123_v4  ;;  %1603 = vmatprep.subr.bf16.mxu0 %v6128_v5 }
 0x1bb   :  { %1646 = vmatprep.subr.bf16.mxu1 %v6131_v10 }
 0x1bd   :  { %1604 = vmatpush2.bf16.msra.mxu0 %v6126_v11 }
 0x1be   :  { %1647 = vmatpush2.bf16.msra.mxu1 %v6129_v12  ;;  %1605 = vmatprep.subr.bf16.mxu0 %v6134_v14 }
 0x1bf   :  { %1648 = vmatprep.subr.bf16.mxu1 %v6137_v15 }
 0x1c1   :  { %1606 = vmatpush2.bf16.msra.mxu0 %v6132_v19 }
 0x1c2   :  { %1649 = vmatpush2.bf16.msra.mxu1 %v6135_v20  ;;  %5623 = vmatprep.subr.bf16.mxu0 %v6138_v17 }
 0x1c3   :  { %5645 = vmatprep.subr.bf16.mxu1 %v6154_v33 }
 0x1c4   :  { %1608 = vmatmul.mubr.bf16.vlgmr.msra.gmra.mxu0 %v6919_v13  ;;  %v6147_v13 = vld [vmem:[#allocation7 + $0x18] sm:$0xff]  }
 0x1c5   :  { %1651 = vmatmul.mubr.bf16.vlgmr.msra.gmra.mxu1 %v6921_v16  ;;  %5624 = vmatpush3.bf16.msra.mxu0 %v6139_v18  ;;  %v6148_v16 = vld [vmem:[#allocation7 + $0x50] sm:$0xff]  }
 0x1c6   :  { %5625 = vmatprep.subr.bf16.mxu0 %v6140_v21  ;;  %5646 = vmatpush3.bf16.msra.mxu1 %v6155_v34 }
 0x1c7   :  { %5647 = vmatprep.subr.bf16.mxu1 %v6156_v35 }
 0x1c9   :  { %5626 = vmatpush3.bf16.msra.mxu0 %v6141_v22 }
 0x1ca   :  { %5627 = vmatprep.subr.bf16.mxu0 %v6142_v23  ;;  %5648 = vmatpush3.bf16.msra.mxu1 %v6157_v36 }
 0x1cb   :  { %5649 = vmatprep.subr.bf16.mxu1 %v6158_v37 }
 0x1cd   :  { %5628 = vmatpush3.bf16.msra.mxu0 %v6143_v24 }
 0x1ce   :  { %5629 = vmatprep.subr.bf16.mxu0 %v6144_v25  ;;  %5650 = vmatpush3.bf16.msra.mxu1 %v6159_v38 }
 0x1cf   :  { %5651 = vmatprep.subr.bf16.mxu1 %v6160_v39 }
 0x1d1   :  { %5630 = vmatpush3.bf16.msra.mxu0 %v6145_v26 }
 0x1d2   :  { %5631 = vmatprep.subr.bf16.mxu0 %v6146_v27  ;;  %5652 = vmatpush3.bf16.msra.mxu1 %v6161_v40 }
 0x1d3   :  { %5653 = vmatprep.subr.bf16.mxu1 %v6162_v41 }
 0x1d5   :  { %5632 = vmatpush3.bf16.msra.mxu0 %v6147_v13 }
 0x1d6   :  { %5633 = vmatprep.subr.bf16.mxu0 %v6148_v16  ;;  %5654 = vmatpush3.bf16.msra.mxu1 %v6163_v42 }
 0x1d7   :  { %5655 = vmatprep.subr.bf16.mxu1 %v6164_v43 }
 0x1d9   :  { %5634 = vmatpush3.bf16.msra.mxu0 %v6149_v28 }
 0x1da   :  { %5635 = vmatprep.subr.bf16.mxu0 %v6150_v29  ;;  %5656 = vmatpush3.bf16.msra.mxu1 %v6165_v44 }
 0x1db   :  { %5657 = vmatprep.subr.bf16.mxu1 %v6166_v45 }
 0x1dd   :  { %5636 = vmatpush3.bf16.msra.mxu0 %v6151_v30  ;;  %v840_v30 = vrot.slane %v134_v49, %v6901_v7 }
 0x1de   :  { %5637 = vmatprep.subr.bf16.mxu0 %v6152_v31  ;;  %5658 = vmatpush3.bf16.msra.mxu1 %v6167_v46  ;;  %v844_v31 = vrot.slane %v134_v49, %v6905_v9 }
 0x1df   :  { %5659 = vmatprep.subr.bf16.mxu1 %v6168_v47 }
 0x1e1   :  { %5638 = vmatpush3.bf16.msra.mxu0 %v6153_v32 }
 0x1e2   :  { %5660 = vmatpush3.bf16.msra.mxu1 %v6169_v48 }
 0x244   :  { %v1523_v52 = vpop.f32.mrf.mxu0 }
 0x245   :  { %v1524_v53 = vadd.f32 %v1523_v52, %v832_v50  ;;  %v1566_v54 = vpop.f32.mrf.mxu1 }
 0x246   :  { %v1525_v55 = vpop.f32.mrf.mxu0 }
 0x247   :  { %v1567_v56 = vadd.f32 %v1566_v54, %v1524_v53  ;;  %v1526_v57 = vadd.f32 %v1525_v55, %v836_v51  ;;  %v1568_v58 = vpop.f32.mrf.mxu1 }
 0x248   :  { %v1527_v59 = vpop.f32.mrf.mxu0 }
 0x249   :  { %v5351_v60 = vmul.f32 -1.442695, %v1567_v56  ;;  %v1569_v61 = vadd.f32 %v1568_v58, %v1526_v57  ;;  %v1528_v62 = vadd.f32 %v1527_v59, %v832_v50  ;;  %v1570_v63 = vpop.f32.mrf.mxu1 }
 0x24a   :  { %v1529_v0 = vpop.f32.mrf.mxu0 }
 0x24b   :  { %v5352_v1 = vmul.f32 -1.442695, %v1569_v61  ;;  %v1571_v2 = vadd.f32 %v1570_v63, %v1528_v62  ;;  %v1530_v3 = vadd.f32 %v1529_v0, %v836_v51  ;;  %6498 = vpow2.f32 %v5351_v60  ;;  %v1572_v4 = vpop.f32.mrf.mxu1 }
 0x24d   :  { %6500 = vpow2.f32 %v5352_v1  ;;  %v5355_v5 = vmul.f32 -1.442695, %v1571_v2  ;;  %v1573_v10 = vadd.f32 %v1572_v4, %v1530_v3 }
 0x24f   :  { %6502 = vpow2.f32 %v5355_v5  ;;  %v5356_v11 = vmul.f32 -1.442695, %v1573_v10 }
 0x251   :  { %6504 = vpow2.f32 %v5356_v11  ;;  %v6172_v11 = vld [vmem:[#allocation8 + $0xe4] ss:$16 sps:$4 sm:$0xff]  }
 0x252   :  { %2252 = vmatprep.subr.bf16.mxu0 %v6172_v11  ;;  %v2343_v11 = vld [vmem:[%s7348_s1 + $0x8] sm:$0xff] }
 0x258   :  { %v6499_v12 = vpop.eup %6498 }
 0x259   :  { %v1685_v20 = vadd.f32 1.0, %v6499_v12  ;;  %v6173_v12 = vld [vmem:[#allocation8 + $0xe8] ss:$16 sps:$4 sm:$0xff]  }
 0x25a   :  { %v6501_v14 = vpop.eup %6500 }
 0x25b   :  { %v1686_v15 = vadd.f32 1.0, %v6501_v14  ;;  %v6175_v14 = vld [vmem:[#allocation8 + $0xec] ss:$16 sps:$4 sm:$0xff]  }
 0x25c   :  { %v6503_v19 = vpop.eup %6502  ;;  %2295 = vmatprep.subr.bf16.mxu1 %v6175_v14 }
 0x25d   :  { %v1689_v17 = vadd.f32 1.0, %v6503_v19  ;;  %6506 = vrcp.f32 %v1686_v15  ;;  %v6178_v15 = vld [vmem:[#allocation8 + $0xc4] ss:$16 sps:$4 sm:$0xff]   ;;  %v6181_v19 = vld [vmem:[#allocation8 + $0xcc] ss:$16 sps:$4 sm:$0xff]  }
 0x25e   :  { %v6505_v18 = vpop.eup %6504 }
 0x25f   :  { %6508 = vrcp.f32 %v1689_v17  ;;  %v1690_v21 = vadd.f32 1.0, %v6505_v18  ;;  %v6179_v17 = vld [vmem:[#allocation8 + $0xc8] ss:$16 sps:$4 sm:$0xff]   ;;  %v6184_v18 = vld [vmem:[#allocation8 + $0xa4] ss:$16 sps:$4 sm:$0xff]  }
 0x260   :  { %6510 = vrcp.f32 %v1685_v20  ;;  %v6176_v20 = vld [vmem:[#allocation8 + $0xc0] ss:$16 sps:$4 sm:$0xff]  }
 0x261   :  { %6512 = vrcp.f32 %v1690_v21  ;;  %v6187_v21 = vld [vmem:[#allocation8 + $0xac] ss:$16 sps:$4 sm:$0xff]  }
 0x26a   :  { %v6507_v22 = vpop.eup %6506 }
 0x26b   :  { %v1710_v27 = vmul.f32 %v6507_v22, %v1569_v61  ;;  %v6182_v22 = vld [vmem:[#allocation8 + $0xa0] ss:$16 sps:$4 sm:$0xff]  }
 0x26c   :  { %v6509_v23 = vpop.eup %6508 }
 0x26d   :  { %v6511_v24 = vpop.eup %6510  ;;  %v1713_v26 = vmul.f32 %v6509_v23, %v1571_v2  ;;  %v6185_v23 = vld [vmem:[#allocation8 + $0xa8] ss:$16 sps:$4 sm:$0xff]  }
 0x26e   :  { %v6513_v25 = vpop.eup %6512  ;;  %v1709_v16 = vmul.f32 %v6511_v24, %v1567_v56  ;;  %v6190_v24 = vld [vmem:[#allocation8 + $0x84] ss:$16 sps:$4 sm:$0xff]  }
 0x26f   :  { %v1714_v13 = vmul.f32 %v6513_v25, %v1573_v10  ;;  %v6170_v10 = vld [vmem:[#allocation8 + $0xe0] ss:$16 sps:$4 sm:$0xff]   ;;  %v6193_v25 = vld [vmem:[#allocation8 + $0x8c] ss:$16 sps:$4 sm:$0xff]  }
 0x270   :  { %v1781_v29 = vpack.c.bf16 %v1713_v26, %v1709_v16  ;;  %v6188_v26 = vld [vmem:[#allocation8 + $0x80] ss:$16 sps:$4 sm:$0xff]   ;;  %v6199_v16 = vld [vmem:[#allocation8 + $0x6c] ss:$16 sps:$4 sm:$0xff]  }
 0x271   :  { %v1782_v28 = vpack.c.bf16 %v1714_v13, %v1710_v27  ;;  %v6191_v27 = vld [vmem:[#allocation8 + $0x88] ss:$16 sps:$4 sm:$0xff]   ;;  %v6196_v13 = vld [vmem:[#allocation8 + $0x64] ss:$16 sps:$4 sm:$0xff]  }
 0x273   :  { %2009 = vmatprep.mubr.bf16.mxu0 %v1782_v28  ;;  %v6194_v28 = vld [vmem:[#allocation8 + $0x60] ss:$16 sps:$4 sm:$0xff]  }
 0x274   :  { %2010 = vmatmul.mubr.bf16.vlgmr.msra.gmra.mxu0 %v1781_v29  ;;  %v6197_v29 = vld [vmem:[#allocation8 + $0x68] ss:$16 sps:$4 sm:$0xff]  }
 0x275   :  { %2253 = vmatpush1.bf16.msra.mxu0 %v6170_v10  ;;  %v2342_v10 = vld [vmem:[%s7348_s1] sm:$0xff] }
 0x276   :  { %2254 = vmatprep.subr.bf16.mxu0 %v6178_v15 }
 0x279   :  { %2255 = vmatpush1.bf16.msra.mxu0 %v6176_v20 }
 0x27a   :  { %2256 = vmatprep.subr.bf16.mxu0 %v6184_v18 }
 0x27d   :  { %2257 = vmatpush1.bf16.msra.mxu0 %v6182_v22 }
 0x27e   :  { %2258 = vmatprep.subr.bf16.mxu0 %v6190_v24 }
 0x281   :  { %2259 = vmatpush1.bf16.msra.mxu0 %v6188_v26 }
 0x282   :  { %2260 = vmatprep.subr.bf16.mxu0 %v6196_v13 }
 0x284   :  { %v1609_v32 = vpop.f32.mrf.mxu0 }
 0x285   :  { %v1610_v33 = vadd.f32 %v1609_v32, %v840_v30  ;;  %v1652_v34 = vpop.f32.mrf.mxu1  ;;  %2261 = vmatpush1.bf16.msra.mxu0 %v6194_v28  ;;  %v6203_v32 = vld [vmem:[#allocation8 + $0x48] ss:$16 sps:$4 sm:$0xff]  }
 0x286   :  { %v1611_v35 = vpop.f32.mrf.mxu0 }
 0x287   :  { %v1653_v36 = vadd.f32 %v1652_v34, %v1610_v33  ;;  %v1612_v37 = vadd.f32 %v1611_v35, %v844_v31  ;;  %v1654_v38 = vpop.f32.mrf.mxu1  ;;  %v6205_v33 = vld [vmem:[#allocation8 + $0x4c] ss:$16 sps:$4 sm:$0xff]   ;;  %v6208_v34 = vld [vmem:[#allocation8 + $0x24] ss:$16 sps:$4 sm:$0xff]   ;;  %v6206_v35 = vld [vmem:[#allocation8 + $0x20] ss:$16 sps:$4 sm:$0xff]  }
 0x288   :  { %v1613_v39 = vpop.f32.mrf.mxu0 }
 0x289   :  { %v5353_v40 = vmul.f32 -1.442695, %v1653_v36  ;;  %v1655_v41 = vadd.f32 %v1654_v38, %v1612_v37  ;;  %v1614_v42 = vadd.f32 %v1613_v39, %v840_v30  ;;  %v1656_v43 = vpop.f32.mrf.mxu1  ;;  %v6202_v30 = vld [vmem:[#allocation8 + $0x44] ss:$16 sps:$4 sm:$0xff]   ;;  %v6209_v37 = vld [vmem:[#allocation8 + $0x28] ss:$16 sps:$4 sm:$0xff]  }
 0x28a   :  { %v1615_v44 = vpop.f32.mrf.mxu0  ;;  %2262 = vmatprep.subr.bf16.mxu0 %v6202_v30  ;;  %v6214_v38 = vld [vmem:[#allocation8 + $0x4] ss:$16 sps:$4 sm:$0xff]   ;;  %v6212_v39 = vld [vmem:[#allocation8] ss:$16 sps:$4 sm:$0xff]  }
 0x28b   :  { %v5354_v45 = vmul.f32 -1.442695, %v1655_v41  ;;  %v1657_v46 = vadd.f32 %v1656_v43, %v1614_v42  ;;  %v1616_v47 = vadd.f32 %v1615_v44, %v844_v31  ;;  %6514 = vpow2.f32 %v5353_v40  ;;  %v1658_v48 = vpop.f32.mrf.mxu1  ;;  %v6200_v31 = vld [vmem:[#allocation8 + $0x40] ss:$16 sps:$4 sm:$0xff]   ;;  %v6217_v40 = vld [vmem:[#allocation8 + $0xc] ss:$16 sps:$4 sm:$0xff]  }
 0x28c   :  { %2263 = vmatpush1.bf16.msra.mxu0 %v6200_v31  ;;  %v6799_v42 = vmov 0   ;;  %v6800_v43 = vmov 0.0  }
 0x28d   :  { %6516 = vpow2.f32 %v5354_v45  ;;  %v5357_v49 = vmul.f32 -1.442695, %v1657_v46  ;;  %v1659_v50 = vadd.f32 %v1658_v48, %v1616_v47  ;;  %2264 = vmatprep.subr.bf16.mxu0 %v6208_v34  ;;  %2284 = vmatprep.mubr.bf16.mxu0 %v6799_v42  ;;  %v6228_v34 = vld [vmem:[#allocation10 + $0xe4] ss:$16 sps:$4 sm:$0xff]  }
 0x28f   :  { %6518 = vpow2.f32 %v5357_v49  ;;  %v5358_v51 = vmul.f32 -1.442695, %v1659_v50 }
 0x290   :  { %2265 = vmatpush1.bf16.msra.mxu0 %v6206_v35  ;;  %v6231_v35 = vld [vmem:[#allocation10 + $0xec] ss:$16 sps:$4 sm:$0xff]  }
 0x291   :  { %6520 = vpow2.f32 %v5358_v51  ;;  %2266 = vmatprep.subr.bf16.mxu0 %v6214_v38  ;;  %v6234_v38 = vld [vmem:[#allocation10 + $0xc4] ss:$16 sps:$4 sm:$0xff]  }
 0x294   :  { %2267 = vmatpush1.bf16.msra.mxu0 %v6212_v39  ;;  %v6232_v39 = vld [vmem:[#allocation10 + $0xc0] ss:$16 sps:$4 sm:$0xff]  }
 0x295   :  { %5808 = vmatprep.subr.bf16.mxu0 %v6800_v43 }
 0x298   :  { %v6515_v52 = vpop.eup %6514 }
 0x299   :  { %v1687_v56 = vadd.f32 1.0, %v6515_v52  ;;  %v135_v52 = vld [vmem:[#allocation13 + $0x2] ss:$0 sm:$0xff] }
 0x29a   :  { %v6517_v53 = vpop.eup %6516 }
 0x29b   :  { %v1688_v54 = vadd.f32 1.0, %v6517_v53 }
 0x29c   :  { %v6519_v55 = vpop.eup %6518 }
 0x29d   :  { %v1691_v57 = vadd.f32 1.0, %v6519_v55  ;;  %6522 = vrcp.f32 %v1688_v54 }
 0x29e   :  { %v6521_v58 = vpop.eup %6520 }
 0x29f   :  { %6524 = vrcp.f32 %v1691_v57  ;;  %v1692_v59 = vadd.f32 1.0, %v6521_v58 }
 0x2a0   :  { %6526 = vrcp.f32 %v1687_v56 }
 0x2a1   :  { %6528 = vrcp.f32 %v1692_v59 }
 0x2aa   :  { %v6523_v60 = vpop.eup %6522 }
 0x2ab   :  { %v1712_v1 = vmul.f32 %v6523_v60, %v1655_v41  ;;  %v6215_v41 = vld [vmem:[#allocation8 + $0x8] ss:$16 sps:$4 sm:$0xff]  }
 0x2ac   :  { %v6525_v61 = vpop.eup %6524 }
 0x2ad   :  { %v6527_v62 = vpop.eup %6526  ;;  %v1715_v0 = vmul.f32 %v6525_v61, %v1657_v46  ;;  %v6218_v61 = vld [vmem:[%s7352_s5 + $0x38] sm:$0xff]  }
 0x2ae   :  { %v6529_v63 = vpop.eup %6528  ;;  %v1711_v3 = vmul.f32 %v6527_v62, %v1653_v36  ;;  %v6211_v36 = vld [vmem:[#allocation8 + $0x2c] ss:$16 sps:$4 sm:$0xff]  }
 0x2af   :  { %v1716_v2 = vmul.f32 %v6529_v63, %v1659_v50  ;;  %v6219_v63 = vld [vmem:[%s7352_s5 + $0x30] sm:$0xff]  }
 0x2b0   :  { %v1783_v5 = vpack.c.bf16 %v1715_v0, %v1711_v3  ;;  %v6220_v0 = vld [vmem:[%s7352_s5 + $0x28] sm:$0xff]   ;;  %v6223_v3 = vld [vmem:[%s7352_s5 + $0x10] sm:$0xff]  }
 0x2b1   :  { %v1784_v4 = vpack.c.bf16 %v1716_v2, %v1712_v1  ;;  %v6221_v1 = vld [vmem:[%s7352_s5 + $0x20] sm:$0xff]   ;;  %v6222_v2 = vld [vmem:[%s7352_s5 + $0x18] sm:$0xff]  }
 0x2b3   :  { %2050 = vmatprep.mubr.bf16.mxu1 %v1784_v4  ;;  %v6224_v4 = vld [vmem:[%s7352_s5 + $0x8] sm:$0xff]  }
 0x2b4   :  { %2051 = vmatmul.mubr.bf16.vlgmr.msra.gmra.mxu1 %v1783_v5  ;;  %v6225_v5 = vld [vmem:[%s7352_s5] sm:$0xff]  }
 0x2b5   :  { %2296 = vmatpush1.bf16.msra.mxu1 %v6173_v12  ;;  %2327 = vmatprep.mubr.bf16.mxu1 %v6799_v42  ;;  %v2360_v12 = vpack.c.bf16 %v2343_v11, %v2342_v10 }
 0x2b6   :  { %2297 = vmatprep.subr.bf16.mxu1 %v6181_v19 }
 0x2b9   :  { %2298 = vmatpush1.bf16.msra.mxu1 %v6179_v17 }
 0x2ba   :  { %2299 = vmatprep.subr.bf16.mxu1 %v6187_v21  ;;  %v136_v21 = vld [vmem:[#allocation13 + $0x3] ss:$0 sm:$0xff] }
 0x2bd   :  { %2300 = vmatpush1.bf16.msra.mxu1 %v6185_v23 }
 0x2be   :  { %2301 = vmatprep.subr.bf16.mxu1 %v6193_v25 }
 0x2c1   :  { %2302 = vmatpush1.bf16.msra.mxu1 %v6191_v27 }
 0x2c2   :  { %2303 = vmatprep.subr.bf16.mxu1 %v6199_v16 }
 0x2c5   :  { %2304 = vmatpush1.bf16.msra.mxu1 %v6197_v29 }
 0x2c6   :  { %2305 = vmatprep.subr.bf16.mxu1 %v6205_v33 }
 0x2c9   :  { %2306 = vmatpush1.bf16.msra.mxu1 %v6203_v32 }
 0x2ca   :  { %2307 = vmatprep.subr.bf16.mxu1 %v6211_v36  ;;  %v6226_v36 = vld [vmem:[#allocation10 + $0xe0] ss:$16 sps:$4 sm:$0xff]  }
 0x2cd   :  { %2308 = vmatpush1.bf16.msra.mxu1 %v6209_v37  ;;  %v6229_v37 = vld [vmem:[#allocation10 + $0xe8] ss:$16 sps:$4 sm:$0xff]  }
 0x2ce   :  { %2309 = vmatprep.subr.bf16.mxu1 %v6217_v40  ;;  %v6235_v40 = vld [vmem:[#allocation10 + $0xc8] ss:$16 sps:$4 sm:$0xff]  }
 0x2d1   :  { %2310 = vmatpush1.bf16.msra.mxu1 %v6215_v41  ;;  %v6237_v41 = vld [vmem:[#allocation10 + $0xcc] ss:$16 sps:$4 sm:$0xff]  }
 0x2d2   :  { %2718 = vmatprep.subr.bf16.mxu1 %v6228_v34 }
 0x334   :  { %v5639_v44 = vpop.f32.mrf.mxu0 }
 0x336   :  { %v5640_v45 = vpop.f32.mrf.mxu0 }
 0x337   :  { %v5641_v50 = vadd.f32 %v5640_v45, %v5639_v44  ;;  %v6243_v44 = vld [vmem:[#allocation10 + $0xac] ss:$16 sps:$4 sm:$0xff]   ;;  %v6238_v45 = vld [vmem:[#allocation10 + $0xa0] ss:$16 sps:$4 sm:$0xff]  }
 0x338   :  { %v5642_v46 = vpop.f32.mrf.mxu0 }
 0x339   :  { %v2012_v56 = vadd.f32 %v5641_v50, %v135_v52  ;;  %v6247_v50 = vld [vmem:[#allocation10 + $0x88] ss:$16 sps:$4 sm:$0xff]  }
 0x33a   :  { %v5643_v47 = vpop.f32.mrf.mxu0 }
 0x33b   :  { %v5644_v51 = vadd.f32 %v5643_v47, %v5642_v46  ;;  %v6241_v46 = vld [vmem:[#allocation10 + $0xa8] ss:$16 sps:$4 sm:$0xff]   ;;  %v6246_v47 = vld [vmem:[#allocation10 + $0x84] ss:$16 sps:$4 sm:$0xff]  }
 0x33d   :  { %v2015_v57 = vadd.f32 %v5644_v51, %v135_v52  ;;  %v6252_v51 = vld [vmem:[#allocation10 + $0x64] ss:$16 sps:$4 sm:$0xff]   ;;  %v6255_v52 = vld [vmem:[#allocation10 + $0x6c] ss:$16 sps:$4 sm:$0xff]  }
 0x374   :  { %v5661_v48 = vpop.f32.mrf.mxu1 }
 0x376   :  { %v5662_v49 = vpop.f32.mrf.mxu1 }
 0x377   :  { %v5663_v54 = vadd.f32 %v5662_v49, %v5661_v48  ;;  %v6249_v48 = vld [vmem:[#allocation10 + $0x8c] ss:$16 sps:$4 sm:$0xff]   ;;  %v6244_v49 = vld [vmem:[#allocation10 + $0x80] ss:$16 sps:$4 sm:$0xff]  }
 0x378   :  { %v5664_v53 = vpop.f32.mrf.mxu1 }
 0x379   :  { %v2053_v59 = vadd.f32 %v5663_v54, %v2012_v56  ;;  %v6253_v54 = vld [vmem:[#allocation10 + $0x68] ss:$16 sps:$4 sm:$0xff]   ;;  %v6261_v56 = vld [vmem:[#allocation10 + $0x4c] ss:$16 sps:$4 sm:$0xff]  }
 0x37a   :  { %v5665_v55 = vpop.f32.mrf.mxu1 }
 0x37b   :  { %v5666_v58 = vadd.f32 %v5665_v55, %v5664_v53  ;;  %v6250_v53 = vld [vmem:[#allocation10 + $0x60] ss:$16 sps:$4 sm:$0xff]   ;;  %v6258_v55 = vld [vmem:[#allocation10 + $0x44] ss:$16 sps:$4 sm:$0xff]  }
 0x37d   :  { %v2056_v60 = vadd.f32 %v5666_v58, %v2015_v57  ;;  %v6256_v57 = vld [vmem:[#allocation10 + $0x40] ss:$16 sps:$4 sm:$0xff]   ;;  %v6259_v58 = vld [vmem:[#allocation10 + $0x48] ss:$16 sps:$4 sm:$0xff]  }
 0x37f   :  { %v2091_v62 = vpack.c.bf16 %v2056_v60, %v2053_v59  ;;  %v6264_v59 = vld [vmem:[#allocation10 + $0x24] ss:$16 sps:$4 sm:$0xff]   ;;  %v6267_v60 = vld [vmem:[#allocation10 + $0x2c] ss:$16 sps:$4 sm:$0xff]  }
 0x381   :  { %2285 = vmatmul.mubr.bf16.vlgmr.msra.gmra.mxu0 %v2091_v62  ;;  %2328 = vmatmul.mubr.bf16.vlgmr.msra.gmra.mxu1 %v2091_v62  ;;  %v6265_v62 = vld [vmem:[#allocation10 + $0x28] ss:$16 sps:$4 sm:$0xff]  }
 0x382   :  { %5809 = vmatpush3.bf16.msra.mxu0 %v6218_v61  ;;  %5824 = vmatprep.mubr.msk.bf16.mxu0 %vm6801_vm0, %v6800_v43  ;;  %v6262_v61 = vld [vmem:[#allocation10 + $0x20] ss:$16 sps:$4 sm:$0xff]  }
 0x383   :  { %5810 = vmatprep.subr.bf16.mxu0 %v6800_v43  ;;  %2750 = vmatprep.mubr.bf16.mxu1 %v6799_v42 }
 0x384   :  { %2719 = vmatpush1.bf16.msra.mxu1 %v6226_v36 }
 0x385   :  { %2720 = vmatprep.subr.bf16.mxu1 %v6234_v38 }
 0x386   :  { %5811 = vmatpush3.bf16.msra.mxu0 %v6219_v63  ;;  %v6270_v63 = vld [vmem:[#allocation10 + $0x4] ss:$16 sps:$4 sm:$0xff]  }
 0x387   :  { %5812 = vmatprep.subr.bf16.mxu0 %v6800_v43 }
 0x388   :  { %2721 = vmatpush1.bf16.msra.mxu1 %v6232_v39 }
 0x38a   :  { %5813 = vmatpush3.bf16.msra.mxu0 %v6220_v0  ;;  %v6273_v0 = vld [vmem:[#allocation10 + $0xc] ss:$16 sps:$4 sm:$0xff]  }
 0x38b   :  { %5814 = vmatprep.subr.bf16.mxu0 %v6800_v43 }
 0x38e   :  { %5815 = vmatpush3.bf16.msra.mxu0 %v6221_v1  ;;  %v6268_v1 = vld [vmem:[#allocation10] ss:$16 sps:$4 sm:$0xff]  }
 0x38f   :  { %5816 = vmatprep.subr.bf16.mxu0 %v6800_v43 }
 0x392   :  { %5817 = vmatpush3.bf16.msra.mxu0 %v6222_v2  ;;  %v6271_v2 = vld [vmem:[#allocation10 + $0x8] ss:$16 sps:$4 sm:$0xff]  }
 0x393   :  { %5818 = vmatprep.subr.bf16.mxu0 %v6800_v43 }
 0x396   :  { %5819 = vmatpush3.bf16.msra.mxu0 %v6223_v3 }
 0x397   :  { %5820 = vmatprep.subr.bf16.mxu0 %v6800_v43 }
 0x39a   :  { %5821 = vmatpush3.bf16.msra.mxu0 %v6224_v4 }
 0x39b   :  { %5822 = vmatprep.subr.bf16.mxu0 %v6800_v43  ;;  %v6240_v43 = vld [vmem:[#allocation10 + $0xa4] ss:$16 sps:$4 sm:$0xff]  }
 0x39c   :  { %2722 = vmatprep.subr.bf16.mxu1 %v6240_v43 }
 0x39d   :  { %2723 = vmatpush1.bf16.msra.mxu1 %v6238_v45 }
 0x39e   :  { %5823 = vmatpush3.bf16.msra.mxu0 %v6225_v5  ;;  %2724 = vmatprep.subr.bf16.mxu1 %v6246_v47 }
 0x39f   :  { %2761 = vmatprep.subr.bf16.mxu0 %v6231_v35 }
 0x3a1   :  { %5825 = vmatmul.mubr.bf16.vlgmr.msra.gmra.mxu0 %v2360_v12  ;;  %2725 = vmatpush1.bf16.msra.mxu1 %v6244_v49 }
 0x3a2   :  { %2793 = vmatprep.mubr.bf16.mxu0 %v6799_v42  ;;  %2762 = vmatpush1.bf16.msra.mxu0 %v6229_v37 }
 0x3a3   :  { %2763 = vmatprep.subr.bf16.mxu0 %v6237_v41  ;;  %2726 = vmatprep.subr.bf16.mxu1 %v6252_v51 }
 0x3a5   :  { %2727 = vmatpush1.bf16.msra.mxu1 %v6250_v53 }
 0x3a6   :  { %2764 = vmatpush1.bf16.msra.mxu0 %v6235_v40  ;;  %2728 = vmatprep.subr.bf16.mxu1 %v6258_v55 }
 0x3a7   :  { %2765 = vmatprep.subr.bf16.mxu0 %v6243_v44 }
 0x3a9   :  { %2729 = vmatpush1.bf16.msra.mxu1 %v6256_v57 }
 0x3aa   :  { %2766 = vmatpush1.bf16.msra.mxu0 %v6241_v46  ;;  %2730 = vmatprep.subr.bf16.mxu1 %v6264_v59 }
 0x3ab   :  { %2767 = vmatprep.subr.bf16.mxu0 %v6249_v48 }
 0x3ad   :  { %2731 = vmatpush1.bf16.msra.mxu1 %v6262_v61 }
 0x3ae   :  { %2768 = vmatpush1.bf16.msra.mxu0 %v6247_v50  ;;  %2732 = vmatprep.subr.bf16.mxu1 %v6270_v63  ;;  %v2453_v50 = vld [vmem:[#allocation13 + $0x22] ss:$8 sm:$0xf] }
 0x3af   :  { %2769 = vmatprep.subr.bf16.mxu0 %v6255_v52  ;;  %v2541_v51 = vrot.slane %v2453_v50, %v6899_v6  ;;  %v2549_v53 = vrot.slane %v2453_v50, %v6901_v7  ;;  %v2553_v57 = vrot.slane %v2453_v50, %v6905_v9 }
 0x3b1   :  { %2733 = vmatpush1.bf16.msra.mxu1 %v6268_v1 }
 0x3b2   :  { %2770 = vmatpush1.bf16.msra.mxu0 %v6253_v54  ;;  %v2545_v54 = vrot.slane %v2453_v50, %v6903_v8 }
 0x3b3   :  { %2771 = vmatprep.subr.bf16.mxu0 %v6261_v56 }
 0x3b6   :  { %2772 = vmatpush1.bf16.msra.mxu0 %v6259_v58 }
 0x3b7   :  { %2773 = vmatprep.subr.bf16.mxu0 %v6267_v60 }
 0x3ba   :  { %2774 = vmatpush1.bf16.msra.mxu0 %v6265_v62 }
 0x3bb   :  { %2775 = vmatprep.subr.bf16.mxu0 %v6273_v0 }
 0x3be   :  { %2776 = vmatpush1.bf16.msra.mxu0 %v6271_v2 }
 0x441   :  { %v2286_v14 = vpop.f32.mrf.mxu0  ;;  %v2329_v47 = vpop.f32.mrf.mxu1 }
 0x443   :  { %v2288_v15 = vpop.f32.mrf.mxu0  ;;  %v2331_v48 = vpop.f32.mrf.mxu1 }
 0x445   :  { %v2290_v19 = vpop.f32.mrf.mxu0  ;;  %v2333_v49 = vpop.f32.mrf.mxu1 }
 0x446   :  { %v6965_v20 = vpack.c.bf16 %v2290_v19, %v2286_v14  ;;  %v2340_v58 = vpack.c.bf16 %v2333_v49, %v2329_v47 }
 0x447   :  { %v2292_v17 = vpop.f32.mrf.mxu0  ;;  %v2335_v52 = vpop.f32.mrf.mxu1 }
 0x448   :  { %v6967_v18 = vpack.c.bf16 %v2292_v17, %v2288_v15  ;;  %v2450_v15 = vld [vmem:[#allocation13 + $0x20] ss:$0 sm:$0xff]  ;;  %v2451_v17 = vld [vmem:[#allocation13 + $0x21] ss:$0 sm:$0xff]  ;;  %v2341_v60 = vpack.c.bf16 %v2335_v52, %v2331_v48  ;;  %v6992_v63 = vunpack.c.l.bf16 %v6965_v20 }
 0x44a   :  { %v6995_v0 = vunpack.c.l.bf16 %v6967_v18 }
 0x461   :  { %v2443_v22 = vpop.f32.mrf.mxu0 }
 0x462   :  { %v6969_v23 = vadd.f32 %v2443_v22, %v136_v21 }
 0x463   :  { %v5826_v24 = vpop.f32.mrf.mxu0 }
 0x464   :  { %2459 = vadd.xlane.f32.xlu0 %v6969_v23 }
 0x465   :  { %v2446_v25 = vpop.f32.mrf.mxu0 }
 0x466   :  { %v6972_v26 = vadd.f32 %v2446_v25, %v136_v21 }
 0x467   :  { %v5827_v27 = vpop.f32.mrf.mxu0 }
 0x468   :  { %2461 = vadd.xlane.f32.xlu0 %v6972_v26 }
 0x4ed   :  { %v2460_v13 = vpop.xlane.xlu0 %2459 }
 0x4ee   :  { %v2464_v16 = vmul.f32 0.0078125, %v2460_v13 }
 0x4f0   :  { %v6976_v28 = vsub.f32 %v6969_v23, %v2464_v16 }
 0x4f1   :  { %v2462_v29 = vpop.xlane.xlu0 %2461 }
 0x4f2   :  { %v2465_v30 = vmul.f32 0.0078125, %v2462_v29  ;;  %v2468_v31 = vmul.f32 %v6976_v28, %v6976_v28 }
 0x4f4   :  { %v6981_v32 = vsub.f32 %v6972_v26, %v2465_v30  ;;  %2470 = vadd.xlane.f32.xlu1 %v2468_v31 }
 0x4f6   :  { %v2469_v33 = vmul.f32 %v6981_v32, %v6981_v32 }
 0x4f8   :  { %2472 = vadd.xlane.f32.xlu1 %v2469_v33 }
 0x57d   :  { %v2471_v3 = vpop.xlane.xlu1 %2470 }
 0x57e   :  { %v2474_v4 = vmul.f32 0.0078125, %v2471_v3 }
 0x580   :  { %v2476_v5 = vadd.f32 1e-05, %v2474_v4 }
 0x581   :  { %v2473_v10 = vpop.xlane.xlu1 %2472 }
 0x582   :  { %6530 = vrsqrt.f32 %v2476_v5  ;;  %v2475_v11 = vmul.f32 0.0078125, %v2473_v10  ;;  %v6997_v10 = vunpack.c.l.bf16 %v2340_v58 }
 0x584   :  { %v2477_v12 = vadd.f32 1e-05, %v2475_v11 }
 0x586   :  { %6532 = vrsqrt.f32 %v2477_v12 }
 0x58f   :  { %v6531_v14 = vpop.eup %6530 }
 0x590   :  { %v2480_v19 = vmul.f32 %v6531_v14, %v6976_v28 }
 0x592   :  { %v2482_v21 = vmul.f32 %v2480_v19, %v2450_v15  ;;  %v7005_v19 = vunpack.c.h.bf16 %v6967_v18 }
 0x593   :  { %v6533_v22 = vpop.eup %6532 }
 0x594   :  { %v2484_v24 = vadd.f32 %v2482_v21, %v2451_v17  ;;  %v2481_v25 = vmul.f32 %v6533_v22, %v6981_v32 }
 0x596   :  { %v2483_v27 = vmul.f32 %v2481_v25, %v2450_v15  ;;  %v2488_v13 = vmul.f32 0.044715, %v2484_v24  ;;  %v2486_v41 = vmul.f32 0.5, %v2484_v24  ;;  %v7002_v15 = vunpack.c.h.bf16 %v6965_v20 }
 0x598   :  { %v2485_v16 = vadd.f32 %v2483_v27, %v2451_v17  ;;  %v2490_v29 = vmul.f32 %v2488_v13, %v2484_v24  ;;  %v7007_v17 = vunpack.c.l.bf16 %v2341_v60 }
 0x59a   :  { %v2489_v30 = vmul.f32 0.044715, %v2485_v16  ;;  %v2492_v31 = vmul.f32 %v2490_v29, %v2484_v24  ;;  %v2487_v43 = vmul.f32 0.5, %v2485_v16 }
 0x59c   :  { %v2491_v33 = vmul.f32 %v2489_v30, %v2485_v16  ;;  %v2494_v34 = vadd.f32 %v2492_v31, %v2484_v24 }
 0x59e   :  { %v2493_v35 = vmul.f32 %v2491_v33, %v2485_v16  ;;  %v2496_v36 = vmul.f32 0.7978846, %v2494_v34  ;;  %v7015_v33 = vunpack.c.h.bf16 %v2341_v60 }
 0x5a0   :  { %v2495_v37 = vadd.f32 %v2493_v35, %v2485_v16  ;;  %6534 = vtanh.f32 %v2496_v36  ;;  %v7010_v16 = vunpack.c.h.bf16 %v2340_v58 }
 0x5a2   :  { %v2497_v38 = vmul.f32 0.7978846, %v2495_v37 }
 0x5a4   :  { %6536 = vtanh.f32 %v2497_v38 }
 0x5ad   :  { %v6535_v28 = vpop.eup %6534 }
 0x5ae   :  { %v2500_v39 = vadd.f32 1.0, %v6535_v28 }
 0x5b0   :  { %v2502_v44 = vmul.f32 %v2500_v39, %v2486_v41 }
 0x5b1   :  { %v6537_v40 = vpop.eup %6536 }
 0x5b2   :  { %v2501_v32 = vadd.f32 1.0, %v6537_v40 }
 0x5b4   :  { %v2503_v45 = vmul.f32 %v2501_v32, %v2487_v43 }
 0x5b6   :  { %v2536_v46 = vpack.c.bf16 %v2503_v45, %v2502_v44 }
 0x5b8   :  { %2751 = vmatmul.mubr.bf16.vlgmr.msra.gmra.mxu1 %v2536_v46  ;;  %2794 = vmatmul.mubr.bf16.vlgmr.msra.gmra.mxu0 %v2536_v46 }
 0x678   :  { %v2752_v55 = vpop.f32.mrf.mxu1  ;;  %v2795_v56 = vpop.f32.mrf.mxu0 }
 0x679   :  { %v2753_v59 = vadd.f32 %v2752_v55, %v2541_v51  ;;  %v2796_v1 = vadd.f32 %v2795_v56, %v2549_v53 }
 0x67a   :  { %v2754_v61 = vpop.f32.mrf.mxu1  ;;  %v2797_v62 = vpop.f32.mrf.mxu0 }
 0x67b   :  { %v2755_v2 = vadd.f32 %v2754_v61, %v2545_v54  ;;  %v2798_v3 = vadd.f32 %v2797_v62, %v2553_v57  ;;  %v2812_v11 = vadd.f32 %v6992_v63, %v2753_v59  ;;  %v2814_v24 = vadd.f32 %v6997_v10, %v2796_v1 }
 0x67c   :  { %v2756_v4 = vpop.f32.mrf.mxu1  ;;  %v2799_v5 = vpop.f32.mrf.mxu0 }
 0x67d   :  { %v2813_v12 = vadd.f32 %v6995_v0, %v2755_v2  ;;  %v2757_v14 = vadd.f32 %v2756_v4, %v2541_v51  ;;  %v2800_v27 = vadd.f32 %v2799_v5, %v2549_v53  ;;  %v2815_v29 = vadd.f32 %v7007_v17, %v2798_v3  ;;  %v6274_v3 = vld [vmem:[#allocation11 + $0x78] sm:$0xff]  }
 0x67e   :  { %v2758_v21 = vpop.f32.mrf.mxu1  ;;  %v2801_v22 = vpop.f32.mrf.mxu0  ;;  %v6275_v4 = vld [vmem:[#allocation11 + $0xf8] sm:$0xff]   ;;  %5676 = vmatprep.subr.bf16.mxu1 %v6274_v3 }
 0x67f   :  { %v2820_v25 = vadd.f32 %v2813_v12, %v2812_v11  ;;  %v2759_v13 = vadd.f32 %v2758_v21, %v2545_v54  ;;  %v2816_v30 = vadd.f32 %v7002_v15, %v2757_v14  ;;  %v2802_v31 = vadd.f32 %v2801_v22, %v2553_v57  ;;  %v6276_v5 = vld [vmem:[#allocation11 + $0x38] sm:$0xff]   ;;  %v6279_v14 = vld [vmem:[#allocation11 + $0xf0] sm:$0xff]   ;;  %5698 = vmatprep.subr.bf16.mxu0 %v6275_v4 }
 0x680   :  { %v2818_v34 = vadd.f32 %v7010_v16, %v2800_v27  ;;  %5677 = vmatpush3.bf16.msra.mxu1 %v6276_v5  ;;  %v6280_v21 = vld [vmem:[#allocation11 + $0x30] sm:$0xff]   ;;  %v6284_v27 = vld [vmem:[#allocation11 + $0x28] sm:$0xff]  }
 0x681   :  { %v2817_v20 = vadd.f32 %v7005_v19, %v2759_v13  ;;  %v2821_v18 = vadd.f32 %v2820_v25, %v2814_v24  ;;  %v2819_v37 = vadd.f32 %v7015_v33, %v2802_v31  ;;  %v6281_v22 = vld [vmem:[#allocation11 + $0xb0] sm:$0xff]   ;;  %v6283_v25 = vld [vmem:[#allocation11 + $0xe8] sm:$0xff]   ;;  %v6289_v31 = vld [vmem:[#allocation11 + $0xa0] sm:$0xff]  }
 0x682   :  { %v6285_v13 = vld [vmem:[#allocation11 + $0xa8] sm:$0xff]  }
 0x683   :  { %v2825_v35 = vadd.f32 %v2817_v20, %v2816_v30  ;;  %v2822_v36 = vadd.f32 %v2821_v18, %v2815_v29  ;;  %v6290_v18 = vld [vmem:[#allocation11 + $0x58] sm:$0xff]  }
 0x685   :  { %2823 = vadd.xlane.f32.xlu0 %v2822_v36  ;;  %v2826_v38 = vadd.f32 %v2825_v35, %v2818_v34  ;;  %v6292_v35 = vld [vmem:[#allocation11 + $0x18] sm:$0xff]  }
 0x686   :  { %v6293_v36 = vld [vmem:[#allocation11 + $0x98] sm:$0xff]  }
 0x687   :  { %v2827_v28 = vadd.f32 %v2826_v38, %v2819_v37  ;;  %v6295_v38 = vld [vmem:[#allocation11 + $0xd0] sm:$0xff]  }
 0x689   :  { %2828 = vadd.xlane.f32.xlu1 %v2827_v28  ;;  %v6296_v28 = vld [vmem:[#allocation11 + $0x10] sm:$0xff]  }
 0x70e   :  { %v2824_v39 = vpop.xlane.xlu0 %2823 }
 0x70f   :  { %v2831_v40 = vmul.f32 0.001953125, %v2824_v39  ;;  %v6297_v39 = vld [vmem:[#allocation11 + $0x90] sm:$0xff]  }
 0x711   :  { %v7019_v41 = vsub.f32 %v2812_v11, %v2831_v40  ;;  %v7021_v43 = vsub.f32 %v2813_v12, %v2831_v40  ;;  %v7023_v32 = vsub.f32 %v2814_v24, %v2831_v40  ;;  %v7025_v45 = vsub.f32 %v2815_v29, %v2831_v40  ;;  %v6277_v11 = vld [vmem:[#allocation11 + $0xb8] sm:$0xff]   ;;  %v6278_v12 = vld [vmem:[#allocation11 + $0x70] sm:$0xff]   ;;  %v6282_v24 = vld [vmem:[#allocation11 + $0x68] sm:$0xff]  }
 0x712   :  { %v2829_v44 = vpop.xlane.xlu1 %2828  ;;  %5699 = vmatpush3.bf16.msra.mxu0 %v6277_v11  ;;  %5678 = vmatprep.subr.bf16.mxu1 %v6278_v12  ;;  %v6286_v29 = vld [vmem:[#allocation11 + $0x60] sm:$0xff]   ;;  %v6298_v40 = vld [vmem:[#allocation11 + $0x48] sm:$0xff]  }
 0x713   :  { %v2832_v46 = vmul.f32 0.001953125, %v2829_v44  ;;  %v2841_v47 = vmul.f32 %v7019_v41, %v7019_v41  ;;  %v2842_v48 = vmul.f32 %v7021_v43, %v7021_v43  ;;  %v2843_v49 = vmul.f32 %v7023_v32, %v7023_v32  ;;  %5700 = vmatprep.subr.bf16.mxu0 %v6279_v14  ;;  %5679 = vmatpush3.bf16.msra.mxu1 %v6280_v21  ;;  %v6299_v44 = vld [vmem:[#allocation11 + $0xc8] sm:$0xff]  }
 0x714   :  { %v2844_v54 = vmul.f32 %v7025_v45, %v7025_v45  ;;  %5680 = vmatprep.subr.bf16.mxu1 %v6282_v24 }
 0x715   :  { %v7033_v50 = vsub.f32 %v2816_v30, %v2832_v46  ;;  %v7035_v51 = vsub.f32 %v2817_v20, %v2832_v46  ;;  %v2849_v52 = vadd.f32 %v2842_v48, %v2841_v47  ;;  %v7037_v53 = vsub.f32 %v2818_v34, %v2832_v46  ;;  %v6287_v30 = vld [vmem:[#allocation11 + $0xe0] sm:$0xff]   ;;  %v6291_v34 = vld [vmem:[#allocation11 + $0xd8] sm:$0xff]   ;;  %v6301_v47 = vld [vmem:[#allocation11 + $0x88] sm:$0xff]  }
 0x716   :  { %v7041_v56 = vsub.f32 %v2819_v37, %v2832_v46  ;;  %5701 = vmatpush3.bf16.msra.mxu0 %v6281_v22  ;;  %v6288_v20 = vld [vmem:[#allocation11 + $0x20] sm:$0xff]   ;;  %v6294_v37 = vld [vmem:[#allocation11 + $0x50] sm:$0xff]   ;;  %v6300_v46 = vld [vmem:[#allocation11 + $0x8] sm:$0xff]  }
 0x717   :  { %v2850_v55 = vadd.f32 %v2849_v52, %v2843_v49  ;;  %v2845_v57 = vmul.f32 %v7033_v50, %v7033_v50  ;;  %v2846_v58 = vmul.f32 %v7035_v51, %v7035_v51  ;;  %v2847_v60 = vmul.f32 %v7037_v53, %v7037_v53  ;;  %5702 = vmatprep.subr.bf16.mxu0 %v6283_v25  ;;  %v6302_v48 = vld [vmem:[#allocation11 + $0x40] sm:$0xff]  }
 0x718   :  { %v2848_v62 = vmul.f32 %v7041_v56, %v7041_v56  ;;  %5681 = vmatpush3.bf16.msra.mxu1 %v6284_v27  ;;  %v6303_v49 = vld [vmem:[#allocation11 + $0xc0] sm:$0xff]  }
 0x719   :  { %v2851_v59 = vadd.f32 %v2850_v55, %v2844_v54  ;;  %v2854_v61 = vadd.f32 %v2846_v58, %v2845_v57  ;;  %5682 = vmatprep.subr.bf16.mxu1 %v6286_v29  ;;  %v6304_v52 = vld [vmem:[#allocation11] sm:$0xff]  }
 0x71a   :  { %5703 = vmatpush3.bf16.msra.mxu0 %v6285_v13  ;;  %v6305_v54 = vld [vmem:[#allocation11 + $0x80] sm:$0xff]  }
 0x71b   :  { %2852 = vadd.xlane.f32.xlu0 %v2851_v59  ;;  %v2855_v1 = vadd.f32 %v2854_v61, %v2847_v60  ;;  %5704 = vmatprep.subr.bf16.mxu0 %v6287_v30 }
 0x71c   :  { %5683 = vmatpush3.bf16.msra.mxu1 %v6288_v20 }
 0x71d   :  { %v2856_v2 = vadd.f32 %v2855_v1, %v2848_v62  ;;  %5684 = vmatprep.subr.bf16.mxu1 %v6290_v18  ;;  %v2455_v62 = vld [vmem:[#allocation13 + $0x23] ss:$8 sm:$0xf]  ;;  %v2457_v1 = vld [vmem:[#allocation13 + $0x24] ss:$8 sm:$0xf] }
 0x71e   :  { %5705 = vmatpush3.bf16.msra.mxu0 %v6289_v31  ;;  %v2889_v3 = vrot.slane %v2455_v62, %v6905_v9  ;;  %v2877_v4 = vrot.slane %v2455_v62, %v6899_v6  ;;  %v2910_v11 = vrot.slane %v2457_v1, %v6903_v8  ;;  %v2918_v21 = vrot.slane %v2457_v1, %v6905_v9 }
 0x71f   :  { %2857 = vadd.xlane.f32.xlu1 %v2856_v2  ;;  %5706 = vmatprep.subr.bf16.mxu0 %v6291_v34  ;;  %v2881_v2 = vrot.slane %v2455_v62, %v6903_v8  ;;  %v2906_v24 = vrot.slane %v2457_v1, %v6899_v6  ;;  %v2885_v27 = vrot.slane %v2455_v62, %v6901_v7 }
 0x720   :  { %5685 = vmatpush3.bf16.msra.mxu1 %v6292_v35  ;;  %v2914_v31 = vrot.slane %v2457_v1, %v6901_v7 }
 0x721   :  { %5686 = vmatprep.subr.bf16.mxu1 %v6294_v37 }
 0x722   :  { %5707 = vmatpush3.bf16.msra.mxu0 %v6293_v36 }
 0x723   :  { %5708 = vmatprep.subr.bf16.mxu0 %v6295_v38 }
 0x724   :  { %5687 = vmatpush3.bf16.msra.mxu1 %v6296_v28 }
 0x725   :  { %5688 = vmatprep.subr.bf16.mxu1 %v6298_v40 }
 0x726   :  { %5709 = vmatpush3.bf16.msra.mxu0 %v6297_v39 }
 0x727   :  { %5710 = vmatprep.subr.bf16.mxu0 %v6299_v44 }
 0x728   :  { %5689 = vmatpush3.bf16.msra.mxu1 %v6300_v46 }
 0x729   :  { %5690 = vmatprep.subr.bf16.mxu1 %v6302_v48 }
 0x72a   :  { %5711 = vmatpush3.bf16.msra.mxu0 %v6301_v47 }
 0x72b   :  { %5712 = vmatprep.subr.bf16.mxu0 %v6303_v49 }
 0x72c   :  { %5691 = vmatpush3.bf16.msra.mxu1 %v6304_v52 }
 0x72e   :  { %5713 = vmatpush3.bf16.msra.mxu0 %v6305_v54 }
 0x7a4   :  { %v2853_v55 = vpop.xlane.xlu0 %2852 }
 0x7a5   :  { %v2859_v57 = vmul.f32 0.001953125, %v2853_v55 }
 0x7a7   :  { %v2861_v58 = vadd.f32 1e-05, %v2859_v57 }
 0x7a8   :  { %v2858_v59 = vpop.xlane.xlu1 %2857 }
 0x7a9   :  { %6538 = vrsqrt.f32 %v2861_v58  ;;  %v2860_v60 = vmul.f32 0.001953125, %v2858_v59 }
 0x7ab   :  { %v2862_v61 = vadd.f32 1e-05, %v2860_v60 }
 0x7ad   :  { %6540 = vrsqrt.f32 %v2862_v61 }
 0x7b6   :  { %v6539_v5 = vpop.eup %6538 }
 0x7b7   :  { %v2866_v12 = vmul.f32 %v6539_v5, %v7021_v43  ;;  %v2868_v14 = vmul.f32 %v6539_v5, %v7025_v45  ;;  %v2865_v22 = vmul.f32 %v6539_v5, %v7019_v41  ;;  %v2867_v25 = vmul.f32 %v6539_v5, %v7023_v32 }
 0x7b9   :  { %v2895_v13 = vmul.f32 %v2881_v2, %v2866_v12  ;;  %v2897_v29 = vmul.f32 %v2889_v3, %v2868_v14  ;;  %v2894_v30 = vmul.f32 %v2877_v4, %v2865_v22  ;;  %v2896_v36 = vmul.f32 %v2885_v27, %v2867_v25 }
 0x7ba   :  { %v6541_v20 = vpop.eup %6540 }
 0x7bb   :  { %v2870_v43 = vmul.f32 %v6541_v20, %v7035_v51  ;;  %v7064_v18 = vadd.f32 %v2910_v11, %v2895_v13  ;;  %v2872_v45 = vmul.f32 %v6541_v20, %v7041_v56  ;;  %v7067_v34 = vadd.f32 %v2918_v21, %v2897_v29 }
 0x7bc   :  { %v2869_v41 = vmul.f32 %v6541_v20, %v7033_v50  ;;  %v7070_v35 = vadd.f32 %v2906_v24, %v2894_v30  ;;  %v2871_v32 = vmul.f32 %v6541_v20, %v7037_v53  ;;  %v7080_v53 = vadd.f32 %v2914_v31, %v2896_v36 }
 0x7bd   :  { %v2899_v37 = vmul.f32 %v2881_v2, %v2870_v43  ;;  %v2940_v38 = vmul.f32 0.044715, %v7064_v18  ;;  %v2901_v28 = vmul.f32 %v2889_v3, %v2872_v45  ;;  %v2942_v39 = vmul.f32 0.044715, %v7067_v34 }
 0x7be   :  { %v2898_v51 = vmul.f32 %v2877_v4, %v2869_v41  ;;  %v2939_v46 = vmul.f32 0.044715, %v7070_v35  ;;  %v2900_v48 = vmul.f32 %v2885_v27, %v2871_v32  ;;  %v2941_v3 = vmul.f32 0.044715, %v7080_v53 }
 0x7bf   :  { %v2928_v40 = vadd.f32 %v2910_v11, %v2899_v37  ;;  %v2948_v44 = vmul.f32 %v2940_v38, %v7064_v18  ;;  %v2930_v56 = vadd.f32 %v2918_v21, %v2901_v28  ;;  %v2950_v50 = vmul.f32 %v2942_v39, %v7067_v34 }
 0x7c0   :  { %v7078_v47 = vadd.f32 %v2906_v24, %v2898_v51  ;;  %v2947_v60 = vmul.f32 %v2939_v46, %v7070_v35  ;;  %v2929_v61 = vadd.f32 %v2914_v31, %v2900_v48  ;;  %v2949_v27 = vmul.f32 %v2941_v3, %v7080_v53 }
 0x7c1   :  { %v2944_v49 = vmul.f32 0.044715, %v2928_v40  ;;  %v2956_v52 = vmul.f32 %v2948_v44, %v7064_v18  ;;  %v2946_v54 = vmul.f32 0.044715, %v2930_v56  ;;  %v2958_v55 = vmul.f32 %v2950_v50, %v7067_v34 }
 0x7c2   :  { %v2943_v57 = vmul.f32 0.044715, %v7078_v47  ;;  %v2955_v11 = vmul.f32 %v2947_v60, %v7070_v35  ;;  %v2945_v22 = vmul.f32 0.044715, %v2929_v61  ;;  %v2957_v43 = vmul.f32 %v2949_v27, %v7080_v53 }
 0x7c3   :  { %v2952_v58 = vmul.f32 %v2944_v49, %v2928_v40  ;;  %v2964_v59 = vadd.f32 %v2956_v52, %v7064_v18  ;;  %v2954_v62 = vmul.f32 %v2946_v54, %v2930_v56  ;;  %v2966_v1 = vadd.f32 %v2958_v55, %v7067_v34 }
 0x7c4   :  { %v2951_v2 = vmul.f32 %v2943_v57, %v7078_v47  ;;  %v2963_v25 = vadd.f32 %v2955_v11, %v7070_v35  ;;  %v2953_v30 = vmul.f32 %v2945_v22, %v2929_v61  ;;  %v2965_v36 = vadd.f32 %v2957_v43, %v7080_v53 }
 0x7c5   :  { %v2960_v4 = vmul.f32 %v2952_v58, %v2928_v40  ;;  %v2972_v5 = vmul.f32 0.7978846, %v2964_v59  ;;  %v2962_v12 = vmul.f32 %v2954_v62, %v2930_v56  ;;  %v2974_v14 = vmul.f32 0.7978846, %v2966_v1 }
 0x7c6   :  { %v2959_v21 = vmul.f32 %v2951_v2, %v7078_v47  ;;  %v2971_v31 = vmul.f32 0.7978846, %v2963_v25  ;;  %v2961_v32 = vmul.f32 %v2953_v30, %v2929_v61  ;;  %v2973_v38 = vmul.f32 0.7978846, %v2965_v36 }
 0x7c7   :  { %v2968_v24 = vadd.f32 %v2960_v4, %v2928_v40  ;;  %6542 = vtanh.f32 %v2972_v5  ;;  %v2970_v13 = vadd.f32 %v2962_v12, %v2930_v56  ;;  %v2932_v49 = vmul.f32 0.5, %v7064_v18 }
 0x7c8   :  { %6544 = vtanh.f32 %v2974_v14  ;;  %v2967_v29 = vadd.f32 %v2959_v21, %v7078_v47  ;;  %v2969_v37 = vadd.f32 %v2961_v32, %v2929_v61  ;;  %v2936_v52 = vmul.f32 0.5, %v2928_v40 }
 0x7c9   :  { %v2976_v20 = vmul.f32 0.7978846, %v2968_v24  ;;  %v2978_v45 = vmul.f32 0.7978846, %v2970_v13  ;;  %v2934_v57 = vmul.f32 0.5, %v7067_v34  ;;  %v2938_v58 = vmul.f32 0.5, %v2930_v56 }
 0x7ca   :  { %v2975_v41 = vmul.f32 0.7978846, %v2967_v29  ;;  %v2977_v28 = vmul.f32 0.7978846, %v2969_v37  ;;  %v2931_v2 = vmul.f32 0.5, %v7070_v35  ;;  %v2935_v12 = vmul.f32 0.5, %v7078_v47 }
 0x7cb   :  { %6546 = vtanh.f32 %v2976_v20  ;;  %v2933_v21 = vmul.f32 0.5, %v7080_v53  ;;  %v2937_v22 = vmul.f32 0.5, %v2929_v61  ;;  %v2458_v61 = vld [vmem:[#allocation13 + $0x25] ss:$0 sm:$0xff] }
 0x7cc   :  { %6548 = vtanh.f32 %v2978_v45 }
 0x7cd   :  { %6550 = vtanh.f32 %v2971_v31 }
 0x7ce   :  { %6552 = vtanh.f32 %v2975_v41 }
 0x7cf   :  { %6554 = vtanh.f32 %v2973_v38 }
 0x7d0   :  { %6556 = vtanh.f32 %v2977_v28 }
 0x7d4   :  { %v6543_v39 = vpop.eup %6542 }
 0x7d5   :  { %v6545_v51 = vpop.eup %6544  ;;  %v2988_v44 = vadd.f32 1.0, %v6543_v39 }
 0x7d6   :  { %v2990_v50 = vadd.f32 1.0, %v6545_v51 }
 0x7d7   :  { %v2996_v62 = vmul.f32 %v2988_v44, %v2932_v49 }
 0x7d8   :  { %v6547_v46 = vpop.eup %6546  ;;  %v2998_v5 = vmul.f32 %v2990_v50, %v2934_v57 }
 0x7d9   :  { %v6549_v48 = vpop.eup %6548  ;;  %v2992_v54 = vadd.f32 1.0, %v6547_v46 }
 0x7da   :  { %v6551_v55 = vpop.eup %6550  ;;  %v2994_v59 = vadd.f32 1.0, %v6549_v48 }
 0x7db   :  { %v6553_v60 = vpop.eup %6552  ;;  %v3000_v1 = vmul.f32 %v2992_v54, %v2936_v52  ;;  %v2987_v3 = vadd.f32 1.0, %v6551_v55 }
 0x7dc   :  { %v6555_v4 = vpop.eup %6554  ;;  %v3002_v11 = vmul.f32 %v2994_v59, %v2938_v58  ;;  %v2991_v14 = vadd.f32 1.0, %v6553_v60  ;;  %v6306_v59 = vld [vmem:[#allocation10 + $0x1e0] ss:$16 sps:$4 sm:$0xff]   ;;  %v6308_v60 = vld [vmem:[#allocation10 + $0x1e4] ss:$16 sps:$4 sm:$0xff]  }
 0x7dd   :  { %v6557_v18 = vpop.eup %6556  ;;  %v3068_v40 = vpack.c.bf16 %v3000_v1, %v2996_v62  ;;  %v2989_v34 = vadd.f32 1.0, %v6555_v4  ;;  %v2995_v24 = vmul.f32 %v2987_v3, %v2931_v2  ;;  %v6309_v62 = vld [vmem:[#allocation10 + $0x1e8] ss:$16 sps:$4 sm:$0xff]   ;;  %v6311_v1 = vld [vmem:[#allocation10 + $0x1ec] ss:$16 sps:$4 sm:$0xff]   ;;  %3615 = vmatprep.subr.bf16.mxu1 %v6308_v60 }
 0x7de   :  { %v3070_v56 = vpack.c.bf16 %v3002_v11, %v2998_v5  ;;  %v2999_v25 = vmul.f32 %v2991_v14, %v2935_v12  ;;  %v2993_v27 = vadd.f32 1.0, %v6557_v18  ;;  %v6314_v2 = vld [vmem:[#allocation10 + $0x1c4] ss:$16 sps:$4 sm:$0xff]   ;;  %v6317_v3 = vld [vmem:[#allocation10 + $0x1cc] ss:$16 sps:$4 sm:$0xff]   ;;  %3658 = vmatprep.subr.bf16.mxu0 %v6311_v1 }
 0x7df   :  { %3295 = vmatprep.mubr.bf16.mxu1 %v3068_v40  ;;  %v2997_v13 = vmul.f32 %v2989_v34, %v2933_v21  ;;  %v6312_v4 = vld [vmem:[#allocation10 + $0x1c0] ss:$16 sps:$4 sm:$0xff]   ;;  %v6315_v5 = vld [vmem:[#allocation10 + $0x1c8] ss:$16 sps:$4 sm:$0xff]   ;;  %v6320_v11 = vld [vmem:[#allocation10 + $0x1a4] ss:$16 sps:$4 sm:$0xff]  }
 0x7e0   :  { %3336 = vmatprep.mubr.bf16.mxu0 %v3070_v56  ;;  %v3067_v35 = vpack.c.bf16 %v2999_v25, %v2995_v24  ;;  %v3001_v29 = vmul.f32 %v2993_v27, %v2937_v22  ;;  %v6323_v12 = vld [vmem:[#allocation10 + $0x1ac] ss:$16 sps:$4 sm:$0xff]   ;;  %v6318_v14 = vld [vmem:[#allocation10 + $0x1a0] ss:$16 sps:$4 sm:$0xff]   ;;  %v6321_v18 = vld [vmem:[#allocation10 + $0x1a8] ss:$16 sps:$4 sm:$0xff]  }
 0x7e1   :  { %v6326_v40 = vld [vmem:[#allocation10 + $0x184] ss:$16 sps:$4 sm:$0xff]   ;;  %v6329_v21 = vld [vmem:[#allocation10 + $0x18c] ss:$16 sps:$4 sm:$0xff]   ;;  %v6324_v22 = vld [vmem:[#allocation10 + $0x180] ss:$16 sps:$4 sm:$0xff]  }
 0x7e2   :  { %3296 = vmatmul.mubr.bf16.vlgmr.msra.gmra.mxu1 %v3067_v35  ;;  %v3069_v30 = vpack.c.bf16 %v3001_v29, %v2997_v13  ;;  %v6327_v34 = vld [vmem:[#allocation10 + $0x188] ss:$16 sps:$4 sm:$0xff]   ;;  %v6332_v56 = vld [vmem:[#allocation10 + $0x164] ss:$16 sps:$4 sm:$0xff]   ;;  %v6335_v24 = vld [vmem:[#allocation10 + $0x16c] ss:$16 sps:$4 sm:$0xff]  }
 0x7e3   :  { %3647 = vmatprep.mubr.bf16.mxu1 %v6799_v42  ;;  %3616 = vmatpush1.bf16.msra.mxu1 %v6306_v59  ;;  %v6330_v25 = vld [vmem:[#allocation10 + $0x160] ss:$16 sps:$4 sm:$0xff]   ;;  %v6333_v27 = vld [vmem:[#allocation10 + $0x168] ss:$16 sps:$4 sm:$0xff]   ;;  %v6338_v35 = vld [vmem:[#allocation10 + $0x144] ss:$16 sps:$4 sm:$0xff]  }
 0x7e4   :  { %3337 = vmatmul.mubr.bf16.vlgmr.msra.gmra.mxu0 %v3069_v30  ;;  %3617 = vmatprep.subr.bf16.mxu1 %v6314_v2  ;;  %v6341_v13 = vld [vmem:[#allocation10 + $0x14c] ss:$16 sps:$4 sm:$0xff]   ;;  %v6336_v29 = vld [vmem:[#allocation10 + $0x140] ss:$16 sps:$4 sm:$0xff]   ;;  %v6339_v30 = vld [vmem:[#allocation10 + $0x148] ss:$16 sps:$4 sm:$0xff]  }
 0x7e5   :  { %3690 = vmatprep.mubr.bf16.mxu0 %v6799_v42  ;;  %3659 = vmatpush1.bf16.msra.mxu0 %v6309_v62 }
 0x7e6   :  { %3660 = vmatprep.subr.bf16.mxu0 %v6317_v3 }
 0x7e7   :  { %3618 = vmatpush1.bf16.msra.mxu1 %v6312_v4 }
 0x7e8   :  { %3619 = vmatprep.subr.bf16.mxu1 %v6320_v11 }
 0x7e9   :  { %3661 = vmatpush1.bf16.msra.mxu0 %v6315_v5 }
 0x7ea   :  { %3662 = vmatprep.subr.bf16.mxu0 %v6323_v12 }
 0x7eb   :  { %3620 = vmatpush1.bf16.msra.mxu1 %v6318_v14 }
 0x7ec   :  { %3621 = vmatprep.subr.bf16.mxu1 %v6326_v40 }
 0x7ed   :  { %3663 = vmatpush1.bf16.msra.mxu0 %v6321_v18 }
 0x7ee   :  { %3664 = vmatprep.subr.bf16.mxu0 %v6329_v21 }
 0x7ef   :  { %3622 = vmatpush1.bf16.msra.mxu1 %v6324_v22 }
 0x7f0   :  { %3623 = vmatprep.subr.bf16.mxu1 %v6332_v56 }
 0x7f1   :  { %3665 = vmatpush1.bf16.msra.mxu0 %v6327_v34 }
 0x7f2   :  { %3666 = vmatprep.subr.bf16.mxu0 %v6335_v24 }
 0x7f3   :  { %3624 = vmatpush1.bf16.msra.mxu1 %v6330_v25  ;;  %v3350_v25 = vld [vmem:[#allocation13 + $0x42] ss:$8 sm:$0xf] }
 0x7f4   :  { %3625 = vmatprep.subr.bf16.mxu1 %v6338_v35  ;;  %v3446_v35 = vrot.slane %v3350_v25, %v6901_v7 }
 0x7f5   :  { %3667 = vmatpush1.bf16.msra.mxu0 %v6333_v27  ;;  %v3438_v27 = vrot.slane %v3350_v25, %v6899_v6 }
 0x7f6   :  { %3668 = vmatprep.subr.bf16.mxu0 %v6341_v13  ;;  %v3442_v13 = vrot.slane %v3350_v25, %v6903_v8 }
 0x7f7   :  { %3626 = vmatpush1.bf16.msra.mxu1 %v6336_v29 }
 0x7f9   :  { %3669 = vmatpush1.bf16.msra.mxu0 %v6339_v30 }
 0x8a2   :  { %v5692_v47 = vpop.f32.mrf.mxu1 }
 0x8a4   :  { %v5714_v53 = vpop.f32.mrf.mxu0  ;;  %v5693_v20 = vpop.f32.mrf.mxu1 }
 0x8a5   :  { %v5694_v31 = vadd.f32 %v5693_v20, %v5692_v47  ;;  %v6344_v47 = vld [vmem:[#allocation10 + $0x124] ss:$16 sps:$4 sm:$0xff]   ;;  %v6345_v20 = vld [vmem:[#allocation10 + $0x128] ss:$16 sps:$4 sm:$0xff]  }
 0x8a6   :  { %v5715_v43 = vpop.f32.mrf.mxu0  ;;  %v5695_v45 = vpop.f32.mrf.mxu1  ;;  %3627 = vmatprep.subr.bf16.mxu1 %v6344_v47  ;;  %v3450_v47 = vrot.slane %v3350_v25, %v6905_v9 }
 0x8a7   :  { %v3298_v41 = vadd.f32 %v5694_v31, %v2458_v61  ;;  %v5716_v32 = vadd.f32 %v5715_v43, %v5714_v53  ;;  %v6347_v53 = vld [vmem:[#allocation10 + $0x12c] ss:$16 sps:$4 sm:$0xff]   ;;  %v6350_v31 = vld [vmem:[#allocation10 + $0x104] ss:$16 sps:$4 sm:$0xff]  }
 0x8a8   :  { %v5717_v36 = vpop.f32.mrf.mxu0  ;;  %v5696_v37 = vpop.f32.mrf.mxu1  ;;  %3670 = vmatprep.subr.bf16.mxu0 %v6347_v53  ;;  %v6353_v43 = vld [vmem:[#allocation10 + $0x10c] ss:$16 sps:$4 sm:$0xff]  }
 0x8a9   :  { %v3339_v38 = vadd.f32 %v5716_v32, %v3298_v41  ;;  %v5697_v28 = vadd.f32 %v5696_v37, %v5695_v45  ;;  %v6348_v45 = vld [vmem:[#allocation10 + $0x100] ss:$16 sps:$4 sm:$0xff]   ;;  %3671 = vmatpush1.bf16.msra.mxu0 %v6345_v20  ;;  %v6351_v41 = vld [vmem:[#allocation10 + $0x108] ss:$16 sps:$4 sm:$0xff]  }
 0x8aa   :  { %v5718_v39 = vpop.f32.mrf.mxu0  ;;  %3672 = vmatprep.subr.bf16.mxu0 %v6353_v43 }
 0x8ab   :  { %v3301_v51 = vadd.f32 %v5697_v28, %v2458_v61  ;;  %v5719_v44 = vadd.f32 %v5718_v39, %v5717_v36  ;;  %v7105_v46 = vadd.f32 %v3339_v38, %v6969_v23  ;;  %v6342_v61 = vld [vmem:[#allocation10 + $0x120] ss:$16 sps:$4 sm:$0xff]  }
 0x8ac   :  { %3628 = vmatpush1.bf16.msra.mxu1 %v6342_v61 }
 0x8ad   :  { %v3342_v50 = vadd.f32 %v5719_v44, %v3301_v51  ;;  %3356 = vadd.xlane.f32.xlu0 %v7105_v46  ;;  %3629 = vmatprep.subr.bf16.mxu1 %v6350_v31  ;;  %v3347_v44 = vld [vmem:[#allocation13 + $0x40] ss:$0 sm:$0xff] }
 0x8ae   :  { %3673 = vmatpush1.bf16.msra.mxu0 %v6351_v41 }
 0x8af   :  { %v7109_v48 = vadd.f32 %v3342_v50, %v6972_v26 }
 0x8b0   :  { %3630 = vmatpush1.bf16.msra.mxu1 %v6348_v45 }
 0x8b1   :  { %3358 = vadd.xlane.f32.xlu1 %v7109_v48 }
 0x936   :  { %v3357_v49 = vpop.xlane.xlu0 %3356 }
 0x937   :  { %v3360_v52 = vmul.f32 0.0078125, %v3357_v49  ;;  %v3348_v49 = vld [vmem:[#allocation13 + $0x41] ss:$0 sm:$0xff] }
 0x939   :  { %v7113_v54 = vsub.f32 %v7105_v46, %v3360_v52 }
 0x93a   :  { %v3359_v55 = vpop.xlane.xlu1 %3358 }
 0x93b   :  { %v3361_v57 = vmul.f32 0.0078125, %v3359_v55  ;;  %v3364_v58 = vmul.f32 %v7113_v54, %v7113_v54 }
 0x93d   :  { %v7118_v23 = vsub.f32 %v7109_v48, %v3361_v57  ;;  %3366 = vadd.xlane.f32.xlu0 %v3364_v58 }
 0x93f   :  { %v3365_v26 = vmul.f32 %v7118_v23, %v7118_v23 }
 0x941   :  { %3368 = vadd.xlane.f32.xlu1 %v3365_v26 }
 0x9c6   :  { %v3367_v32 = vpop.xlane.xlu0 %3366 }
 0x9c7   :  { %v3370_v36 = vmul.f32 0.0078125, %v3367_v32 }
 0x9c9   :  { %v3372_v37 = vadd.f32 1e-05, %v3370_v36 }
 0x9ca   :  { %v3369_v38 = vpop.xlane.xlu1 %3368 }
 0x9cb   :  { %6558 = vrsqrt.f32 %v3372_v37  ;;  %v3371_v28 = vmul.f32 0.0078125, %v3369_v38 }
 0x9cd   :  { %v3373_v39 = vadd.f32 1e-05, %v3371_v28 }
 0x9cf   :  { %6560 = vrsqrt.f32 %v3373_v39 }
 0x9d8   :  { %v6559_v51 = vpop.eup %6558 }
 0x9d9   :  { %v3376_v50 = vmul.f32 %v6559_v51, %v7113_v54 }
 0x9db   :  { %v3378_v52 = vmul.f32 %v3376_v50, %v3347_v44 }
 0x9dc   :  { %v6561_v55 = vpop.eup %6560 }
 0x9dd   :  { %v3380_v57 = vadd.f32 %v3378_v52, %v3348_v49  ;;  %v3377_v58 = vmul.f32 %v6561_v55, %v7118_v23 }
 0x9df   :  { %v3379_v26 = vmul.f32 %v3377_v58, %v3347_v44  ;;  %v3384_v59 = vmul.f32 0.044715, %v3380_v57  ;;  %v3382_v21 = vmul.f32 0.5, %v3380_v57 }
 0x9e1   :  { %v3381_v60 = vadd.f32 %v3379_v26, %v3348_v49  ;;  %v3386_v62 = vmul.f32 %v3384_v59, %v3380_v57 }
 0x9e3   :  { %v3385_v1 = vmul.f32 0.044715, %v3381_v60  ;;  %v3388_v2 = vmul.f32 %v3386_v62, %v3380_v57  ;;  %v3383_v22 = vmul.f32 0.5, %v3381_v60 }
 0x9e5   :  { %v3387_v3 = vmul.f32 %v3385_v1, %v3381_v60  ;;  %v3390_v4 = vadd.f32 %v3388_v2, %v3380_v57 }
 0x9e7   :  { %v3389_v5 = vmul.f32 %v3387_v3, %v3381_v60  ;;  %v3392_v11 = vmul.f32 0.7978846, %v3390_v4 }
 0x9e9   :  { %v3391_v12 = vadd.f32 %v3389_v5, %v3381_v60  ;;  %6562 = vtanh.f32 %v3392_v11 }
 0x9eb   :  { %v3393_v14 = vmul.f32 0.7978846, %v3391_v12 }
 0x9ed   :  { %6564 = vtanh.f32 %v3393_v14 }
 0x9f6   :  { %v6563_v54 = vpop.eup %6562 }
 0x9f7   :  { %v3396_v18 = vadd.f32 1.0, %v6563_v54 }
 0x9f9   :  { %v3398_v34 = vmul.f32 %v3396_v18, %v3382_v21 }
 0x9fa   :  { %v6565_v40 = vpop.eup %6564 }
 0x9fb   :  { %v3397_v23 = vadd.f32 1.0, %v6565_v40 }
 0x9fd   :  { %v3399_v56 = vmul.f32 %v3397_v23, %v3383_v22 }
 0x9ff   :  { %v3433_v24 = vpack.c.bf16 %v3399_v56, %v3398_v34 }
 0xa01   :  { %3648 = vmatmul.mubr.bf16.vlgmr.msra.gmra.mxu1 %v3433_v24  ;;  %3691 = vmatmul.mubr.bf16.vlgmr.msra.gmra.mxu0 %v3433_v24 }
 0xac1   :  { %v3649_v29 = vpop.f32.mrf.mxu1  ;;  %v3692_v30 = vpop.f32.mrf.mxu0 }
 0xac2   :  { %v3650_v53 = vadd.f32 %v3649_v29, %v3438_v27  ;;  %v3693_v31 = vadd.f32 %v3692_v30, %v3446_v35 }
 0xac3   :  { %v3651_v61 = vpop.f32.mrf.mxu1  ;;  %v3694_v20 = vpop.f32.mrf.mxu0 }
 0xac4   :  { %v3652_v43 = vadd.f32 %v3651_v61, %v3442_v13  ;;  %v3695_v45 = vadd.f32 %v3694_v20, %v3450_v47  ;;  %v3701_v36 = vadd.f32 %v3650_v53, %v6992_v63  ;;  %v3703_v51 = vadd.f32 %v3693_v31, %v6997_v10 }
 0xac5   :  { %v3653_v41 = vpop.f32.mrf.mxu1  ;;  %v3696_v32 = vpop.f32.mrf.mxu0 }
 0xac6   :  { %v3702_v37 = vadd.f32 %v3652_v43, %v6995_v0  ;;  %v3654_v38 = vadd.f32 %v3653_v41, %v3438_v27  ;;  %v3697_v50 = vadd.f32 %v3696_v32, %v3446_v35  ;;  %v3704_v52 = vadd.f32 %v3695_v45, %v7007_v17  ;;  %v6354_v45 = vld [vmem:[#allocation11 + $0x178] sm:$0xff]  }
 0xac7   :  { %v3655_v28 = vpop.f32.mrf.mxu1  ;;  %v3698_v39 = vpop.f32.mrf.mxu0  ;;  %v6355_v41 = vld [vmem:[#allocation11 + $0x1f8] sm:$0xff]   ;;  %5720 = vmatprep.subr.bf16.mxu1 %v6354_v45 }
 0xac8   :  { %v3709_v44 = vadd.f32 %v3702_v37, %v3701_v36  ;;  %v3656_v49 = vadd.f32 %v3655_v28, %v3442_v13  ;;  %v3705_v55 = vadd.f32 %v3654_v38, %v7002_v15  ;;  %v3699_v58 = vadd.f32 %v3698_v39, %v3450_v47  ;;  %v6356_v32 = vld [vmem:[#allocation11 + $0x138] sm:$0xff]   ;;  %v6359_v38 = vld [vmem:[#allocation11 + $0x1f0] sm:$0xff]   ;;  %5742 = vmatprep.subr.bf16.mxu0 %v6355_v41 }
 0xac9   :  { %v3707_v59 = vadd.f32 %v3697_v50, %v7010_v16  ;;  %5721 = vmatpush3.bf16.msra.mxu1 %v6356_v32  ;;  %v6360_v28 = vld [vmem:[#allocation11 + $0x130] sm:$0xff]   ;;  %v6364_v50 = vld [vmem:[#allocation11 + $0x128] sm:$0xff]  }
 0xaca   :  { %v3706_v57 = vadd.f32 %v3656_v49, %v7005_v19  ;;  %v3710_v26 = vadd.f32 %v3709_v44, %v3703_v51  ;;  %v3708_v1 = vadd.f32 %v3699_v58, %v7015_v33  ;;  %v6361_v39 = vld [vmem:[#allocation11 + $0x1b0] sm:$0xff]   ;;  %v6363_v44 = vld [vmem:[#allocation11 + $0x1e8] sm:$0xff]   ;;  %v6369_v58 = vld [vmem:[#allocation11 + $0x1a0] sm:$0xff]  }
 0xacb   :  { %v6365_v49 = vld [vmem:[#allocation11 + $0x1a8] sm:$0xff]  }
 0xacc   :  { %v3714_v60 = vadd.f32 %v3706_v57, %v3705_v55  ;;  %v3711_v62 = vadd.f32 %v3710_v26, %v3704_v52  ;;  %v6370_v26 = vld [vmem:[#allocation11 + $0x158] sm:$0xff]  }
 0xace   :  { %3712 = vadd.xlane.f32.xlu0 %v3711_v62  ;;  %v3715_v2 = vadd.f32 %v3714_v60, %v3707_v59  ;;  %v6372_v60 = vld [vmem:[#allocation11 + $0x118] sm:$0xff]  }
 0xacf   :  { %v6373_v62 = vld [vmem:[#allocation11 + $0x198] sm:$0xff]  }
 0xad0   :  { %v3716_v3 = vadd.f32 %v3715_v2, %v3708_v1  ;;  %v6375_v2 = vld [vmem:[#allocation11 + $0x1d0] sm:$0xff]  }
 0xad2   :  { %3717 = vadd.xlane.f32.xlu1 %v3716_v3  ;;  %v6376_v3 = vld [vmem:[#allocation11 + $0x110] sm:$0xff]  }
 0xb57   :  { %v3713_v4 = vpop.xlane.xlu0 %3712 }
 0xb58   :  { %v3719_v5 = vmul.f32 0.001953125, %v3713_v4  ;;  %v6377_v4 = vld [vmem:[#allocation11 + $0x190] sm:$0xff]  }
 0xb5a   :  { %v7136_v11 = vsub.f32 %v3701_v36, %v3719_v5  ;;  %v7138_v12 = vsub.f32 %v3702_v37, %v3719_v5  ;;  %v7140_v14 = vsub.f32 %v3703_v51, %v3719_v5  ;;  %v7142_v18 = vsub.f32 %v3704_v52, %v3719_v5  ;;  %v6357_v36 = vld [vmem:[#allocation11 + $0x1b8] sm:$0xff]   ;;  %v6358_v37 = vld [vmem:[#allocation11 + $0x170] sm:$0xff]   ;;  %v6362_v51 = vld [vmem:[#allocation11 + $0x168] sm:$0xff]  }
 0xb5b   :  { %v3718_v54 = vpop.xlane.xlu1 %3717  ;;  %5743 = vmatpush3.bf16.msra.mxu0 %v6357_v36  ;;  %5722 = vmatprep.subr.bf16.mxu1 %v6358_v37  ;;  %v6366_v52 = vld [vmem:[#allocation11 + $0x160] sm:$0xff]   ;;  %v6378_v5 = vld [vmem:[#allocation11 + $0x148] sm:$0xff]  }
 0xb5c   :  { %v3720_v40 = vmul.f32 0.001953125, %v3718_v54  ;;  %v3729_v21 = vmul.f32 %v7136_v11, %v7136_v11  ;;  %v3730_v22 = vmul.f32 %v7138_v12, %v7138_v12  ;;  %v3731_v23 = vmul.f32 %v7140_v14, %v7140_v14  ;;  %5744 = vmatprep.subr.bf16.mxu0 %v6359_v38  ;;  %5723 = vmatpush3.bf16.msra.mxu1 %v6360_v28  ;;  %v6379_v54 = vld [vmem:[#allocation11 + $0x1c8] sm:$0xff]  }
 0xb5d   :  { %v3732_v27 = vmul.f32 %v7142_v18, %v7142_v18  ;;  %5724 = vmatprep.subr.bf16.mxu1 %v6362_v51 }
 0xb5e   :  { %v7150_v34 = vsub.f32 %v3705_v55, %v3720_v40  ;;  %v7152_v56 = vsub.f32 %v3706_v57, %v3720_v40  ;;  %v3737_v24 = vadd.f32 %v3730_v22, %v3729_v21  ;;  %v7154_v25 = vsub.f32 %v3707_v59, %v3720_v40  ;;  %v6367_v55 = vld [vmem:[#allocation11 + $0x1e0] sm:$0xff]   ;;  %v6371_v59 = vld [vmem:[#allocation11 + $0x1d8] sm:$0xff]   ;;  %v6381_v21 = vld [vmem:[#allocation11 + $0x188] sm:$0xff]  }
 0xb5f   :  { %v7158_v13 = vsub.f32 %v3708_v1, %v3720_v40  ;;  %5745 = vmatpush3.bf16.msra.mxu0 %v6361_v39  ;;  %v6368_v57 = vld [vmem:[#allocation11 + $0x120] sm:$0xff]   ;;  %v6374_v1 = vld [vmem:[#allocation11 + $0x150] sm:$0xff]   ;;  %v6380_v40 = vld [vmem:[#allocation11 + $0x108] sm:$0xff]  }
 0xb60   :  { %v3738_v35 = vadd.f32 %v3737_v24, %v3731_v23  ;;  %v3733_v29 = vmul.f32 %v7150_v34, %v7150_v34  ;;  %v3734_v30 = vmul.f32 %v7152_v56, %v7152_v56  ;;  %v3735_v53 = vmul.f32 %v7154_v25, %v7154_v25  ;;  %5746 = vmatprep.subr.bf16.mxu0 %v6363_v44  ;;  %v6382_v22 = vld [vmem:[#allocation11 + $0x140] sm:$0xff]  }
 0xb61   :  { %v3736_v20 = vmul.f32 %v7158_v13, %v7158_v13  ;;  %5725 = vmatpush3.bf16.msra.mxu1 %v6364_v50  ;;  %v6383_v23 = vld [vmem:[#allocation11 + $0x1c0] sm:$0xff]  }
 0xb62   :  { %v3739_v47 = vadd.f32 %v3738_v35, %v3732_v27  ;;  %v3742_v61 = vadd.f32 %v3734_v30, %v3733_v29  ;;  %5726 = vmatprep.subr.bf16.mxu1 %v6366_v52  ;;  %v6384_v24 = vld [vmem:[#allocation11 + $0x100] sm:$0xff]  }
 0xb63   :  { %5747 = vmatpush3.bf16.msra.mxu0 %v6365_v49  ;;  %v6385_v27 = vld [vmem:[#allocation11 + $0x180] sm:$0xff]  }
 0xb64   :  { %3740 = vadd.xlane.f32.xlu0 %v3739_v47  ;;  %v3743_v31 = vadd.f32 %v3742_v61, %v3735_v53  ;;  %5748 = vmatprep.subr.bf16.mxu0 %v6367_v55 }
 0xb65   :  { %5727 = vmatpush3.bf16.msra.mxu1 %v6368_v57 }
 0xb66   :  { %v3744_v43 = vadd.f32 %v3743_v31, %v3736_v20  ;;  %5728 = vmatprep.subr.bf16.mxu1 %v6370_v26  ;;  %v3352_v20 = vld [vmem:[#allocation13 + $0x43] ss:$8 sm:$0xf]  ;;  %v3354_v31 = vld [vmem:[#allocation13 + $0x44] ss:$8 sm:$0xf] }
 0xb67   :  { %5749 = vmatpush3.bf16.msra.mxu0 %v6369_v58  ;;  %v3777_v45 = vrot.slane %v3352_v20, %v6905_v9  ;;  %v3765_v41 = vrot.slane %v3352_v20, %v6899_v6  ;;  %v3798_v36 = vrot.slane %v3354_v31, %v6903_v8  ;;  %v3806_v28 = vrot.slane %v3354_v31, %v6905_v9 }
 0xb68   :  { %3745 = vadd.xlane.f32.xlu1 %v3744_v43  ;;  %5750 = vmatprep.subr.bf16.mxu0 %v6371_v59  ;;  %v3769_v43 = vrot.slane %v3352_v20, %v6903_v8  ;;  %v3794_v51 = vrot.slane %v3354_v31, %v6899_v6  ;;  %v3773_v50 = vrot.slane %v3352_v20, %v6901_v7 }
 0xb69   :  { %5729 = vmatpush3.bf16.msra.mxu1 %v6372_v60  ;;  %v3802_v58 = vrot.slane %v3354_v31, %v6901_v7 }
 0xb6a   :  { %5730 = vmatprep.subr.bf16.mxu1 %v6374_v1 }
 0xb6b   :  { %5751 = vmatpush3.bf16.msra.mxu0 %v6373_v62 }
 0xb6c   :  { %5752 = vmatprep.subr.bf16.mxu0 %v6375_v2 }
 0xb6d   :  { %5731 = vmatpush3.bf16.msra.mxu1 %v6376_v3 }
 0xb6e   :  { %5732 = vmatprep.subr.bf16.mxu1 %v6378_v5 }
 0xb6f   :  { %5753 = vmatpush3.bf16.msra.mxu0 %v6377_v4 }
 0xb70   :  { %5754 = vmatprep.subr.bf16.mxu0 %v6379_v54 }
 0xb71   :  { %5733 = vmatpush3.bf16.msra.mxu1 %v6380_v40 }
 0xb72   :  { %5734 = vmatprep.subr.bf16.mxu1 %v6382_v22 }
 0xb73   :  { %5755 = vmatpush3.bf16.msra.mxu0 %v6381_v21 }
 0xb74   :  { %5756 = vmatprep.subr.bf16.mxu0 %v6383_v23 }
 0xb75   :  { %5735 = vmatpush3.bf16.msra.mxu1 %v6384_v24 }
 0xb77   :  { %5757 = vmatpush3.bf16.msra.mxu0 %v6385_v27 }
 0xbed   :  { %v3741_v35 = vpop.xlane.xlu0 %3740 }
 0xbee   :  { %v3747_v29 = vmul.f32 0.001953125, %v3741_v35 }
 0xbf0   :  { %v3749_v30 = vadd.f32 1e-05, %v3747_v29 }
 0xbf1   :  { %v3746_v47 = vpop.xlane.xlu1 %3745 }
 0xbf2   :  { %6566 = vrsqrt.f32 %v3749_v30  ;;  %v3748_v53 = vmul.f32 0.001953125, %v3746_v47 }
 0xbf4   :  { %v3750_v61 = vadd.f32 1e-05, %v3748_v53 }
 0xbf6   :  { %6568 = vrsqrt.f32 %v3750_v61 }
 0xbff   :  { %v6567_v32 = vpop.eup %6566 }
 0xc00   :  { %v3754_v37 = vmul.f32 %v6567_v32, %v7138_v12  ;;  %v3756_v38 = vmul.f32 %v6567_v32, %v7142_v18  ;;  %v3753_v39 = vmul.f32 %v6567_v32, %v7136_v11  ;;  %v3755_v44 = vmul.f32 %v6567_v32, %v7140_v14 }
 0xc02   :  { %v3783_v49 = vmul.f32 %v3769_v43, %v3754_v37  ;;  %v3785_v52 = vmul.f32 %v3777_v45, %v3756_v38  ;;  %v3782_v55 = vmul.f32 %v3765_v41, %v3753_v39  ;;  %v3784_v62 = vmul.f32 %v3773_v50, %v3755_v44 }
 0xc03   :  { %v6569_v57 = vpop.eup %6568 }
 0xc04   :  { %v3758_v12 = vmul.f32 %v6569_v57, %v7152_v56  ;;  %v7181_v26 = vadd.f32 %v3798_v36, %v3783_v49  ;;  %v3760_v18 = vmul.f32 %v6569_v57, %v7158_v13  ;;  %v7184_v59 = vadd.f32 %v3806_v28, %v3785_v52 }
 0xc05   :  { %v3757_v11 = vmul.f32 %v6569_v57, %v7150_v34  ;;  %v7187_v60 = vadd.f32 %v3794_v51, %v3782_v55  ;;  %v3759_v14 = vmul.f32 %v6569_v57, %v7154_v25  ;;  %v7197_v25 = vadd.f32 %v3802_v58, %v3784_v62 }
 0xc06   :  { %v3787_v1 = vmul.f32 %v3769_v43, %v3758_v12  ;;  %v3828_v2 = vmul.f32 0.044715, %v7181_v26  ;;  %v3789_v3 = vmul.f32 %v3777_v45, %v3760_v18  ;;  %v3830_v4 = vmul.f32 0.044715, %v7184_v59 }
 0xc07   :  { %v3786_v56 = vmul.f32 %v3765_v41, %v3757_v11  ;;  %v3827_v40 = vmul.f32 0.044715, %v7187_v60  ;;  %v3788_v22 = vmul.f32 %v3773_v50, %v3759_v14  ;;  %v3829_v45 = vmul.f32 0.044715, %v7197_v25 }
 0xc08   :  { %v3816_v5 = vadd.f32 %v3798_v36, %v3787_v1  ;;  %v3836_v54 = vmul.f32 %v3828_v2, %v7181_v26  ;;  %v3818_v13 = vadd.f32 %v3806_v28, %v3789_v3  ;;  %v3838_v34 = vmul.f32 %v3830_v4, %v7184_v59 }
 0xc09   :  { %v7195_v21 = vadd.f32 %v3794_v51, %v3786_v56  ;;  %v3835_v53 = vmul.f32 %v3827_v40, %v7187_v60  ;;  %v3817_v61 = vadd.f32 %v3802_v58, %v3788_v22  ;;  %v3837_v50 = vmul.f32 %v3829_v45, %v7197_v25 }
 0xc0a   :  { %v3832_v23 = vmul.f32 0.044715, %v3816_v5  ;;  %v3844_v24 = vmul.f32 %v3836_v54, %v7181_v26  ;;  %v3834_v27 = vmul.f32 0.044715, %v3818_v13  ;;  %v3846_v35 = vmul.f32 %v3838_v34, %v7184_v59 }
 0xc0b   :  { %v3831_v29 = vmul.f32 0.044715, %v7195_v21  ;;  %v3843_v36 = vmul.f32 %v3835_v53, %v7187_v60  ;;  %v3833_v39 = vmul.f32 0.044715, %v3817_v61  ;;  %v3845_v12 = vmul.f32 %v3837_v50, %v7197_v25 }
 0xc0c   :  { %v3840_v30 = vmul.f32 %v3832_v23, %v3816_v5  ;;  %v3852_v47 = vadd.f32 %v3844_v24, %v7181_v26  ;;  %v3842_v20 = vmul.f32 %v3834_v27, %v3818_v13  ;;  %v3854_v31 = vadd.f32 %v3846_v35, %v7184_v59 }
 0xc0d   :  { %v3839_v43 = vmul.f32 %v3831_v29, %v7195_v21  ;;  %v3851_v44 = vadd.f32 %v3843_v36, %v7187_v60  ;;  %v3841_v55 = vmul.f32 %v3833_v39, %v3817_v61  ;;  %v3853_v62 = vadd.f32 %v3845_v12, %v7197_v25 }
 0xc0e   :  { %v3848_v41 = vmul.f32 %v3840_v30, %v3816_v5  ;;  %v3860_v32 = vmul.f32 0.7978846, %v3852_v47  ;;  %v3850_v37 = vmul.f32 %v3842_v20, %v3818_v13  ;;  %v3862_v38 = vmul.f32 0.7978846, %v3854_v31 }
 0xc0f   :  { %v3847_v28 = vmul.f32 %v3839_v43, %v7195_v21  ;;  %v3859_v58 = vmul.f32 0.7978846, %v3851_v44  ;;  %v3849_v14 = vmul.f32 %v3841_v55, %v3817_v61  ;;  %v3861_v2 = vmul.f32 0.7978846, %v3853_v62 }
 0xc10   :  { %v3856_v51 = vadd.f32 %v3848_v41, %v3816_v5  ;;  %6570 = vtanh.f32 %v3860_v32  ;;  %v3858_v49 = vadd.f32 %v3850_v37, %v3818_v13  ;;  %v3820_v23 = vmul.f32 0.5, %v7181_v26 }
 0xc11   :  { %6572 = vtanh.f32 %v3862_v38  ;;  %v3855_v52 = vadd.f32 %v3847_v28, %v7195_v21  ;;  %v3857_v1 = vadd.f32 %v3849_v14, %v3817_v61  ;;  %v3824_v24 = vmul.f32 0.5, %v3816_v5 }
 0xc12   :  { %v3864_v57 = vmul.f32 0.7978846, %v3856_v51  ;;  %v3866_v18 = vmul.f32 0.7978846, %v3858_v49  ;;  %v3822_v29 = vmul.f32 0.5, %v7184_v59  ;;  %v3826_v30 = vmul.f32 0.5, %v3818_v13 }
 0xc13   :  { %v3863_v11 = vmul.f32 0.7978846, %v3855_v52  ;;  %v3865_v3 = vmul.f32 0.7978846, %v3857_v1  ;;  %v3819_v43 = vmul.f32 0.5, %v7187_v60  ;;  %v3823_v37 = vmul.f32 0.5, %v7195_v21 }
 0xc14   :  { %6574 = vtanh.f32 %v3864_v57  ;;  %v3821_v28 = vmul.f32 0.5, %v7197_v25  ;;  %v3825_v39 = vmul.f32 0.5, %v3817_v61  ;;  %v3355_v61 = vld [vmem:[#allocation13 + $0x45] ss:$0 sm:$0xff] }
 0xc15   :  { %6576 = vtanh.f32 %v3866_v18 }
 0xc16   :  { %6578 = vtanh.f32 %v3859_v58 }
 0xc17   :  { %6580 = vtanh.f32 %v3863_v11 }
 0xc18   :  { %6582 = vtanh.f32 %v3861_v2 }
 0xc19   :  { %6584 = vtanh.f32 %v3865_v3 }
 0xc1d   :  { %v6571_v4 = vpop.eup %6570 }
 0xc1e   :  { %v6573_v56 = vpop.eup %6572  ;;  %v3876_v54 = vadd.f32 1.0, %v6571_v4 }
 0xc1f   :  { %v3878_v34 = vadd.f32 1.0, %v6573_v56 }
 0xc20   :  { %v3884_v20 = vmul.f32 %v3876_v54, %v3820_v23 }
 0xc21   :  { %v6575_v40 = vpop.eup %6574  ;;  %v3886_v32 = vmul.f32 %v3878_v34, %v3822_v29 }
 0xc22   :  { %v6577_v22 = vpop.eup %6576  ;;  %v3880_v27 = vadd.f32 1.0, %v6575_v40 }
 0xc23   :  { %v6579_v35 = vpop.eup %6578  ;;  %v3882_v47 = vadd.f32 1.0, %v6577_v22 }
 0xc24   :  { %v6581_v53 = vpop.eup %6580  ;;  %v3888_v31 = vmul.f32 %v3880_v27, %v3824_v24  ;;  %v3875_v45 = vadd.f32 1.0, %v6579_v35 }
 0xc25   :  { %v6583_v41 = vpop.eup %6582  ;;  %v3890_v36 = vmul.f32 %v3882_v47, %v3826_v30  ;;  %v3879_v38 = vadd.f32 1.0, %v6581_v53  ;;  %v6386_v30 = vld [vmem:[#allocation10 + $0x2e0] ss:$16 sps:$4 sm:$0xff]   ;;  %v6388_v47 = vld [vmem:[#allocation10 + $0x2e4] ss:$16 sps:$4 sm:$0xff]  }
 0xc26   :  { %v6585_v26 = vpop.eup %6584  ;;  %v3957_v5 = vpack.c.bf16 %v3888_v31, %v3884_v20  ;;  %v3877_v59 = vadd.f32 1.0, %v6583_v41  ;;  %v3883_v51 = vmul.f32 %v3875_v45, %v3819_v43  ;;  %v6389_v53 = vld [vmem:[#allocation10 + $0x2e8] ss:$16 sps:$4 sm:$0xff]   ;;  %v6391_v20 = vld [vmem:[#allocation10 + $0x2ec] ss:$16 sps:$4 sm:$0xff]   ;;  %4504 = vmatprep.subr.bf16.mxu1 %v6388_v47 }
 0xc27   :  { %v3959_v13 = vpack.c.bf16 %v3890_v36, %v3886_v32  ;;  %v3887_v44 = vmul.f32 %v3879_v38, %v3823_v37  ;;  %v3881_v50 = vadd.f32 1.0, %v6585_v26  ;;  %v6394_v31 = vld [vmem:[#allocation10 + $0x2c4] ss:$16 sps:$4 sm:$0xff]   ;;  %v6397_v43 = vld [vmem:[#allocation10 + $0x2cc] ss:$16 sps:$4 sm:$0xff]   ;;  %4547 = vmatprep.subr.bf16.mxu0 %v6391_v20 }
 0xc28   :  { %4184 = vmatprep.mubr.bf16.mxu1 %v3957_v5  ;;  %v3885_v49 = vmul.f32 %v3877_v59, %v3821_v28  ;;  %v6392_v45 = vld [vmem:[#allocation10 + $0x2c0] ss:$16 sps:$4 sm:$0xff]   ;;  %v6395_v41 = vld [vmem:[#allocation10 + $0x2c8] ss:$16 sps:$4 sm:$0xff]   ;;  %v6400_v32 = vld [vmem:[#allocation10 + $0x2a4] ss:$16 sps:$4 sm:$0xff]  }
 0xc29   :  { %4225 = vmatprep.mubr.bf16.mxu0 %v3959_v13  ;;  %v3956_v60 = vpack.c.bf16 %v3887_v44, %v3883_v51  ;;  %v3889_v52 = vmul.f32 %v3881_v50, %v3825_v39  ;;  %v6403_v36 = vld [vmem:[#allocation10 + $0x2ac] ss:$16 sps:$4 sm:$0xff]   ;;  %v6398_v37 = vld [vmem:[#allocation10 + $0x2a0] ss:$16 sps:$4 sm:$0xff]   ;;  %v6401_v38 = vld [vmem:[#allocation10 + $0x2a8] ss:$16 sps:$4 sm:$0xff]  }
 0xc2a   :  { %v6406_v26 = vld [vmem:[#allocation10 + $0x284] ss:$16 sps:$4 sm:$0xff]   ;;  %v6409_v5 = vld [vmem:[#allocation10 + $0x28c] ss:$16 sps:$4 sm:$0xff]   ;;  %v6404_v28 = vld [vmem:[#allocation10 + $0x280] ss:$16 sps:$4 sm:$0xff]  }
 0xc2b   :  { %4185 = vmatmul.mubr.bf16.vlgmr.msra.gmra.mxu1 %v3956_v60  ;;  %v3958_v55 = vpack.c.bf16 %v3889_v52, %v3885_v49  ;;  %v6407_v39 = vld [vmem:[#allocation10 + $0x288] ss:$16 sps:$4 sm:$0xff]   ;;  %v6412_v59 = vld [vmem:[#allocation10 + $0x264] ss:$16 sps:$4 sm:$0xff]   ;;  %v6415_v13 = vld [vmem:[#allocation10 + $0x26c] ss:$16 sps:$4 sm:$0xff]  }
 0xc2c   :  { %4536 = vmatprep.mubr.bf16.mxu1 %v6799_v42  ;;  %4505 = vmatpush1.bf16.msra.mxu1 %v6386_v30  ;;  %v6410_v51 = vld [vmem:[#allocation10 + $0x260] ss:$16 sps:$4 sm:$0xff]   ;;  %v6413_v44 = vld [vmem:[#allocation10 + $0x268] ss:$16 sps:$4 sm:$0xff]   ;;  %v6418_v50 = vld [vmem:[#allocation10 + $0x244] ss:$16 sps:$4 sm:$0xff]  }
 0xc2d   :  { %4226 = vmatmul.mubr.bf16.vlgmr.msra.gmra.mxu0 %v3958_v55  ;;  %4506 = vmatprep.subr.bf16.mxu1 %v6394_v31  ;;  %v6421_v60 = vld [vmem:[#allocation10 + $0x24c] ss:$16 sps:$4 sm:$0xff]   ;;  %v6416_v49 = vld [vmem:[#allocation10 + $0x240] ss:$16 sps:$4 sm:$0xff]   ;;  %v6419_v52 = vld [vmem:[#allocation10 + $0x248] ss:$16 sps:$4 sm:$0xff]  }
 0xc2e   :  { %4579 = vmatprep.mubr.bf16.mxu0 %v6799_v42  ;;  %4548 = vmatpush1.bf16.msra.mxu0 %v6389_v53  ;;  %v6424_v55 = vld [vmem:[#allocation10 + $0x224] ss:$16 sps:$4 sm:$0xff]  }
 0xc2f   :  { %4549 = vmatprep.subr.bf16.mxu0 %v6397_v43 }
 0xc30   :  { %4507 = vmatpush1.bf16.msra.mxu1 %v6392_v45 }
 0xc31   :  { %4508 = vmatprep.subr.bf16.mxu1 %v6400_v32 }
 0xc32   :  { %4550 = vmatpush1.bf16.msra.mxu0 %v6395_v41 }
 0xc33   :  { %4551 = vmatprep.subr.bf16.mxu0 %v6403_v36 }
 0xc34   :  { %4509 = vmatpush1.bf16.msra.mxu1 %v6398_v37 }
 0xc35   :  { %4510 = vmatprep.subr.bf16.mxu1 %v6406_v26 }
 0xc36   :  { %4552 = vmatpush1.bf16.msra.mxu0 %v6401_v38 }
 0xc37   :  { %4553 = vmatprep.subr.bf16.mxu0 %v6409_v5 }
 0xc38   :  { %4511 = vmatpush1.bf16.msra.mxu1 %v6404_v28 }
 0xc39   :  { %4512 = vmatprep.subr.bf16.mxu1 %v6412_v59 }
 0xc3a   :  { %4554 = vmatpush1.bf16.msra.mxu0 %v6407_v39 }
 0xc3b   :  { %4555 = vmatprep.subr.bf16.mxu0 %v6415_v13  ;;  %v4239_v13 = vld [vmem:[#allocation13 + $0x62] ss:$8 sm:$0xf] }
 0xc3c   :  { %4513 = vmatpush1.bf16.msra.mxu1 %v6410_v51  ;;  %v4327_v51 = vrot.slane %v4239_v13, %v6899_v6 }
 0xc3d   :  { %4514 = vmatprep.subr.bf16.mxu1 %v6418_v50  ;;  %v4331_v50 = vrot.slane %v4239_v13, %v6903_v8 }
 0xc3e   :  { %4556 = vmatpush1.bf16.msra.mxu0 %v6413_v44  ;;  %v4335_v44 = vrot.slane %v4239_v13, %v6901_v7 }
 0xc3f   :  { %4557 = vmatprep.subr.bf16.mxu0 %v6421_v60 }
 0xc40   :  { %4515 = vmatpush1.bf16.msra.mxu1 %v6416_v49 }
 0xc41   :  { %4516 = vmatprep.subr.bf16.mxu1 %v6424_v55 }
 0xc42   :  { %4558 = vmatpush1.bf16.msra.mxu0 %v6419_v52  ;;  %v4339_v52 = vrot.slane %v4239_v13, %v6905_v9 }
 0xceb   :  { %v5736_v21 = vpop.f32.mrf.mxu1 }
 0xced   :  { %v5758_v25 = vpop.f32.mrf.mxu0  ;;  %v5737_v57 = vpop.f32.mrf.mxu1 }
 0xcee   :  { %v5738_v58 = vadd.f32 %v5737_v57, %v5736_v21  ;;  %v6427_v21 = vld [vmem:[#allocation10 + $0x22c] ss:$16 sps:$4 sm:$0xff]   ;;  %v6430_v57 = vld [vmem:[#allocation10 + $0x204] ss:$16 sps:$4 sm:$0xff]  }
 0xcef   :  { %v5759_v12 = vpop.f32.mrf.mxu0  ;;  %v5739_v18 = vpop.f32.mrf.mxu1  ;;  %4559 = vmatprep.subr.bf16.mxu0 %v6427_v21 }
 0xcf0   :  { %v4187_v11 = vadd.f32 %v5738_v58, %v3355_v61  ;;  %v5760_v14 = vadd.f32 %v5759_v12, %v5758_v25  ;;  %v6422_v25 = vld [vmem:[#allocation10 + $0x220] ss:$16 sps:$4 sm:$0xff]   ;;  %v6433_v58 = vld [vmem:[#allocation10 + $0x20c] ss:$16 sps:$4 sm:$0xff]  }
 0xcf1   :  { %v5761_v62 = vpop.f32.mrf.mxu0  ;;  %v5740_v1 = vpop.f32.mrf.mxu1  ;;  %4517 = vmatpush1.bf16.msra.mxu1 %v6422_v25  ;;  %v6428_v12 = vld [vmem:[#allocation10 + $0x200] ss:$16 sps:$4 sm:$0xff]  }
 0xcf2   :  { %v4228_v2 = vadd.f32 %v5760_v14, %v4187_v11  ;;  %v5741_v3 = vadd.f32 %v5740_v1, %v5739_v18  ;;  %4518 = vmatprep.subr.bf16.mxu1 %v6430_v57  ;;  %v6431_v18 = vld [vmem:[#allocation10 + $0x208] ss:$16 sps:$4 sm:$0xff]  }
 0xcf3   :  { %v5762_v4 = vpop.f32.mrf.mxu0 }
 0xcf4   :  { %v4190_v56 = vadd.f32 %v5741_v3, %v3355_v61  ;;  %v5763_v54 = vadd.f32 %v5762_v4, %v5761_v62  ;;  %v7222_v40 = vadd.f32 %v4228_v2, %v7105_v46  ;;  %v6425_v61 = vld [vmem:[#allocation10 + $0x228] ss:$16 sps:$4 sm:$0xff]  }
 0xcf5   :  { %4560 = vmatpush1.bf16.msra.mxu0 %v6425_v61  ;;  %4519 = vmatpush1.bf16.msra.mxu1 %v6428_v12 }
 0xcf6   :  { %v4231_v42 = vadd.f32 %v5763_v54, %v4190_v56  ;;  %4245 = vadd.xlane.f32.xlu0 %v7222_v40  ;;  %4561 = vmatprep.subr.bf16.mxu0 %v6433_v58  ;;  %v4236_v56 = vld [vmem:[#allocation13 + $0x60] ss:$0 sm:$0xff] }
 0xcf8   :  { %v7226_v34 = vadd.f32 %v4231_v42, %v7109_v48  ;;  %v4237_v42 = vld [vmem:[#allocation13 + $0x61] ss:$0 sm:$0xff] }
 0xcf9   :  { %4562 = vmatpush1.bf16.msra.mxu0 %v6431_v18 }
 0xcfa   :  { %4247 = vadd.xlane.f32.xlu1 %v7226_v34 }
 0xd7f   :  { %v4246_v22 = vpop.xlane.xlu0 %4245 }
 0xd80   :  { %v4249_v23 = vmul.f32 0.0078125, %v4246_v22 }
 0xd82   :  { %v7230_v24 = vsub.f32 %v7222_v40, %v4249_v23 }
 0xd83   :  { %v4248_v27 = vpop.xlane.xlu1 %4247 }
 0xd84   :  { %v4250_v35 = vmul.f32 0.0078125, %v4248_v27  ;;  %v4253_v29 = vmul.f32 %v7230_v24, %v7230_v24 }
 0xd86   :  { %v7235_v46 = vsub.f32 %v7226_v34, %v4250_v35  ;;  %4255 = vadd.xlane.f32.xlu0 %v4253_v29 }
 0xd88   :  { %v4254_v48 = vmul.f32 %v7235_v46, %v7235_v46 }
 0xd8a   :  { %4257 = vadd.xlane.f32.xlu1 %v4254_v48 }
 0xe0f   :  { %v4256_v11 = vpop.xlane.xlu0 %4255 }
 0xe10   :  { %v4259_v14 = vmul.f32 0.0078125, %v4256_v11 }
 0xe12   :  { %v4261_v62 = vadd.f32 1e-05, %v4259_v14 }
 0xe13   :  { %v4258_v1 = vpop.xlane.xlu1 %4257 }
 0xe14   :  { %6586 = vrsqrt.f32 %v4261_v62  ;;  %v4260_v2 = vmul.f32 0.0078125, %v4258_v1 }
 0xe16   :  { %v4262_v3 = vadd.f32 1e-05, %v4260_v2 }
 0xe18   :  { %6588 = vrsqrt.f32 %v4262_v3 }
 0xe21   :  { %v6587_v4 = vpop.eup %6586 }
 0xe22   :  { %v4265_v54 = vmul.f32 %v6587_v4, %v7230_v24 }
 0xe24   :  { %v4267_v22 = vmul.f32 %v4265_v54, %v4236_v56 }
 0xe25   :  { %v6589_v23 = vpop.eup %6588 }
 0xe26   :  { %v4269_v27 = vadd.f32 %v4267_v22, %v4237_v42  ;;  %v4266_v35 = vmul.f32 %v6589_v23, %v7235_v46 }
 0xe28   :  { %v4268_v29 = vmul.f32 %v4266_v35, %v4236_v56  ;;  %v4273_v48 = vmul.f32 0.044715, %v4269_v27  ;;  %v4271_v26 = vmul.f32 0.5, %v4269_v27 }
 0xe2a   :  { %v4270_v30 = vadd.f32 %v4268_v29, %v4237_v42  ;;  %v4275_v47 = vmul.f32 %v4273_v48, %v4269_v27 }
 0xe2c   :  { %v4274_v53 = vmul.f32 0.044715, %v4270_v30  ;;  %v4277_v20 = vmul.f32 %v4275_v47, %v4269_v27  ;;  %v4272_v5 = vmul.f32 0.5, %v4270_v30 }
 0xe2e   :  { %v4276_v31 = vmul.f32 %v4274_v53, %v4270_v30  ;;  %v4279_v43 = vadd.f32 %v4277_v20, %v4269_v27 }
 0xe30   :  { %v4278_v45 = vmul.f32 %v4276_v31, %v4270_v30  ;;  %v4281_v41 = vmul.f32 0.7978846, %v4279_v43 }
 0xe32   :  { %v4280_v32 = vadd.f32 %v4278_v45, %v4270_v30  ;;  %6590 = vtanh.f32 %v4281_v41 }
 0xe34   :  { %v4282_v36 = vmul.f32 0.7978846, %v4280_v32 }
 0xe36   :  { %6592 = vtanh.f32 %v4282_v36 }
 0xe3f   :  { %v6591_v24 = vpop.eup %6590 }
 0xe40   :  { %v4285_v37 = vadd.f32 1.0, %v6591_v24 }
 0xe42   :  { %v4287_v28 = vmul.f32 %v4285_v37, %v4271_v26 }
 0xe43   :  { %v6593_v38 = vpop.eup %6592 }
 0xe44   :  { %v4286_v46 = vadd.f32 1.0, %v6593_v38 }
 0xe46   :  { %v4288_v39 = vmul.f32 %v4286_v46, %v4272_v5 }
 0xe48   :  { %v4322_v59 = vpack.c.bf16 %v4288_v39, %v4287_v28 }
 0xe4a   :  { %4537 = vmatmul.mubr.bf16.vlgmr.msra.gmra.mxu1 %v4322_v59  ;;  %4580 = vmatmul.mubr.bf16.vlgmr.msra.gmra.mxu0 %v4322_v59 }
 0xf0a   :  { %v4538_v60 = vpop.f32.mrf.mxu1  ;;  %v4581_v49 = vpop.f32.mrf.mxu0 }
 0xf0b   :  { %v4539_v55 = vadd.f32 %v4538_v60, %v4327_v51  ;;  %v4582_v61 = vadd.f32 %v4581_v49, %v4335_v44  ;;  %v6435_v60 = vld [vmem:[#allocation11 + $0x2f8] sm:$0xff]  }
 0xf0c   :  { %v4540_v21 = vpop.f32.mrf.mxu1  ;;  %v4583_v25 = vpop.f32.mrf.mxu0  ;;  %v6436_v49 = vld [vmem:[#allocation11 + $0x238] sm:$0xff]   ;;  %5786 = vmatprep.subr.bf16.mxu0 %v6435_v60 }
 0xf0d   :  { %v4541_v57 = vadd.f32 %v4540_v21, %v4331_v50  ;;  %v4584_v58 = vadd.f32 %v4583_v25, %v4339_v52  ;;  %v4590_v11 = vadd.f32 %v4539_v55, %v6992_v63  ;;  %v4592_v3 = vadd.f32 %v4582_v61, %v6997_v10  ;;  %v6438_v55 = vld [vmem:[#allocation11 + $0x270] sm:$0xff]  }
 0xf0e   :  { %v4542_v12 = vpop.f32.mrf.mxu1  ;;  %v4585_v18 = vpop.f32.mrf.mxu0  ;;  %v6439_v21 = vld [vmem:[#allocation11 + $0x2f0] sm:$0xff]  }
 0xf0f   :  { %v4591_v14 = vadd.f32 %v4541_v57, %v6995_v0  ;;  %v4543_v62 = vadd.f32 %v4542_v12, %v4327_v51  ;;  %v4586_v56 = vadd.f32 %v4585_v18, %v4335_v44  ;;  %v4593_v42 = vadd.f32 %v4584_v58, %v7007_v17  ;;  %v6440_v25 = vld [vmem:[#allocation11 + $0x230] sm:$0xff]   ;;  %v6442_v57 = vld [vmem:[#allocation11 + $0x268] sm:$0xff]  }
 0xf10   :  { %v4544_v1 = vpop.f32.mrf.mxu1  ;;  %v4587_v2 = vpop.f32.mrf.mxu0  ;;  %v6441_v61 = vld [vmem:[#allocation11 + $0x2b0] sm:$0xff]   ;;  %v6443_v58 = vld [vmem:[#allocation11 + $0x2e8] sm:$0xff]  }
 0xf11   :  { %v4598_v4 = vadd.f32 %v4591_v14, %v4590_v11  ;;  %v4545_v54 = vadd.f32 %v4544_v1, %v4331_v50  ;;  %v4594_v22 = vadd.f32 %v4543_v62, %v7002_v15  ;;  %v4588_v27 = vadd.f32 %v4587_v2, %v4339_v52  ;;  %v6434_v50 = vld [vmem:[#allocation11 + $0x278] sm:$0xff]   ;;  %v6444_v12 = vld [vmem:[#allocation11 + $0x228] sm:$0xff]   ;;  %v6448_v62 = vld [vmem:[#allocation11 + $0x220] sm:$0xff]  }
 0xf12   :  { %v4596_v63 = vadd.f32 %v4586_v56, %v7010_v16  ;;  %v6437_v52 = vld [vmem:[#allocation11 + $0x2b8] sm:$0xff]   ;;  %5764 = vmatprep.subr.bf16.mxu1 %v6434_v50  ;;  %v6445_v18 = vld [vmem:[#allocation11 + $0x2a8] sm:$0xff]   ;;  %v6449_v1 = vld [vmem:[#allocation11 + $0x2a0] sm:$0xff]  }
 0xf13   :  { %v4595_v23 = vadd.f32 %v4545_v54, %v7005_v19  ;;  %v4599_v35 = vadd.f32 %v4598_v4, %v4592_v3  ;;  %v4597_v48 = vadd.f32 %v4588_v27, %v7015_v33  ;;  %5765 = vmatpush3.bf16.msra.mxu1 %v6436_v49  ;;  %5787 = vmatpush3.bf16.msra.mxu0 %v6437_v52  ;;  %v6450_v2 = vld [vmem:[#allocation11 + $0x258] sm:$0xff]   ;;  %v6454_v54 = vld [vmem:[#allocation11 + $0x250] sm:$0xff]   ;;  %v6458_v27 = vld [vmem:[#allocation11 + $0x248] sm:$0xff]  }
 0xf14   :  { %5766 = vmatprep.subr.bf16.mxu1 %v6438_v55  ;;  %5788 = vmatprep.subr.bf16.mxu0 %v6439_v21  ;;  %v6452_v4 = vld [vmem:[#allocation11 + $0x218] sm:$0xff]  }
 0xf15   :  { %v4603_v29 = vadd.f32 %v4595_v23, %v4594_v22  ;;  %v4600_v0 = vadd.f32 %v4599_v35, %v4593_v42  ;;  %v6453_v56 = vld [vmem:[#allocation11 + $0x298] sm:$0xff]   ;;  %v6459_v35 = vld [vmem:[#allocation11 + $0x2c8] sm:$0xff]  }
 0xf17   :  { %4601 = vadd.xlane.f32.xlu0 %v4600_v0  ;;  %v4604_v30 = vadd.f32 %v4603_v29, %v4596_v63  ;;  %5767 = vmatpush3.bf16.msra.mxu1 %v6440_v25  ;;  %v6461_v29 = vld [vmem:[#allocation11 + $0x288] sm:$0xff]   ;;  %v6462_v0 = vld [vmem:[#allocation11 + $0x240] sm:$0xff]  }
 0xf18   :  { %5789 = vmatpush3.bf16.msra.mxu0 %v6441_v61  ;;  %5768 = vmatprep.subr.bf16.mxu1 %v6442_v57 }
 0xf19   :  { %v4605_v10 = vadd.f32 %v4604_v30, %v4597_v48  ;;  %5790 = vmatprep.subr.bf16.mxu0 %v6443_v58  ;;  %v6464_v30 = vld [vmem:[#allocation11 + $0x200] sm:$0xff]  }
 0xf1b   :  { %4606 = vadd.xlane.f32.xlu1 %v4605_v10  ;;  %5769 = vmatpush3.bf16.msra.mxu1 %v6444_v12  ;;  %v6465_v10 = vld [vmem:[#allocation11 + $0x280] sm:$0xff]  }
 0xf1c   :  { %5791 = vmatpush3.bf16.msra.mxu0 %v6445_v18 }
 0xfa0   :  { %v4602_v47 = vpop.xlane.xlu0 %4601 }
 0xfa1   :  { %v4608_v53 = vmul.f32 0.001953125, %v4602_v47 }
 0xfa3   :  { %v7253_v20 = vsub.f32 %v4590_v11, %v4608_v53  ;;  %v7255_v17 = vsub.f32 %v4591_v14, %v4608_v53  ;;  %v7257_v15 = vsub.f32 %v4592_v3, %v4608_v53  ;;  %v7259_v31 = vsub.f32 %v4593_v42, %v4608_v53  ;;  %v6446_v11 = vld [vmem:[#allocation11 + $0x260] sm:$0xff]   ;;  %v6451_v3 = vld [vmem:[#allocation11 + $0x2d8] sm:$0xff]   ;;  %v6455_v42 = vld [vmem:[#allocation11 + $0x2d0] sm:$0xff]  }
 0xfa4   :  { %v4607_v19 = vpop.xlane.xlu1 %4606  ;;  %v6447_v14 = vld [vmem:[#allocation11 + $0x2e0] sm:$0xff]   ;;  %5770 = vmatprep.subr.bf16.mxu1 %v6446_v11 }
 0xfa5   :  { %v4609_v16 = vmul.f32 0.001953125, %v4607_v19  ;;  %v4618_v43 = vmul.f32 %v7253_v20, %v7253_v20  ;;  %v4619_v33 = vmul.f32 %v7255_v17, %v7255_v17  ;;  %v4620_v45 = vmul.f32 %v7257_v15, %v7257_v15  ;;  %5792 = vmatprep.subr.bf16.mxu0 %v6447_v14  ;;  %5771 = vmatpush3.bf16.msra.mxu1 %v6448_v62 }
 0xfa6   :  { %v4621_v37 = vmul.f32 %v7259_v31, %v7259_v31  ;;  %5793 = vmatpush3.bf16.msra.mxu0 %v6449_v1  ;;  %5772 = vmatprep.subr.bf16.mxu1 %v6450_v2 }
 0xfa7   :  { %v7267_v41 = vsub.f32 %v4594_v22, %v4609_v16  ;;  %v7269_v32 = vsub.f32 %v4595_v23, %v4609_v16  ;;  %v4626_v36 = vadd.f32 %v4619_v33, %v4618_v43  ;;  %v7271_v24 = vsub.f32 %v4596_v63, %v4609_v16  ;;  %5794 = vmatprep.subr.bf16.mxu0 %v6451_v3  ;;  %v6456_v22 = vld [vmem:[#allocation11 + $0x210] sm:$0xff]   ;;  %v6460_v63 = vld [vmem:[#allocation11 + $0x208] sm:$0xff]  }
 0xfa8   :  { %v7275_v26 = vsub.f32 %v4597_v48, %v4609_v16  ;;  %v6457_v23 = vld [vmem:[#allocation11 + $0x290] sm:$0xff]   ;;  %v6463_v48 = vld [vmem:[#allocation11 + $0x2c0] sm:$0xff]  }
 0xfa9   :  { %v4627_v38 = vadd.f32 %v4626_v36, %v4620_v45  ;;  %v4622_v5 = vmul.f32 %v7267_v41, %v7267_v41  ;;  %v4623_v46 = vmul.f32 %v7269_v32, %v7269_v32  ;;  %v4624_v39 = vmul.f32 %v7271_v24, %v7271_v24  ;;  %5773 = vmatpush3.bf16.msra.mxu1 %v6452_v4  ;;  %v4241_v45 = vld [vmem:[#allocation13 + $0x63] ss:$8 sm:$0xf]  ;;  %v4243_v36 = vld [vmem:[#allocation13 + $0x64] ss:$8 sm:$0xf] }
 0xfaa   :  { %v4625_v13 = vmul.f32 %v7275_v26, %v7275_v26  ;;  %5795 = vmatpush3.bf16.msra.mxu0 %v6453_v56  ;;  %5774 = vmatprep.subr.bf16.mxu1 %v6454_v54  ;;  %v4662_v60 = vrot.slane %v4241_v45, %v6901_v7 }
 0xfab   :  { %v4628_v28 = vadd.f32 %v4627_v38, %v4621_v37  ;;  %v4631_v59 = vadd.f32 %v4623_v46, %v4622_v5  ;;  %5796 = vmatprep.subr.bf16.mxu0 %v6455_v42  ;;  %v4658_v37 = vrot.slane %v4241_v45, %v6903_v8  ;;  %v4666_v38 = vrot.slane %v4241_v45, %v6905_v9 }
 0xfac   :  { %v4654_v5 = vrot.slane %v4241_v45, %v6899_v6 }
 0xfad   :  { %4629 = vadd.xlane.f32.xlu0 %v4628_v28  ;;  %v4632_v51 = vadd.f32 %v4631_v59, %v4624_v39  ;;  %5775 = vmatpush3.bf16.msra.mxu1 %v6456_v22  ;;  %v4687_v28 = vrot.slane %v4243_v36, %v6903_v8  ;;  %v4691_v8 = vrot.slane %v4243_v36, %v6901_v7 }
 0xfae   :  { %5797 = vmatpush3.bf16.msra.mxu0 %v6457_v23  ;;  %5776 = vmatprep.subr.bf16.mxu1 %v6458_v27 }
 0xfaf   :  { %v4633_v44 = vadd.f32 %v4632_v51, %v4625_v13  ;;  %5798 = vmatprep.subr.bf16.mxu0 %v6459_v35  ;;  %v4695_v13 = vrot.slane %v4243_v36, %v6905_v9 }
 0xfb1   :  { %4634 = vadd.xlane.f32.xlu1 %v4633_v44  ;;  %5777 = vmatpush3.bf16.msra.mxu1 %v6460_v63  ;;  %v4683_v44 = vrot.slane %v4243_v36, %v6899_v6 }
 0xfb2   :  { %5799 = vmatpush3.bf16.msra.mxu0 %v6461_v29  ;;  %5778 = vmatprep.subr.bf16.mxu1 %v6462_v0 }
 0xfb3   :  { %5800 = vmatprep.subr.bf16.mxu0 %v6463_v48 }
 0xfb5   :  { %5779 = vmatpush3.bf16.msra.mxu1 %v6464_v30 }
 0xfb6   :  { %5801 = vmatpush3.bf16.msra.mxu0 %v6465_v10 }
0x1036   :  { %v4630_v47 = vpop.xlane.xlu0 %4629 }
0x1037   :  { %v4636_v53 = vmul.f32 0.001953125, %v4630_v47 }
0x1039   :  { %v4638_v19 = vadd.f32 1e-05, %v4636_v53 }
0x103a   :  { %v4635_v16 = vpop.xlane.xlu1 %4634 }
0x103b   :  { %6594 = vrsqrt.f32 %v4638_v19  ;;  %v4637_v43 = vmul.f32 0.001953125, %v4635_v16 }
0x103d   :  { %v4639_v33 = vadd.f32 1e-05, %v4637_v43 }
0x103f   :  { %6596 = vrsqrt.f32 %v4639_v33 }
0x1048   :  { %v6595_v46 = vpop.eup %6594 }
0x1049   :  { %v4643_v39 = vmul.f32 %v6595_v46, %v7255_v17  ;;  %v4645_v59 = vmul.f32 %v6595_v46, %v7259_v31  ;;  %v4642_v51 = vmul.f32 %v6595_v46, %v7253_v20  ;;  %v4644_v50 = vmul.f32 %v6595_v46, %v7257_v15 }
0x104b   :  { %v4672_v49 = vmul.f32 %v4658_v37, %v4643_v39  ;;  %v4674_v52 = vmul.f32 %v4666_v38, %v4645_v59  ;;  %v4671_v55 = vmul.f32 %v4654_v5, %v4642_v51  ;;  %v4673_v61 = vmul.f32 %v4662_v60, %v4644_v50 }
0x104c   :  { %v6597_v21 = vpop.eup %6596 }
0x104d   :  { %v4647_v17 = vmul.f32 %v6597_v21, %v7269_v32  ;;  %v7298_v25 = vadd.f32 %v4687_v28, %v4672_v49  ;;  %v4649_v9 = vmul.f32 %v6597_v21, %v7275_v26  ;;  %v7301_v31 = vadd.f32 %v4695_v13, %v4674_v52 }
0x104e   :  { %v4646_v6 = vmul.f32 %v6597_v21, %v7267_v41  ;;  %v7304_v20 = vadd.f32 %v4683_v44, %v4671_v55  ;;  %v4648_v15 = vmul.f32 %v6597_v21, %v7271_v24  ;;  %v7314_v24 = vadd.f32 %v4691_v8, %v4673_v61 }
0x104f   :  { %v4676_v57 = vmul.f32 %v4658_v37, %v4647_v17  ;;  %v4717_v58 = vmul.f32 0.044715, %v7298_v25  ;;  %v4678_v12 = vmul.f32 %v4666_v38, %v4649_v9  ;;  %v4719_v7 = vmul.f32 0.044715, %v7301_v31 }
0x1050   :  { %v4675_v32 = vmul.f32 %v4654_v5, %v4646_v6  ;;  %v4716_v14 = vmul.f32 0.044715, %v7304_v20  ;;  %v4677_v1 = vmul.f32 %v4662_v60, %v4648_v15  ;;  %v4718_v0 = vmul.f32 0.044715, %v7314_v24 }
0x1051   :  { %v4705_v18 = vadd.f32 %v4687_v28, %v4676_v57  ;;  %v4725_v11 = vmul.f32 %v4717_v58, %v7298_v25  ;;  %v4707_v26 = vadd.f32 %v4695_v13, %v4678_v12  ;;  %v4727_v41 = vmul.f32 %v4719_v7, %v7301_v31 }
0x1052   :  { %v7312_v62 = vadd.f32 %v4683_v44, %v4675_v32  ;;  %v4724_v23 = vmul.f32 %v4716_v14, %v7304_v20  ;;  %v4706_v27 = vadd.f32 %v4691_v8, %v4677_v1  ;;  %v4726_v45 = vmul.f32 %v4718_v0, %v7314_v24 }
0x1053   :  { %v4721_v2 = vmul.f32 0.044715, %v4705_v18  ;;  %v4733_v3 = vmul.f32 %v4725_v11, %v7298_v25  ;;  %v4723_v4 = vmul.f32 0.044715, %v4707_v26  ;;  %v4735_v56 = vmul.f32 %v4727_v41, %v7301_v31 }
0x1054   :  { %v4720_v54 = vmul.f32 0.044715, %v7312_v62  ;;  %v4732_v10 = vmul.f32 %v4724_v23, %v7304_v20  ;;  %v4722_v16 = vmul.f32 0.044715, %v4706_v27  ;;  %v4734_v28 = vmul.f32 %v4726_v45, %v7314_v24 }
0x1055   :  { %v4729_v42 = vmul.f32 %v4721_v2, %v4705_v18  ;;  %v4741_v22 = vadd.f32 %v4733_v3, %v7298_v25  ;;  %v4731_v35 = vmul.f32 %v4723_v4, %v4707_v26  ;;  %v4743_v63 = vadd.f32 %v4735_v56, %v7301_v31 }
0x1056   :  { %v4728_v29 = vmul.f32 %v4720_v54, %v7312_v62  ;;  %v4740_v33 = vadd.f32 %v4732_v10, %v7304_v20  ;;  %v4730_v38 = vmul.f32 %v4722_v16, %v4706_v27  ;;  %v4742_v51 = vadd.f32 %v4734_v28, %v7314_v24 }
0x1057   :  { %v4737_v48 = vmul.f32 %v4729_v42, %v4705_v18  ;;  %v4749_v30 = vmul.f32 0.7978846, %v4741_v22  ;;  %v4739_v47 = vmul.f32 %v4731_v35, %v4707_v26  ;;  %v4751_v53 = vmul.f32 0.7978846, %v4743_v63 }
0x1058   :  { %v4736_v19 = vmul.f32 %v4728_v29, %v7312_v62  ;;  %v4748_v46 = vmul.f32 0.7978846, %v4740_v33  ;;  %v4738_v13 = vmul.f32 %v4730_v38, %v4706_v27  ;;  %v4750_v50 = vmul.f32 0.7978846, %v4742_v51 }
0x1059   :  { %v4745_v43 = vadd.f32 %v4737_v48, %v4705_v18  ;;  %6598 = vtanh.f32 %v4749_v30  ;;  %v4747_v36 = vadd.f32 %v4739_v47, %v4707_v26  ;;  %v4709_v9 = vmul.f32 0.5, %v7298_v25  ;;  %v4244_v30 = vld [vmem:[#allocation13 + $0x65] ss:$0 sm:$0xff] }
0x105a   :  { %6600 = vtanh.f32 %v4751_v53  ;;  %v4744_v37 = vadd.f32 %v4736_v19, %v7312_v62  ;;  %v4746_v44 = vadd.f32 %v4738_v13, %v4706_v27  ;;  %v4713_v6 = vmul.f32 0.5, %v4705_v18  ;;  %v6615_v13 = vld [vmem:[%s7348_s1 + $0x8] sm:$0xff] }
0x105b   :  { %v4753_v5 = vmul.f32 0.7978846, %v4745_v43  ;;  %v4755_v39 = vmul.f32 0.7978846, %v4747_v36  ;;  %v4711_v57 = vmul.f32 0.5, %v7301_v31  ;;  %v4715_v58 = vmul.f32 0.5, %v4707_v26 }
0x105c   :  { %v4752_v59 = vmul.f32 0.7978846, %v4744_v37  ;;  %v4754_v60 = vmul.f32 0.7978846, %v4746_v44  ;;  %v4708_v14 = vmul.f32 0.5, %v7304_v20  ;;  %v4712_v4 = vmul.f32 0.5, %v7312_v62 }
0x105d   :  { %6602 = vtanh.f32 %v4753_v5  ;;  %v4710_v54 = vmul.f32 0.5, %v7314_v24  ;;  %v4714_v42 = vmul.f32 0.5, %v4706_v27 }
0x105e   :  { %6604 = vtanh.f32 %v4755_v39 }
0x105f   :  { %6606 = vtanh.f32 %v4748_v46  ;;  %v6614_v46 = vld [vmem:[%s7348_s1] sm:$0xff] }
0x1060   :  { %6608 = vtanh.f32 %v4752_v59 }
0x1061   :  { %6610 = vtanh.f32 %v4750_v50 }
0x1062   :  { %6612 = vtanh.f32 %v4754_v60 }
0x1066   :  { %v6599_v49 = vpop.eup %6598 }
0x1067   :  { %v6601_v52 = vpop.eup %6600  ;;  %v4765_v55 = vadd.f32 1.0, %v6599_v49 }
0x1068   :  { %v4767_v8 = vadd.f32 1.0, %v6601_v52 }
0x1069   :  { %v4773_v32 = vmul.f32 %v4765_v55, %v4709_v9 }
0x106a   :  { %v6603_v21 = vpop.eup %6602  ;;  %v4775_v2 = vmul.f32 %v4767_v8, %v4711_v57 }
0x106b   :  { %v6605_v17 = vpop.eup %6604  ;;  %v4769_v15 = vadd.f32 1.0, %v6603_v21 }
0x106c   :  { %v6607_v61 = vpop.eup %6606  ;;  %v4771_v12 = vadd.f32 1.0, %v6605_v17 }
0x106d   :  { %v6609_v7 = vpop.eup %6608  ;;  %v4777_v11 = vmul.f32 %v4769_v15, %v4713_v6  ;;  %v4764_v41 = vadd.f32 1.0, %v6607_v61 }
0x106e   :  { %v6611_v1 = vpop.eup %6610  ;;  %v4779_v3 = vmul.f32 %v4771_v12, %v4715_v58  ;;  %v4768_v56 = vadd.f32 1.0, %v6609_v7 }
0x106f   :  { %v6613_v25 = vpop.eup %6612  ;;  %v4846_v18 = vpack.c.bf16 %v4777_v11, %v4773_v32  ;;  %v4766_v31 = vadd.f32 1.0, %v6611_v1  ;;  %v4772_v22 = vmul.f32 %v4764_v41, %v4708_v14 }
0x1070   :  { %v4848_v26 = vpack.c.bf16 %v4779_v3, %v4775_v2  ;;  %v4776_v23 = vmul.f32 %v4768_v56, %v4712_v4  ;;  %v4770_v35 = vadd.f32 1.0, %v6613_v25 }
0x1071   :  { %5073 = vmatprep.mubr.bf16.mxu1 %v4846_v18  ;;  %v4774_v63 = vmul.f32 %v4766_v31, %v4710_v54 }
0x1072   :  { %5114 = vmatprep.mubr.bf16.mxu0 %v4848_v26  ;;  %v4845_v20 = vpack.c.bf16 %v4776_v23, %v4772_v22  ;;  %v4778_v29 = vmul.f32 %v4770_v35, %v4714_v42 }
0x1074   :  { %5074 = vmatmul.mubr.bf16.vlgmr.msra.gmra.mxu1 %v4845_v20  ;;  %v4847_v0 = vpack.c.bf16 %v4778_v29, %v4774_v63 }
0x1076   :  { %5115 = vmatmul.mubr.bf16.vlgmr.msra.gmra.mxu0 %v4847_v0 }
0x1134   :  { %v5780_v62 = vpop.f32.mrf.mxu1 }
0x1136   :  { %v5802_v48 = vpop.f32.mrf.mxu0  ;;  %v5781_v10 = vpop.f32.mrf.mxu1 }
0x1137   :  { %v5782_v47 = vadd.f32 %v5781_v10, %v5780_v62 }
0x1138   :  { %v5803_v24 = vpop.f32.mrf.mxu0  ;;  %v5783_v27 = vpop.f32.mrf.mxu1 }
0x1139   :  { %v5076_v53 = vadd.f32 %v5782_v47, %v4244_v30  ;;  %v5804_v19 = vadd.f32 %v5803_v24, %v5802_v48 }
0x113a   :  { %v5805_v16 = vpop.f32.mrf.mxu0  ;;  %v5784_v43 = vpop.f32.mrf.mxu1 }
0x113b   :  { %v5117_v33 = vadd.f32 %v5804_v19, %v5076_v53  ;;  %v5785_v45 = vadd.f32 %v5784_v43, %v5783_v27 }
0x113c   :  { %v5806_v36 = vpop.f32.mrf.mxu0 }
0x113d   :  { %v5123_v37 = vadd.f32 %v5117_v33, %v7222_v40  ;;  %v5079_v38 = vadd.f32 %v5785_v45, %v4244_v30  ;;  %v5807_v5 = vadd.f32 %v5806_v36, %v5805_v16 }
0x113f   :  { %v5125_v28 = vadd.f32 %v6614_v46, %v5123_v37  ;;  %v5120_v39 = vadd.f32 %v5807_v5, %v5079_v38 }
0x1141   :  { %5127 = vst [vmem:[#allocation14] sm:$0xff] %v5125_v28  ;;  %v5124_v59 = vadd.f32 %v5120_v39, %v7226_v34 }
0x1143   :  { %v5126_v51 = vadd.f32 %v6615_v13, %v5124_v59 }
0x1145   :  { %5128 = vst [vmem:[#allocation14 + $0x8] sm:$0xff] %v5126_v51 }
0x1146   :  { %6767 = shalt.err (!%p6764_p11)
}
0x1147   :  { %s6803_s18 = smov 128   ;;  %s6804_s19 = smov 8  }
0x1148   :  { %5140 = dma.vmem_to_hbm [thread:$0]  %s5135_s3, 256, %s7357_s10, [#allocation4], %s6803_s18, %s6803_s18, %s6804_s19  }
0x1149   :  { %6784 = dma.done.wait [#allocation4], 256  }
0x114a   :  { %6785 = vsyncadd [#allocation4], 4294967040 }
0x114b   :  { %5144 = vsyncpa [#allocation3], 1 }
0x114c   :  { %5145 = vsyncpa [#allocation6], 1 }
0x114d   :  { %5146 = vsyncpa [#allocation9], 1 }
0x114e   :  { %5147 = vsyncpa [#allocation12], 1 }
0x114f   :  { %5148 = vsyncpa [#allocation4], 1 }

</bundles_post_ra>
